<compile_context>
chip_gen: v7x
topology: tpu7x:2x2x1
jax: 0.10.0
libtpu: 0.0.40
codegen_flags: <defaults>
</compile_context>

<pallas_src>
import functools

import jax
import jax.numpy as jnp
from jax import lax
from jax.experimental import pallas as pl
from jax.experimental.pallas import tpu as pltpu

NEG_SLOPE = 0.01          # torch.nn.functional.leaky_relu default
LANE = 128                # TPU lane width; conv/linear2 out channels padded to it
FC_K_BLOCK = 2048         # K tile for the (large-geometry) K-tiled linear1 path
FC_CORE_SPLIT = 2         # split linear1's N1 into this many resident slabs
                          # (sharded across TensorCores on v7x via "parallel")
VMEM_LIMIT = 32 * 1024 * 1024


def _round_up(x, m):
    return (x + m - 1) // m * m


def _leaky(y):
    return jnp.where(y >= 0, y, NEG_SLOPE * y)


def _fc_k_padded(k):
    """Padded K for the fused FC kernel: single block if small, else 2048-tiled."""
    if k <= 2 * FC_K_BLOCK:
        return _round_up(k, 8)
    return _round_up(k, FC_K_BLOCK)


# ---------------------------------------------------------------------------
# Kernel 1: fused 3x3 conv (matmul over tap-major im2col) + bias + leaky_relu
# + 2x2 max-pool.  Grid = (M_tiles,); all 4 pool taps are processed inside one
# grid step (block (4, tm, Kp)) with an in-register running max.  Single K
# block, no scratch, 128-lane-dense output.
# ---------------------------------------------------------------------------
def _conv_pool_kernel(x_ref, w_ref, b_ref, o_ref):
    w = w_ref[...]
    b = b_ref[...]
    best = None
    for t in range(4):                      # 4 pool taps folded into one step
        y = _leaky(jnp.dot(x_ref[t], w, preferred_element_type=jnp.float32) + b)
        best = y if best is None else jnp.maximum(best, y)
    o_ref[...] = best


def conv3x3_leaky_pool2(x_nhwc, w_padded, b_padded, *, tm_max=2048):
    """3x3 VALID conv + bias + leaky_relu + 2x2 max-pool (floor), fused.

    x_nhwc:   (B, H, W, Cin) f32
    w_padded: (Kp, 128) with Kp = round_up(Cin*9, 8); rows ordered (cin,ky,kx),
              zero-padded; columns beyond Cout are zero.
    b_padded: (1, 128), zero beyond Cout.
    Returns (out, Mq, H2, W2) where out is (round_up(Mq,tm), 128) with rows
    ordered (b, h2, w2) and channels on the 128-lane axis.
    """
    B, H, W, C = x_nhwc.shape
    Ho, Wo = H - 2, W - 2
    H2, W2 = Ho // 2, Wo // 2
    K = C * 9
    Kp = w_padded.shape[0]
    assert Kp == _round_up(K, 8)

    # TODO(synk): move this tap-major im2col into the kernel (accumulate the 9
    # shifted (tm, C) x (C, 128) matmuls per tap directly from the raw NHWC
    # input) to avoid materializing the 9x-duplicated column matrix in HBM.
    x_nhwc = x_nhwc.astype(jnp.float32)
    taps = []
    for dy in range(2):
        for dx in range(2):
            patch = jnp.stack(
                [x_nhwc[:, dy + ky: dy + ky + 2 * H2 - 1: 2,
                        dx + kx: dx + kx + 2 * W2 - 1: 2, :]
                 for ky in range(3) for kx in range(3)],
                axis=-1)                              # (B, H2, W2, C, 9)
            taps.append(patch.reshape(B * H2 * W2, K))
    cols = jnp.stack(taps, axis=0)                    # (4, Mq, K)

    Mq = B * H2 * W2
    tm = min(tm_max, _round_up(Mq, 8))
    Mq_p = _round_up(Mq, tm)
    cols_p = jnp.pad(cols, ((0, 0), (0, Mq_p - Mq), (0, Kp - K)))

    out = pl.pallas_call(
        _conv_pool_kernel,
        out_shape=jax.ShapeDtypeStruct((Mq_p, LANE), jnp.float32),
        grid_spec=pltpu.PrefetchScalarGridSpec(
            num_scalar_prefetch=0,
            grid=(Mq_p // tm,),
            in_specs=[
                pl.BlockSpec((4, tm, Kp), lambda m: (0, m, 0)),
                pl.BlockSpec((Kp, LANE), lambda m: (0, 0)),
                pl.BlockSpec((1, LANE), lambda m: (0, 0)),
            ],
            out_specs=pl.BlockSpec((tm, LANE), lambda m: (m, 0)),
        ),
        compiler_params=pltpu.CompilerParams(
            dimension_semantics=("parallel",),
            vmem_limit_bytes=VMEM_LIMIT),
    )(cols_p, w_padded, b_padded)
    return out, Mq, H2, W2


# ---------------------------------------------------------------------------
# Kernel 2: fused linear1 + leaky_relu + linear2.
# Grid = (FC_CORE_SPLIT, K1_tiles).  Each slab c owns N1/FC_CORE_SPLIT hidden
# columns: it streams its half of the bf16 linear1 weight exactly once,
# accumulates the hidden activation in f32 (VMEM scratch when K is tiled),
# applies bias+leaky, and writes its own 128-lane-dense partial of linear2's
# output.  The partials are summed (+bias2, leaky) in a tiny XLA epilogue.
# The hidden activation never touches HBM.
# ---------------------------------------------------------------------------
def _fc_fused_kernel(x_ref, w1_ref, b1_ref, w2_ref, o_ref, *scratch, nk):
    k = pl.program_id(1)

    if nk == 1:
        # Single K block (small flatten dim): no accumulator scratch at all.
        h = _leaky(jnp.dot(x_ref[...], w1_ref[...],
                           preferred_element_type=jnp.float32) + b1_ref[...])
        o_ref[...] = jnp.dot(h, w2_ref[...], preferred_element_type=jnp.float32)
    else:
        # General K-tiled path (module's real 96228-feature geometry).
        (h_acc,) = scratch

        @pl.when(k == 0)
        def _zero_hidden():
            h_acc[...] = jnp.zeros_like(h_acc)

        h_acc[...] += jnp.dot(x_ref[...], w1_ref[...],
                              preferred_element_type=jnp.float32)

        @pl.when(k == nk - 1)
        def _second():
            h = _leaky(h_acc[...] + b1_ref[...])
            o_ref[...] = jnp.dot(h, w2_ref[...],
                                 preferred_element_type=jnp.float32)


def fc2_fused(fv, w1p, b1p, w2p, b2p):
    """leaky(leaky(fv @ w1 + b1) @ w2 + b2).

    fv:  (M, K)       activations (K unpadded), cast to bf16 for the MXU
    w1p: (Kp, N1)     linear1 weight, bf16, columns already in fv's order
    b1p: (1, N1)      f32
    w2p: (N1, 128)    linear2 weight, f32, columns zero-padded beyond 42
    b2p: (1, 128)     f32
    Returns (Mp, 128) f32.
    """
    M, K = fv.shape
    Kp, N1 = w1p.shape
    N2p = w2p.shape[1]
    Mp = _round_up(max(M, 8), 8)
    nc = FC_CORE_SPLIT
    assert N1 % nc == 0
    tn = N1 // nc
    tk = Kp if Kp <= 2 * FC_K_BLOCK else FC_K_BLOCK
    assert Kp % tk == 0
    nk = Kp // tk

    xp = jnp.pad(fv.astype(jnp.bfloat16), ((0, Mp - M), (0, Kp - K)))

    scratch_shapes = [] if nk == 1 else [pltpu.VMEM((Mp, tn), jnp.float32)]

    partials = pl.pallas_call(
        functools.partial(_fc_fused_kernel, nk=nk),
        out_shape=jax.ShapeDtypeStruct((Mp, nc * N2p), jnp.float32),
        grid_spec=pltpu.PrefetchScalarGridSpec(
            num_scalar_prefetch=0,
            grid=(nc, nk),
            in_specs=[
                pl.BlockSpec((Mp, tk), lambda c, k: (0, k)),
                pl.BlockSpec((tk, tn), lambda c, k: (k, c)),
                pl.BlockSpec((1, tn), lambda c, k: (0, c)),
                pl.BlockSpec((tn, N2p), lambda c, k: (c, 0)),
            ],
            out_specs=pl.BlockSpec((Mp, N2p), lambda c, k: (0, c)),
            scratch_shapes=scratch_shapes,
        ),
        compiler_params=pltpu.CompilerParams(
            dimension_semantics=("parallel", "arbitrary"),
            vmem_limit_bytes=VMEM_LIMIT),
    )(xp, w1p, b1p, w2p)

    # Tiny (Mp x 128) epilogue: sum per-slab partials, add bias2, leaky.
    out = partials.reshape(Mp, nc, N2p).sum(axis=1)
    return _leaky(out + b2p)


# ---------------------------------------------------------------------------
# One-time parameter packing (padding / permutation / bf16 cast done once).
# ---------------------------------------------------------------------------
def prepare_params(p, h2b, w2b):
    def conv_pack(w, b, cout):
        k = w.shape[1] * 9
        kp = _round_up(k, 8)
        wm = jnp.zeros((kp, LANE), jnp.float32).at[:k, :cout].set(
            w.reshape(cout, k).T.astype(jnp.float32))
        bm = jnp.zeros((1, LANE), jnp.float32).at[0, :cout].set(
            b.astype(jnp.float32))
        return wm, bm

    w1m, b1m = conv_pack(p["w1"], p["b1"], 11)
    w2m, b2m = conv_pack(p["w2"], p["b2"], 33)

    # linear1: permute columns from torch's (c, h, w) flatten order to our
    # (h, w, c) order, transpose to (K, 2048), pad K once, store as bf16
    # (this weight dominates HBM traffic; MXU accumulates in f32).
    flat = 33 * h2b * w2b
    wl1 = (p["wl1"].reshape(2048, 33, h2b, w2b)
           .transpose(0, 2, 3, 1).reshape(2048, flat).T.astype(jnp.float32))
    kp = _fc_k_padded(flat)
    wl1p = jnp.pad(wl1, ((0, kp - flat), (0, 0))).astype(jnp.bfloat16)
    bl1 = p["bl1"].reshape(1, 2048).astype(jnp.float32)
    # linear2 weight is tiny -> keep f32 for accuracy.
    wl2p = jnp.zeros((2048, LANE), jnp.float32).at[:, :42].set(
        p["wl2"].T.astype(jnp.float32))
    bl2 = jnp.zeros((1, LANE), jnp.float32).at[0, :42].set(
        p["bl2"].astype(jnp.float32))
    return {"w1": w1m, "b1": b1m, "w2": w2m, "b2": b2m,
            "wl1": wl1p, "bl1": bl1, "wl2": wl2p, "bl2": bl2}


# ---------------------------------------------------------------------------
# PoseModel.forward
# ---------------------------------------------------------------------------
def pose_model_forward(image_nchw, pp):
    B = image_nchw.shape[0]
    x = jnp.transpose(image_nchw, (0, 2, 3, 1)).astype(jnp.float32)  # -> NHWC

    # conv1 + leaky_relu + mp1 (one fused call)
    y1, m1, h1, w1_ = conv3x3_leaky_pool2(x, pp["w1"], pp["b1"])
    y1 = y1[:m1, :11].reshape(B, h1, w1_, 11)

    # conv2 + leaky_relu + mp2 (one fused call)
    y2, m2, h2, w2_ = conv3x3_leaky_pool2(y1, pp["w2"], pp["b2"])

    # flatten: rows are already (b, h, w) with channels last; linear1's weight
    # columns were permuted to this (h, w, c) order at setup time.
    fv = y2[:m2, :33].reshape(B, h2 * w2_ * 33)

    # linear1 + leaky + linear2 + leaky (one fused call + 8x128 epilogue)
    out = fc2_fused(fv, pp["wl1"], pp["bl1"], pp["wl2"], pp["bl2"])
    return out[:B, :42]


# ---------------------------------------------------------------------------
# Deterministic parameter init (shapes from the module; PyTorch-style bounds).
# ---------------------------------------------------------------------------
def init_params(key, flat_features):
    ks = jax.random.split(key, 8)

    def u(k, shape, fan_in):
        bound = 1.0 / (fan_in ** 0.5)
        return jax.random.uniform(k, shape, jnp.float32, -bound, bound)

    return {
        "w1": u(ks[0], (11, 1, 3, 3), 9),
        "b1": u(ks[1], (11,), 9),
        "w2": u(ks[2], (33, 11, 3, 3), 99),
        "b2": u(ks[3], (33,), 99),
        # conv3 / mp3 are unused by forward(); not instantiated.
        "wl1": u(ks[4], (2048, flat_features), flat_features),
        "bl1": u(ks[5], (2048,), flat_features),
        "wl2": u(ks[6], (42, 2048), 2048),
        "bl2": u(ks[7], (42,), 2048),
    }


# ---------------------------------------------------------------------------
# Pure-JAX reference (numerical check against the torch semantics).
# ---------------------------------------------------------------------------
def reference_forward(image, p):
    hp = lax.Precision.HIGHEST

    def conv(x, w, b):
        y = lax.conv_general_dilated(
            x, w, (1, 1), "VALID",
            dimension_numbers=("NCHW", "OIHW", "NCHW"), precision=hp)
        return y + b[None, :, None, None]

    def pool(x):
        B, C, H, W = x.shape
        H2, W2 = H // 2, W // 2
        return jnp.max(
            x[:, :, :2 * H2, :2 * W2].reshape(B, C, H2, 2, W2, 2), axis=(3, 5))

    y = pool(_leaky(conv(image, p["w1"], p["b1"])))
    y = pool(_leaky(conv(y, p["w2"], p["b2"])))
    fv = y.reshape(y.shape[0], -1)
    fv = _leaky(jnp.dot(fv, p["wl1"].T, precision=hp) + p["bl1"])
    fv = _leaky(jnp.dot(fv, p["wl2"].T, precision=hp) + p["bl2"])
    return fv


if __name__ == "__main__":
    B, H, W = 2, 18, 18                    # small geometry (original: 222x222)
    h1 = (H - 2) // 2                      # after conv1 + mp1
    h2 = (h1 - 2) // 2                     # after conv2 + mp2
    flat = 33 * h2 * h2                    # 297 here (96228 in the original)

    key = jax.random.PRNGKey(0)
    k_img, k_par = jax.random.split(key)
    image = jax.random.normal(k_img, (B, 1, H, W), jnp.float32)
    params = init_params(k_par, flat)
    prepared = prepare_params(params, h2, h2)   # weight packing done ONCE

    fwd = jax.jit(pose_model_forward)
    out = jax.block_until_ready(fwd(image, prepared))

    ref = reference_forward(image, params)
    assert out.shape == (B, 42), out.shape
    assert bool(jnp.all(jnp.isfinite(out)))
    max_err = float(jnp.max(jnp.abs(out - ref)))
    assert jnp.allclose(out, ref, rtol=5e-3, atol=5e-3), f"max abs err {max_err}"

    print("KERNEL_OK")
</pallas_src>

<mosaic_0001>
module attributes {stable_mosaic.version = 11 : i64} {
  func.func @_conv_pool_kernel(%arg0: i32, %arg1: memref<4x128x16xf32, #tpu.memory_space<vmem>>, %arg2: memref<16x128xf32, #tpu.memory_space<vmem>>, %arg3: memref<1x128xf32, #tpu.memory_space<vmem>>, %arg4: memref<128x128xf32, #tpu.memory_space<vmem>>) attributes {dimension_semantics = [#tpu.dimension_semantics<parallel>], iteration_bounds = array<i64: 1>, scalar_prefetch = 0 : i64, scratch_operands = 0 : i64, tpu.core_type = #tpu.core_type<tc>, window_params = [{transform_indices = @transform_0, window_bounds = array<i64: 4, 128, 16>}, {pipeline_mode = #tpu.pipeline_mode<synchronous>, transform_indices = @transform_1, window_bounds = array<i64: 16, 128>}, {pipeline_mode = #tpu.pipeline_mode<synchronous>, transform_indices = @transform_2, window_bounds = array<i64: 1, 128>}, {transform_indices = @transform_3, window_bounds = array<i64: 128, 128>}]} {
    %c0 = arith.constant 0 : index
    %c0_0 = arith.constant 0 : index
    %0 = vector.load %arg2[%c0, %c0_0] : memref<16x128xf32, #tpu.memory_space<vmem>>, vector<16x128xf32>
    %c0_1 = arith.constant 0 : index
    %c0_2 = arith.constant 0 : index
    %1 = vector.load %arg3[%c0_1, %c0_2] : memref<1x128xf32, #tpu.memory_space<vmem>>, vector<1x128xf32>
    %c0_3 = arith.constant 0 : index
    %c0_4 = arith.constant 0 : index
    %c0_5 = arith.constant 0 : index
    %2 = vector.load %arg1[%c0_3, %c0_4, %c0_5] : memref<4x128x16xf32, #tpu.memory_space<vmem>>, vector<1x128x16xf32>
    %3 = vector.shape_cast %2 : vector<1x128x16xf32> to vector<128x16xf32>
    %cst = arith.constant dense<0.000000e+00> : vector<128x128xf32>
    %4 = tpu.matmul %3, %0, %cst {dimension_numbers = #tpu.dot_dimension_numbers<[1], [0], [0], [1], [0, 0, 1, 1], [], []>} : vector<128x16xf32>, vector<16x128xf32>, vector<128x128xf32> -> vector<128x128xf32>
    %5 = vector.broadcast %1 : vector<1x128xf32> to vector<128x128xf32>
    %6 = arith.addf %4, %5 : vector<128x128xf32>
    %cst_6 = arith.constant 0.000000e+00 : f32
    %7 = vector.broadcast %cst_6 : f32 to vector<128x128xf32>
    %8 = arith.cmpf oge, %6, %7 : vector<128x128xf32>
    %cst_7 = arith.constant 0.00999999977 : f32
    %9 = vector.broadcast %cst_7 : f32 to vector<128x128xf32>
    %10 = arith.mulf %9, %6 : vector<128x128xf32>
    %11 = arith.select %8, %6, %10 : vector<128x128xi1>, vector<128x128xf32>
    %c1 = arith.constant 1 : index
    %c0_8 = arith.constant 0 : index
    %c0_9 = arith.constant 0 : index
    %12 = vector.load %arg1[%c1, %c0_8, %c0_9] : memref<4x128x16xf32, #tpu.memory_space<vmem>>, vector<1x128x16xf32>
    %13 = vector.shape_cast %12 : vector<1x128x16xf32> to vector<128x16xf32>
    %cst_10 = arith.constant dense<0.000000e+00> : vector<128x128xf32>
    %14 = tpu.matmul %13, %0, %cst_10 {dimension_numbers = #tpu.dot_dimension_numbers<[1], [0], [0], [1], [0, 0, 1, 1], [], []>} : vector<128x16xf32>, vector<16x128xf32>, vector<128x128xf32> -> vector<128x128xf32>
    %15 = vector.broadcast %1 : vector<1x128xf32> to vector<128x128xf32>
    %16 = arith.addf %14, %15 : vector<128x128xf32>
    %cst_11 = arith.constant 0.000000e+00 : f32
    %17 = vector.broadcast %cst_11 : f32 to vector<128x128xf32>
    %18 = arith.cmpf oge, %16, %17 : vector<128x128xf32>
    %cst_12 = arith.constant 0.00999999977 : f32
    %19 = vector.broadcast %cst_12 : f32 to vector<128x128xf32>
    %20 = arith.mulf %19, %16 : vector<128x128xf32>
    %21 = arith.select %18, %16, %20 : vector<128x128xi1>, vector<128x128xf32>
    %22 = arith.maximumf %11, %21 : vector<128x128xf32>
    %c2 = arith.constant 2 : index
    %c0_13 = arith.constant 0 : index
    %c0_14 = arith.constant 0 : index
    %23 = vector.load %arg1[%c2, %c0_13, %c0_14] : memref<4x128x16xf32, #tpu.memory_space<vmem>>, vector<1x128x16xf32>
    %24 = vector.shape_cast %23 : vector<1x128x16xf32> to vector<128x16xf32>
    %cst_15 = arith.constant dense<0.000000e+00> : vector<128x128xf32>
    %25 = tpu.matmul %24, %0, %cst_15 {dimension_numbers = #tpu.dot_dimension_numbers<[1], [0], [0], [1], [0, 0, 1, 1], [], []>} : vector<128x16xf32>, vector<16x128xf32>, vector<128x128xf32> -> vector<128x128xf32>
    %26 = vector.broadcast %1 : vector<1x128xf32> to vector<128x128xf32>
    %27 = arith.addf %25, %26 : vector<128x128xf32>
    %cst_16 = arith.constant 0.000000e+00 : f32
    %28 = vector.broadcast %cst_16 : f32 to vector<128x128xf32>
    %29 = arith.cmpf oge, %27, %28 : vector<128x128xf32>
    %cst_17 = arith.constant 0.00999999977 : f32
    %30 = vector.broadcast %cst_17 : f32 to vector<128x128xf32>
    %31 = arith.mulf %30, %27 : vector<128x128xf32>
    %32 = arith.select %29, %27, %31 : vector<128x128xi1>, vector<128x128xf32>
    %33 = arith.maximumf %22, %32 : vector<128x128xf32>
    %c3 = arith.constant 3 : index
    %c0_18 = arith.constant 0 : index
    %c0_19 = arith.constant 0 : index
    %34 = vector.load %arg1[%c3, %c0_18, %c0_19] : memref<4x128x16xf32, #tpu.memory_space<vmem>>, vector<1x128x16xf32>
    %35 = vector.shape_cast %34 : vector<1x128x16xf32> to vector<128x16xf32>
    %cst_20 = arith.constant dense<0.000000e+00> : vector<128x128xf32>
    %36 = tpu.matmul %35, %0, %cst_20 {dimension_numbers = #tpu.dot_dimension_numbers<[1], [0], [0], [1], [0, 0, 1, 1], [], []>} : vector<128x16xf32>, vector<16x128xf32>, vector<128x128xf32> -> vector<128x128xf32>
    %37 = vector.broadcast %1 : vector<1x128xf32> to vector<128x128xf32>
    %38 = arith.addf %36, %37 : vector<128x128xf32>
    %cst_21 = arith.constant 0.000000e+00 : f32
    %39 = vector.broadcast %cst_21 : f32 to vector<128x128xf32>
    %40 = arith.cmpf oge, %38, %39 : vector<128x128xf32>
    %cst_22 = arith.constant 0.00999999977 : f32
    %41 = vector.broadcast %cst_22 : f32 to vector<128x128xf32>
    %42 = arith.mulf %41, %38 : vector<128x128xf32>
    %43 = arith.select %40, %38, %42 : vector<128x128xi1>, vector<128x128xf32>
    %44 = arith.maximumf %33, %43 : vector<128x128xf32>
    %c0_23 = arith.constant 0 : index
    %c0_24 = arith.constant 0 : index
    %45 = vector.load %arg4[%c0_23, %c0_24] : memref<128x128xf32, #tpu.memory_space<vmem>>, vector<128x128xf32>
    tpu.vector_store %arg4[%c0_23, %c0_24], %44 {strides = array<i32>} : memref<128x128xf32, #tpu.memory_space<vmem>>, vector<128x128xf32>,
    return
  }
  func.func @transform_0(%arg0: i32) -> (i32, i32, i32) {
    %c0_i32 = arith.constant 0 : i32
    %c0_i32_0 = arith.constant 0 : i32
    %c0_i32_1 = arith.constant 0 : i32
    return %c0_i32, %arg0, %c0_i32_0 : i32, i32, i32
  }
  func.func @transform_1(%arg0: i32) -> (i32, i32) {
    %c0_i32 = arith.constant 0 : i32
    %c0_i32_0 = arith.constant 0 : i32
    %c0_i32_1 = arith.constant 0 : i32
    return %c0_i32, %c0_i32_0 : i32, i32
  }
  func.func @transform_2(%arg0: i32) -> (i32, i32) {
    %c0_i32 = arith.constant 0 : i32
    %c0_i32_0 = arith.constant 0 : i32
    %c0_i32_1 = arith.constant 0 : i32
    return %c0_i32, %c0_i32_0 : i32, i32
  }
  func.func @transform_3(%arg0: i32) -> (i32, i32) {
    %c0_i32 = arith.constant 0 : i32
    %c0_i32_0 = arith.constant 0 : i32
    return %arg0, %c0_i32 : i32, i32
  }
}

module attributes {stable_mosaic.version = 11 : i64} {
  func.func @_conv_pool_kernel(%arg0: i32, %arg1: memref<4x24x104xf32, #tpu.memory_space<vmem>>, %arg2: memref<104x128xf32, #tpu.memory_space<vmem>>, %arg3: memref<1x128xf32, #tpu.memory_space<vmem>>, %arg4: memref<24x128xf32, #tpu.memory_space<vmem>>) attributes {dimension_semantics = [#tpu.dimension_semantics<parallel>], iteration_bounds = array<i64: 1>, scalar_prefetch = 0 : i64, scratch_operands = 0 : i64, tpu.core_type = #tpu.core_type<tc>, window_params = [{transform_indices = @transform_0, window_bounds = array<i64: 4, 24, 104>}, {pipeline_mode = #tpu.pipeline_mode<synchronous>, transform_indices = @transform_1, window_bounds = array<i64: 104, 128>}, {pipeline_mode = #tpu.pipeline_mode<synchronous>, transform_indices = @transform_2, window_bounds = array<i64: 1, 128>}, {transform_indices = @transform_3, window_bounds = array<i64: 24, 128>}]} {
    %c0 = arith.constant 0 : index
    %c0_0 = arith.constant 0 : index
    %0 = vector.load %arg2[%c0, %c0_0] : memref<104x128xf32, #tpu.memory_space<vmem>>, vector<104x128xf32>
    %c0_1 = arith.constant 0 : index
    %c0_2 = arith.constant 0 : index
    %1 = vector.load %arg3[%c0_1, %c0_2] : memref<1x128xf32, #tpu.memory_space<vmem>>, vector<1x128xf32>
    %c0_3 = arith.constant 0 : index
    %c0_4 = arith.constant 0 : index
    %c0_5 = arith.constant 0 : index
    %2 = vector.load %arg1[%c0_3, %c0_4, %c0_5] : memref<4x24x104xf32, #tpu.memory_space<vmem>>, vector<1x24x104xf32>
    %3 = vector.shape_cast %2 : vector<1x24x104xf32> to vector<24x104xf32>
    %cst = arith.constant dense<0.000000e+00> : vector<24x128xf32>
    %4 = tpu.matmul %3, %0, %cst {dimension_numbers = #tpu.dot_dimension_numbers<[1], [0], [0], [1], [0, 0, 1, 1], [], []>} : vector<24x104xf32>, vector<104x128xf32>, vector<24x128xf32> -> vector<24x128xf32>
    %5 = vector.broadcast %1 : vector<1x128xf32> to vector<24x128xf32>
    %6 = arith.addf %4, %5 : vector<24x128xf32>
    %cst_6 = arith.constant 0.000000e+00 : f32
    %7 = vector.broadcast %cst_6 : f32 to vector<24x128xf32>
    %8 = arith.cmpf oge, %6, %7 : vector<24x128xf32>
    %cst_7 = arith.constant 0.00999999977 : f32
    %9 = vector.broadcast %cst_7 : f32 to vector<24x128xf32>
    %10 = arith.mulf %9, %6 : vector<24x128xf32>
    %11 = arith.select %8, %6, %10 : vector<24x128xi1>, vector<24x128xf32>
    %c1 = arith.constant 1 : index
    %c0_8 = arith.constant 0 : index
    %c0_9 = arith.constant 0 : index
    %12 = vector.load %arg1[%c1, %c0_8, %c0_9] : memref<4x24x104xf32, #tpu.memory_space<vmem>>, vector<1x24x104xf32>
    %13 = vector.shape_cast %12 : vector<1x24x104xf32> to vector<24x104xf32>
    %cst_10 = arith.constant dense<0.000000e+00> : vector<24x128xf32>
    %14 = tpu.matmul %13, %0, %cst_10 {dimension_numbers = #tpu.dot_dimension_numbers<[1], [0], [0], [1], [0, 0, 1, 1], [], []>} : vector<24x104xf32>, vector<104x128xf32>, vector<24x128xf32> -> vector<24x128xf32>
    %15 = vector.broadcast %1 : vector<1x128xf32> to vector<24x128xf32>
    %16 = arith.addf %14, %15 : vector<24x128xf32>
    %cst_11 = arith.constant 0.000000e+00 : f32
    %17 = vector.broadcast %cst_11 : f32 to vector<24x128xf32>
    %18 = arith.cmpf oge, %16, %17 : vector<24x128xf32>
    %cst_12 = arith.constant 0.00999999977 : f32
    %19 = vector.broadcast %cst_12 : f32 to vector<24x128xf32>
    %20 = arith.mulf %19, %16 : vector<24x128xf32>
    %21 = arith.select %18, %16, %20 : vector<24x128xi1>, vector<24x128xf32>
    %22 = arith.maximumf %11, %21 : vector<24x128xf32>
    %c2 = arith.constant 2 : index
    %c0_13 = arith.constant 0 : index
    %c0_14 = arith.constant 0 : index
    %23 = vector.load %arg1[%c2, %c0_13, %c0_14] : memref<4x24x104xf32, #tpu.memory_space<vmem>>, vector<1x24x104xf32>
    %24 = vector.shape_cast %23 : vector<1x24x104xf32> to vector<24x104xf32>
    %cst_15 = arith.constant dense<0.000000e+00> : vector<24x128xf32>
    %25 = tpu.matmul %24, %0, %cst_15 {dimension_numbers = #tpu.dot_dimension_numbers<[1], [0], [0], [1], [0, 0, 1, 1], [], []>} : vector<24x104xf32>, vector<104x128xf32>, vector<24x128xf32> -> vector<24x128xf32>
    %26 = vector.broadcast %1 : vector<1x128xf32> to vector<24x128xf32>
    %27 = arith.addf %25, %26 : vector<24x128xf32>
    %cst_16 = arith.constant 0.000000e+00 : f32
    %28 = vector.broadcast %cst_16 : f32 to vector<24x128xf32>
    %29 = arith.cmpf oge, %27, %28 : vector<24x128xf32>
    %cst_17 = arith.constant 0.00999999977 : f32
    %30 = vector.broadcast %cst_17 : f32 to vector<24x128xf32>
    %31 = arith.mulf %30, %27 : vector<24x128xf32>
    %32 = arith.select %29, %27, %31 : vector<24x128xi1>, vector<24x128xf32>
    %33 = arith.maximumf %22, %32 : vector<24x128xf32>
    %c3 = arith.constant 3 : index
    %c0_18 = arith.constant 0 : index
    %c0_19 = arith.constant 0 : index
    %34 = vector.load %arg1[%c3, %c0_18, %c0_19] : memref<4x24x104xf32, #tpu.memory_space<vmem>>, vector<1x24x104xf32>
    %35 = vector.shape_cast %34 : vector<1x24x104xf32> to vector<24x104xf32>
    %cst_20 = arith.constant dense<0.000000e+00> : vector<24x128xf32>
    %36 = tpu.matmul %35, %0, %cst_20 {dimension_numbers = #tpu.dot_dimension_numbers<[1], [0], [0], [1], [0, 0, 1, 1], [], []>} : vector<24x104xf32>, vector<104x128xf32>, vector<24x128xf32> -> vector<24x128xf32>
    %37 = vector.broadcast %1 : vector<1x128xf32> to vector<24x128xf32>
    %38 = arith.addf %36, %37 : vector<24x128xf32>
    %cst_21 = arith.constant 0.000000e+00 : f32
    %39 = vector.broadcast %cst_21 : f32 to vector<24x128xf32>
    %40 = arith.cmpf oge, %38, %39 : vector<24x128xf32>
    %cst_22 = arith.constant 0.00999999977 : f32
    %41 = vector.broadcast %cst_22 : f32 to vector<24x128xf32>
    %42 = arith.mulf %41, %38 : vector<24x128xf32>
    %43 = arith.select %40, %38, %42 : vector<24x128xi1>, vector<24x128xf32>
    %44 = arith.maximumf %33, %43 : vector<24x128xf32>
    %c0_23 = arith.constant 0 : index
    %c0_24 = arith.constant 0 : index
    %45 = vector.load %arg4[%c0_23, %c0_24] : memref<24x128xf32, #tpu.memory_space<vmem>>, vector<24x128xf32>
    tpu.vector_store %arg4[%c0_23, %c0_24], %44 {strides = array<i32>} : memref<24x128xf32, #tpu.memory_space<vmem>>, vector<24x128xf32>,
    return
  }
  func.func @transform_0(%arg0: i32) -> (i32, i32, i32) {
    %c0_i32 = arith.constant 0 : i32
    %c0_i32_0 = arith.constant 0 : i32
    %c0_i32_1 = arith.constant 0 : i32
    return %c0_i32, %arg0, %c0_i32_0 : i32, i32, i32
  }
  func.func @transform_1(%arg0: i32) -> (i32, i32) {
    %c0_i32 = arith.constant 0 : i32
    %c0_i32_0 = arith.constant 0 : i32
    %c0_i32_1 = arith.constant 0 : i32
    return %c0_i32, %c0_i32_0 : i32, i32
  }
  func.func @transform_2(%arg0: i32) -> (i32, i32) {
    %c0_i32 = arith.constant 0 : i32
    %c0_i32_0 = arith.constant 0 : i32
    %c0_i32_1 = arith.constant 0 : i32
    return %c0_i32, %c0_i32_0 : i32, i32
  }
  func.func @transform_3(%arg0: i32) -> (i32, i32) {
    %c0_i32 = arith.constant 0 : i32
    %c0_i32_0 = arith.constant 0 : i32
    return %arg0, %c0_i32 : i32, i32
  }
}

module attributes {stable_mosaic.version = 11 : i64} {
  func.func @_fc_fused_kernel(%arg0: i32, %arg1: i32, %arg2: memref<8x304xbf16, #tpu.memory_space<vmem>>, %arg3: memref<304x1024xbf16, #tpu.memory_space<vmem>>, %arg4: memref<1x1024xf32, #tpu.memory_space<vmem>>, %arg5: memref<1024x128xf32, #tpu.memory_space<vmem>>, %arg6: memref<8x128xf32, #tpu.memory_space<vmem>>) attributes {dimension_semantics = [#tpu.dimension_semantics<parallel>, #tpu.dimension_semantics<arbitrary>], iteration_bounds = array<i64: 2, 1>, scalar_prefetch = 0 : i64, scratch_operands = 0 : i64, tpu.core_type = #tpu.core_type<tc>, window_params = [{transform_indices = @transform_0, window_bounds = array<i64: 8, 304>}, {transform_indices = @transform_1, window_bounds = array<i64: 304, 1024>}, {transform_indices = @transform_2, window_bounds = array<i64: 1, 1024>}, {transform_indices = @transform_3, window_bounds = array<i64: 1024, 128>}, {transform_indices = @transform_4, window_bounds = array<i64: 8, 128>}]} {
    %c0 = arith.constant 0 : index
    %c0_0 = arith.constant 0 : index
    %0 = vector.load %arg2[%c0, %c0_0] : memref<8x304xbf16, #tpu.memory_space<vmem>>, vector<8x304xbf16>
    %c0_1 = arith.constant 0 : index
    %c0_2 = arith.constant 0 : index
    %1 = vector.load %arg3[%c0_1, %c0_2] : memref<304x1024xbf16, #tpu.memory_space<vmem>>, vector<304x1024xbf16>
    %cst = arith.constant dense<0.000000e+00> : vector<8x1024xf32>
    %2 = tpu.matmul %0, %1, %cst {dimension_numbers = #tpu.dot_dimension_numbers<[1], [0], [0], [1], [0, 0, 1, 1], [], []>} : vector<8x304xbf16>, vector<304x1024xbf16>, vector<8x1024xf32> -> vector<8x1024xf32>
    %c0_3 = arith.constant 0 : index
    %c0_4 = arith.constant 0 : index
    %3 = vector.load %arg4[%c0_3, %c0_4] : memref<1x1024xf32, #tpu.memory_space<vmem>>, vector<1x1024xf32>
    %4 = vector.broadcast %3 : vector<1x1024xf32> to vector<8x1024xf32>
    %5 = arith.addf %2, %4 : vector<8x1024xf32>
    %cst_5 = arith.constant 0.000000e+00 : f32
    %6 = vector.broadcast %cst_5 : f32 to vector<8x1024xf32>
    %7 = arith.cmpf oge, %5, %6 : vector<8x1024xf32>
    %cst_6 = arith.constant 0.00999999977 : f32
    %8 = vector.broadcast %cst_6 : f32 to vector<8x1024xf32>
    %9 = arith.mulf %8, %5 : vector<8x1024xf32>
    %10 = arith.select %7, %5, %9 : vector<8x1024xi1>, vector<8x1024xf32>
    %c0_7 = arith.constant 0 : index
    %c0_8 = arith.constant 0 : index
    %11 = vector.load %arg5[%c0_7, %c0_8] : memref<1024x128xf32, #tpu.memory_space<vmem>>, vector<1024x128xf32>
    %cst_9 = arith.constant dense<0.000000e+00> : vector<8x128xf32>
    %12 = tpu.matmul %10, %11, %cst_9 {dimension_numbers = #tpu.dot_dimension_numbers<[1], [0], [0], [1], [0, 0, 1, 1], [], []>} : vector<8x1024xf32>, vector<1024x128xf32>, vector<8x128xf32> -> vector<8x128xf32>
    %c0_10 = arith.constant 0 : index
    %c0_11 = arith.constant 0 : index
    %13 = vector.load %arg6[%c0_10, %c0_11] : memref<8x128xf32, #tpu.memory_space<vmem>>, vector<8x128xf32>
    tpu.vector_store %arg6[%c0_10, %c0_11], %12 {strides = array<i32>} : memref<8x128xf32, #tpu.memory_space<vmem>>, vector<8x128xf32>,
    return
  }
  func.func @transform_0(%arg0: i32, %arg1: i32) -> (i32, i32) {
    %c0_i32 = arith.constant 0 : i32
    %c0_i32_0 = arith.constant 0 : i32
    return %c0_i32, %arg1 : i32, i32
  }
  func.func @transform_1(%arg0: i32, %arg1: i32) -> (i32, i32) {
    %c0_i32 = arith.constant 0 : i32
    return %arg1, %arg0 : i32, i32
  }
  func.func @transform_2(%arg0: i32, %arg1: i32) -> (i32, i32) {
    %c0_i32 = arith.constant 0 : i32
    %c0_i32_0 = arith.constant 0 : i32
    return %c0_i32, %arg0 : i32, i32
  }
  func.func @transform_3(%arg0: i32, %arg1: i32) -> (i32, i32) {
    %c0_i32 = arith.constant 0 : i32
    %c0_i32_0 = arith.constant 0 : i32
    return %arg0, %c0_i32 : i32, i32
  }
  func.func @transform_4(%arg0: i32, %arg1: i32) -> (i32, i32) {
    %c0_i32 = arith.constant 0 : i32
    %c0_i32_0 = arith.constant 0 : i32
    return %c0_i32, %arg0 : i32, i32
  }
}

</mosaic_0001>

<bundles_post_ra>
// kernel: pose_model_forward.3
= control target key start
LH: loop header
LB: loop body
LE: loop exit
PB: predicated region body
PF: predicated region fallthrough
CT: control target
= control target key end

     0   :  { %vm39_vm0 = vcmask 130048   ;;  %s1982_s1 = inlined_call_operand.vmem [shape: f32[16,128], index: 1, kind: input, shape index: {}]   ;;  %s1983_s0 = inlined_call_operand.vmem [shape: f32[4,128,16], index: 0, kind: input, shape index: {}]   ;;  %s1984_s2 = inlined_call_operand.vmem [shape: f32[1,128], index: 2, kind: input, shape index: {}]   ;;  %s1985_s3 = inlined_call_operand.vmem [shape: f32[128,128], index: 3, kind: output, shape index: {}]  }
   0x1   :  { %v14_v0 = vld [vmem:[%s1982_s1] sm:$0xff]  ;;  %v15_v1 = vld [vmem:[%s1982_s1 + $0x8] sm:$0xff]  ;;  %v19_v7 = vld [vmem:[%s1983_s0 + $0x10] sm:$0xff] }
   0x2   :  { %v17_v2 = vld [vmem:[%s1983_s0] sm:$0xff]  ;;  %v1420_v3 = vpack.c.bf16 %v15_v1, %v14_v0  ;;  %v18_v5 = vld [vmem:[%s1983_s0 + $0x8] sm:$0xff]  ;;  %v1142_v8 = vld [vmem:[%s1983_s0 + $0x90] sm:$0xff] }
   0x3   :  { %1312 = vmatprep.mubr.msk.f32.mxu0 %vm39_vm0, %v17_v2  ;;  %v1140_v4 = vld [vmem:[%s1983_s0 + $0x80] sm:$0xff]  ;;  %v1141_v6 = vld [vmem:[%s1983_s0 + $0x88] sm:$0xff]  ;;  %v20_v9 = vld [vmem:[%s1983_s0 + $0x18] sm:$0xff] }
   0x4   :  { %1340 = vmatprep.mubr.msk.f32.mxu1 %vm39_vm0, %v1140_v4  ;;  %1421 = vmatprep.subr.bf16.mxu0 %v1420_v3  ;;  %v1143_v10 = vld [vmem:[%s1983_s0 + $0x98] sm:$0xff]  ;;  %v21_v11 = vld [vmem:[%s1983_s0 + $0x20] sm:$0xff]  ;;  %v22_v13 = vld [vmem:[%s1983_s0 + $0x28] sm:$0xff] }
   0x5   :  { %1425 = vmatprep.subr.bf16.mxu1 %v1420_v3  ;;  %1423 = vmatpush3.bf16.msra.mxu0 %v1420_v3  ;;  %v1144_v12 = vld [vmem:[%s1983_s0 + $0xa0] sm:$0xff]  ;;  %v1145_v14 = vld [vmem:[%s1983_s0 + $0xa8] sm:$0xff]  ;;  %v23_v15 = vld [vmem:[%s1983_s0 + $0x30] sm:$0xff] }
   0x6   :  { %1427 = vmatpush3.bf16.msra.mxu1 %v1420_v3  ;;  %1429 = vmatprep.subr.bf16.mxu0 %v1420_v3  ;;  %v1146_v16 = vld [vmem:[%s1983_s0 + $0xb0] sm:$0xff]  ;;  %v24_v17 = vld [vmem:[%s1983_s0 + $0x38] sm:$0xff]  ;;  %v25_v19 = vld [vmem:[%s1983_s0 + $0x40] sm:$0xff] }
   0x7   :  { %1433 = vmatprep.subr.bf16.mxu1 %v1420_v3  ;;  %v1147_v18 = vld [vmem:[%s1983_s0 + $0xb8] sm:$0xff]  ;;  %v1148_v20 = vld [vmem:[%s1983_s0 + $0xc0] sm:$0xff]  ;;  %v26_v21 = vld [vmem:[%s1983_s0 + $0x48] sm:$0xff] }
   0x8   :  { %1313 = vmatmul.mubr.msk.f32.vlgmr.msra.gmra.mrb[0].mxu0 %vm39_vm0, %v18_v5  ;;  %v1149_v22 = vld [vmem:[%s1983_s0 + $0xc8] sm:$0xff]  ;;  %v27_v23 = vld [vmem:[%s1983_s0 + $0x50] sm:$0xff]  ;;  %v28_v25 = vld [vmem:[%s1983_s0 + $0x58] sm:$0xff] }
   0x9   :  { %1341 = vmatmul.mubr.msk.f32.vlgmr.msra.gmra.mrb[0].mxu1 %vm39_vm0, %v1141_v6  ;;  %1431 = vmatpush3.bf16.msra.mxu0 %v1420_v3  ;;  %v1150_v24 = vld [vmem:[%s1983_s0 + $0xd0] sm:$0xff]  ;;  %v1151_v26 = vld [vmem:[%s1983_s0 + $0xd8] sm:$0xff]  ;;  %v29_v27 = vld [vmem:[%s1983_s0 + $0x60] sm:$0xff] }
   0xa   :  { %1315 = vmatprep.mubr.msk.f32.mxu0 %vm39_vm0, %v19_v7  ;;  %1343 = vmatprep.mubr.msk.f32.mxu1 %vm39_vm0, %v1142_v8  ;;  %v1152_v28 = vld [vmem:[%s1983_s0 + $0xe0] sm:$0xff]  ;;  %v30_v29 = vld [vmem:[%s1983_s0 + $0x68] sm:$0xff]  ;;  %v31_v31 = vld [vmem:[%s1983_s0 + $0x70] sm:$0xff] }
   0xb   :  { %1435 = vmatpush3.bf16.msra.mxu1 %v1420_v3  ;;  %v1153_v30 = vld [vmem:[%s1983_s0 + $0xe8] sm:$0xff]  ;;  %v1154_v32 = vld [vmem:[%s1983_s0 + $0xf0] sm:$0xff]  ;;  %v32_v33 = vld [vmem:[%s1983_s0 + $0x78] sm:$0xff] }
   0xc   :  { %1316 = vmatmul.mubr.msk.f32.gmra.mrb[2].mxu0 %vm39_vm0, %v20_v9  ;;  %v1155_v34 = vld [vmem:[%s1983_s0 + $0xf8] sm:$0xff]  ;;  %v1172_v35 = vld [vmem:[%s1983_s0 + $0x100] sm:$0xff]  ;;  %v1173_v37 = vld [vmem:[%s1983_s0 + $0x108] sm:$0xff] }
   0xd   :  { %1344 = vmatmul.mubr.msk.f32.gmra.mrb[2].mxu1 %vm39_vm0, %v1143_v10  ;;  %1318 = vmatprep.mubr.msk.f32.mxu0 %vm39_vm0, %v21_v11  ;;  %v1204_v36 = vld [vmem:[%s1983_s0 + $0x180] sm:$0xff]  ;;  %v1205_v38 = vld [vmem:[%s1983_s0 + $0x188] sm:$0xff]  ;;  %v1174_v39 = vld [vmem:[%s1983_s0 + $0x110] sm:$0xff] }
   0xe   :  { %1346 = vmatprep.mubr.msk.f32.mxu1 %vm39_vm0, %v1144_v12  ;;  %v1206_v40 = vld [vmem:[%s1983_s0 + $0x190] sm:$0xff]  ;;  %v1175_v41 = vld [vmem:[%s1983_s0 + $0x118] sm:$0xff]  ;;  %v1176_v43 = vld [vmem:[%s1983_s0 + $0x120] sm:$0xff] }
   0xf   :  { %v1207_v42 = vld [vmem:[%s1983_s0 + $0x198] sm:$0xff]  ;;  %v1208_v44 = vld [vmem:[%s1983_s0 + $0x1a0] sm:$0xff]  ;;  %v1177_v45 = vld [vmem:[%s1983_s0 + $0x128] sm:$0xff] }
  0x10   :  { %1319 = vmatmul.mubr.msk.f32.gmra.mrb[4].mxu0 %vm39_vm0, %v22_v13  ;;  %v1209_v46 = vld [vmem:[%s1983_s0 + $0x1a8] sm:$0xff]  ;;  %v1178_v47 = vld [vmem:[%s1983_s0 + $0x130] sm:$0xff]  ;;  %v1179_v49 = vld [vmem:[%s1983_s0 + $0x138] sm:$0xff] }
  0x11   :  { %1347 = vmatmul.mubr.msk.f32.gmra.mrb[4].mxu1 %vm39_vm0, %v1145_v14  ;;  %1321 = vmatprep.mubr.msk.f32.mxu0 %vm39_vm0, %v23_v15  ;;  %v1210_v48 = vld [vmem:[%s1983_s0 + $0x1b0] sm:$0xff]  ;;  %v1211_v50 = vld [vmem:[%s1983_s0 + $0x1b8] sm:$0xff]  ;;  %v1180_v51 = vld [vmem:[%s1983_s0 + $0x140] sm:$0xff] }
  0x12   :  { %1349 = vmatprep.mubr.msk.f32.mxu1 %vm39_vm0, %v1146_v16  ;;  %v1212_v52 = vld [vmem:[%s1983_s0 + $0x1c0] sm:$0xff]  ;;  %v1181_v53 = vld [vmem:[%s1983_s0 + $0x148] sm:$0xff]  ;;  %v1182_v55 = vld [vmem:[%s1983_s0 + $0x150] sm:$0xff] }
  0x13   :  { %v1213_v54 = vld [vmem:[%s1983_s0 + $0x1c8] sm:$0xff]  ;;  %v1214_v56 = vld [vmem:[%s1983_s0 + $0x1d0] sm:$0xff]  ;;  %v1183_v57 = vld [vmem:[%s1983_s0 + $0x158] sm:$0xff] }
  0x14   :  { %1322 = vmatmul.mubr.msk.f32.gmra.mrb[6].mxu0 %vm39_vm0, %v24_v17  ;;  %v1215_v58 = vld [vmem:[%s1983_s0 + $0x1d8] sm:$0xff]  ;;  %v1184_v59 = vld [vmem:[%s1983_s0 + $0x160] sm:$0xff]  ;;  %v1185_v61 = vld [vmem:[%s1983_s0 + $0x168] sm:$0xff] }
  0x15   :  { %1350 = vmatmul.mubr.msk.f32.gmra.mrb[6].mxu1 %vm39_vm0, %v1147_v18  ;;  %1324 = vmatprep.mubr.msk.f32.mxu0 %vm39_vm0, %v25_v19  ;;  %v1216_v60 = vld [vmem:[%s1983_s0 + $0x1e0] sm:$0xff]  ;;  %v1217_v62 = vld [vmem:[%s1983_s0 + $0x1e8] sm:$0xff]  ;;  %v1186_v63 = vld [vmem:[%s1983_s0 + $0x170] sm:$0xff] }
  0x16   :  { %1352 = vmatprep.mubr.msk.f32.mxu1 %vm39_vm0, %v1148_v20  ;;  %v1218_v0 = vld [vmem:[%s1983_s0 + $0x1f0] sm:$0xff]  ;;  %v1187_v1 = vld [vmem:[%s1983_s0 + $0x178] sm:$0xff]  ;;  %v1721_v3 = vld [vmem:[%s1984_s2] ss:$0 sm:$0xff] }
  0x17   :  { %v1219_v2 = vld [vmem:[%s1983_s0 + $0x1f8] sm:$0xff] }
  0x18   :  { %1325 = vmatmul.mubr.msk.f32.gmra.mrb[8].mxu0 %vm39_vm0, %v26_v21 }
  0x19   :  { %1353 = vmatmul.mubr.msk.f32.gmra.mrb[8].mxu1 %vm39_vm0, %v1149_v22  ;;  %1327 = vmatprep.mubr.msk.f32.mxu0 %vm39_vm0, %v27_v23 }
  0x1a   :  { %1355 = vmatprep.mubr.msk.f32.mxu1 %vm39_vm0, %v1150_v24 }
  0x1c   :  { %1328 = vmatmul.mubr.msk.f32.gmra.mrb[10].mxu0 %vm39_vm0, %v28_v25 }
  0x1d   :  { %1356 = vmatmul.mubr.msk.f32.gmra.mrb[10].mxu1 %vm39_vm0, %v1151_v26  ;;  %1330 = vmatprep.mubr.msk.f32.mxu0 %vm39_vm0, %v29_v27 }
  0x1e   :  { %1358 = vmatprep.mubr.msk.f32.mxu1 %vm39_vm0, %v1152_v28 }
  0x20   :  { %1331 = vmatmul.mubr.msk.f32.gmra.mrb[12].mxu0 %vm39_vm0, %v30_v29 }
  0x21   :  { %1359 = vmatmul.mubr.msk.f32.gmra.mrb[12].mxu1 %vm39_vm0, %v1153_v30  ;;  %1333 = vmatprep.mubr.msk.f32.mxu0 %vm39_vm0, %v31_v31 }
  0x22   :  { %1361 = vmatprep.mubr.msk.f32.mxu1 %vm39_vm0, %v1154_v32 }
  0x24   :  { %1334 = vmatmul.mubr.msk.f32.gmra.mrb[14].mxu0 %vm39_vm0, %v32_v33 }
  0x25   :  { %1362 = vmatmul.mubr.msk.f32.gmra.mrb[14].mxu1 %vm39_vm0, %v1155_v34  ;;  %1368 = vmatprep.mubr.msk.f32.mxu0 %vm39_vm0, %v1172_v35 }
  0x26   :  { %1396 = vmatprep.mubr.msk.f32.mxu1 %vm39_vm0, %v1204_v36 }
  0x28   :  { %1369 = vmatmul.mubr.msk.f32.vlgmr.msra.gmra.mrb[16].mxu0 %vm39_vm0, %v1173_v37 }
  0x29   :  { %1397 = vmatmul.mubr.msk.f32.vlgmr.msra.gmra.mrb[16].mxu1 %vm39_vm0, %v1205_v38  ;;  %1371 = vmatprep.mubr.msk.f32.mxu0 %vm39_vm0, %v1174_v39 }
  0x2a   :  { %1399 = vmatprep.mubr.msk.f32.mxu1 %vm39_vm0, %v1206_v40 }
  0x2c   :  { %1372 = vmatmul.mubr.msk.f32.gmra.mrb[18].mxu0 %vm39_vm0, %v1175_v41 }
  0x2d   :  { %1400 = vmatmul.mubr.msk.f32.gmra.mrb[18].mxu1 %vm39_vm0, %v1207_v42  ;;  %1374 = vmatprep.mubr.msk.f32.mxu0 %vm39_vm0, %v1176_v43 }
  0x2e   :  { %1402 = vmatprep.mubr.msk.f32.mxu1 %vm39_vm0, %v1208_v44 }
  0x30   :  { %1375 = vmatmul.mubr.msk.f32.gmra.mrb[20].mxu0 %vm39_vm0, %v1177_v45 }
  0x31   :  { %1403 = vmatmul.mubr.msk.f32.gmra.mrb[20].mxu1 %vm39_vm0, %v1209_v46  ;;  %1377 = vmatprep.mubr.msk.f32.mxu0 %vm39_vm0, %v1178_v47 }
  0x32   :  { %1405 = vmatprep.mubr.msk.f32.mxu1 %vm39_vm0, %v1210_v48 }
  0x34   :  { %1378 = vmatmul.mubr.msk.f32.gmra.mrb[22].mxu0 %vm39_vm0, %v1179_v49 }
  0x35   :  { %1406 = vmatmul.mubr.msk.f32.gmra.mrb[22].mxu1 %vm39_vm0, %v1211_v50  ;;  %1380 = vmatprep.mubr.msk.f32.mxu0 %vm39_vm0, %v1180_v51 }
  0x36   :  { %1408 = vmatprep.mubr.msk.f32.mxu1 %vm39_vm0, %v1212_v52 }
  0x38   :  { %1381 = vmatmul.mubr.msk.f32.gmra.mrb[24].mxu0 %vm39_vm0, %v1181_v53 }
  0x39   :  { %1409 = vmatmul.mubr.msk.f32.gmra.mrb[24].mxu1 %vm39_vm0, %v1213_v54  ;;  %1383 = vmatprep.mubr.msk.f32.mxu0 %vm39_vm0, %v1182_v55 }
  0x3a   :  { %1411 = vmatprep.mubr.msk.f32.mxu1 %vm39_vm0, %v1214_v56 }
  0x3c   :  { %1384 = vmatmul.mubr.msk.f32.gmra.mrb[26].mxu0 %vm39_vm0, %v1183_v57 }
  0x3d   :  { %1412 = vmatmul.mubr.msk.f32.gmra.mrb[26].mxu1 %vm39_vm0, %v1215_v58  ;;  %1386 = vmatprep.mubr.msk.f32.mxu0 %vm39_vm0, %v1184_v59 }
  0x3e   :  { %1414 = vmatprep.mubr.msk.f32.mxu1 %vm39_vm0, %v1216_v60 }
  0x40   :  { %1387 = vmatmul.mubr.msk.f32.gmra.mrb[28].mxu0 %vm39_vm0, %v1185_v61 }
  0x41   :  { %1415 = vmatmul.mubr.msk.f32.gmra.mrb[28].mxu1 %vm39_vm0, %v1217_v62  ;;  %1389 = vmatprep.mubr.msk.f32.mxu0 %vm39_vm0, %v1186_v63 }
  0x42   :  { %1417 = vmatprep.mubr.msk.f32.mxu1 %vm39_vm0, %v1218_v0 }
  0x44   :  { %1390 = vmatmul.mubr.msk.f32.gmra.mrb[30].mxu0 %vm39_vm0, %v1187_v1 }
  0x45   :  { %1418 = vmatmul.mubr.msk.f32.gmra.mrb[30].mxu1 %vm39_vm0, %v1219_v2 }
  0xdb   :  { %v1314_v4 = vpop.f32.mrb[0].mxu0 }
  0xdc   :  { %v1342_v5 = vpop.f32.mrb[0].mxu1  ;;  %v160_v6 = vadd.f32 %v1314_v4, %v1721_v3  ;;  %v154_v8 = vpop.f32.mrb[1].mxu0 }
  0xdd   :  { %v418_v7 = vadd.f32 %v1342_v5, %v1721_v3  ;;  %v412_v9 = vpop.f32.mrb[1].mxu1  ;;  %v155_v10 = vadd.f32 %v1721_v3, %v154_v8 }
  0xde   :  { %v413_v11 = vadd.f32 %v1721_v3, %v412_v9  ;;  %vm234_vm1 = vcmp.ge.f32.partialorder %v160_v6, 0.0  ;;  %v250_v12 = vmul.f32 0.01, %v160_v6 }
  0xdf   :  { %vm492_vm2 = vcmp.ge.f32.partialorder %v418_v7, 0.0  ;;  %v508_v13 = vmul.f32 0.01, %v418_v7  ;;  %vm233_vm3 = vcmp.ge.f32.partialorder %v155_v10, 0.0  ;;  %v249_v14 = vmul.f32 0.01, %v155_v10 }
  0xe0   :  { %vm491_vm4 = vcmp.ge.f32.partialorder %v413_v11, 0.0  ;;  %v507_v15 = vmul.f32 0.01, %v413_v11  ;;  %v1727_v16 = vsel %vm234_vm1, %v160_v6, %v250_v12  ;;  %v1317_v18 = vpop.f32.mrb[2].mxu0  ;;  %v1345_v19 = vpop.f32.mrb[2].mxu1 }
  0xe1   :  { %v1729_v17 = vsel %vm492_vm2, %v418_v7, %v508_v13  ;;  %v1733_v21 = vsel %vm233_vm3, %v155_v10, %v249_v14  ;;  %v170_v23 = vadd.f32 %v1317_v18, %v1721_v3  ;;  %v164_v24 = vpop.f32.mrb[3].mxu0  ;;  %v422_v25 = vpop.f32.mrb[3].mxu1  ;;  %v428_v27 = vadd.f32 %v1345_v19, %v1721_v3 }
  0xe2   :  { %v540_v20 = vmax.f32 %v1727_v16, %v1729_v17  ;;  %v1735_v22 = vsel %vm491_vm4, %v413_v11, %v507_v15  ;;  %v165_v28 = vadd.f32 %v1721_v3, %v164_v24  ;;  %v423_v29 = vadd.f32 %v1721_v3, %v422_v25 }
  0xe3   :  { %v539_v26 = vmax.f32 %v1733_v21, %v1735_v22  ;;  %vm236_vm5 = vcmp.ge.f32.partialorder %v170_v23, 0.0  ;;  %v252_v30 = vmul.f32 0.01, %v170_v23  ;;  %v1320_v31 = vpop.f32.mrb[4].mxu0  ;;  %vm494_vm6 = vcmp.ge.f32.partialorder %v428_v27, 0.0 }
  0xe4   :  { %v1348_v32 = vpop.f32.mrb[4].mxu1  ;;  %v510_v33 = vmul.f32 0.01, %v428_v27  ;;  %vm235_vm7 = vcmp.ge.f32.partialorder %v165_v28, 0.0  ;;  %v251_v34 = vmul.f32 0.01, %v165_v28  ;;  %v180_v37 = vadd.f32 %v1320_v31, %v1721_v3 }
  0xe5   :  { %v1743_v35 = vsel %vm236_vm5, %v170_v23, %v252_v30  ;;  %vm493_vm8 = vcmp.ge.f32.partialorder %v423_v29, 0.0  ;;  %v509_v36 = vmul.f32 0.01, %v423_v29  ;;  %v174_v38 = vpop.f32.mrb[5].mxu0  ;;  %v432_v39 = vpop.f32.mrb[5].mxu1  ;;  %v438_v42 = vadd.f32 %v1348_v32, %v1721_v3 }
  0xe6   :  { %v1746_v40 = vsel %vm494_vm6, %v428_v27, %v510_v33  ;;  %v1748_v41 = vsel %vm235_vm7, %v165_v28, %v251_v34  ;;  %v175_v43 = vadd.f32 %v1721_v3, %v174_v38  ;;  %vm238_vm9 = vcmp.ge.f32.partialorder %v180_v37, 0.0 }
  0xe7   :  { %v542_v44 = vmax.f32 %v1743_v35, %v1746_v40  ;;  %v1754_v45 = vsel %vm493_vm8, %v423_v29, %v509_v36  ;;  %v254_v46 = vmul.f32 0.01, %v180_v37  ;;  %v1323_v47 = vpop.f32.mrb[6].mxu0  ;;  %vm496_vm10 = vcmp.ge.f32.partialorder %v438_v42, 0.0 }
  0xe8   :  { %v1351_v48 = vpop.f32.mrb[6].mxu1  ;;  %v541_v49 = vmax.f32 %v1748_v41, %v1754_v45  ;;  %v512_v50 = vmul.f32 0.01, %v438_v42  ;;  %vm237_vm11 = vcmp.ge.f32.partialorder %v175_v43, 0.0  ;;  %v184_v51 = vpop.f32.mrb[7].mxu0  ;;  %v433_v55 = vadd.f32 %v1721_v3, %v432_v39 }
  0xe9   :  { %v442_v52 = vpop.f32.mrb[7].mxu1  ;;  %v1758_v53 = vsel %vm238_vm9, %v180_v37, %v254_v46  ;;  %v253_v54 = vmul.f32 0.01, %v175_v43  ;;  %v190_v56 = vadd.f32 %v1323_v47, %v1721_v3  ;;  %v448_v58 = vadd.f32 %v1351_v48, %v1721_v3 }
  0xea   :  { %v1762_v57 = vsel %vm496_vm10, %v438_v42, %v512_v50  ;;  %v185_v59 = vadd.f32 %v1721_v3, %v184_v51  ;;  %v443_v60 = vadd.f32 %v1721_v3, %v442_v52  ;;  %vm495_vm12 = vcmp.ge.f32.partialorder %v433_v55, 0.0 }
  0xeb   :  { %v544_v61 = vmax.f32 %v1758_v53, %v1762_v57  ;;  %v1769_v62 = vsel %vm237_vm11, %v175_v43, %v253_v54  ;;  %v511_v63 = vmul.f32 0.01, %v433_v55  ;;  %v1326_v0 = vpop.f32.mrb[8].mxu0  ;;  %vm240_vm13 = vcmp.ge.f32.partialorder %v190_v56, 0.0 }
  0xec   :  { %v1354_v1 = vpop.f32.mrb[8].mxu1  ;;  %v256_v2 = vmul.f32 0.01, %v190_v56  ;;  %vm498_vm14 = vcmp.ge.f32.partialorder %v448_v58, 0.0  ;;  %v514_v4 = vmul.f32 0.01, %v448_v58  ;;  %v200_v15 = vadd.f32 %v1326_v0, %v1721_v3 }
  0xed   :  { %v1771_v5 = vsel %vm495_vm12, %v433_v55, %v511_v63  ;;  %vm239_vm15 = vcmp.ge.f32.partialorder %v185_v59, 0.0  ;;  %v255_v6 = vmul.f32 0.01, %v185_v59  ;;  %vm497_vm0 = vcmp.ge.f32.partialorder %v443_v60, 0.0  ;;  %v194_v7 = vpop.f32.mrb[9].mxu0  ;;  %v452_v8 = vpop.f32.mrb[9].mxu1 }
  0xee   :  { %v543_v9 = vmax.f32 %v1769_v62, %v1771_v5  ;;  %v1775_v10 = vsel %vm240_vm13, %v190_v56, %v256_v2  ;;  %v1777_v11 = vsel %vm498_vm14, %v448_v58, %v514_v4  ;;  %v513_v12 = vmul.f32 0.01, %v443_v60 }
  0xef   :  { %v1781_v14 = vsel %vm239_vm15, %v185_v59, %v255_v6  ;;  %v458_v18 = vadd.f32 %v1354_v1, %v1721_v3  ;;  %v1329_v19 = vpop.f32.mrb[10].mxu0  ;;  %v195_v25 = vadd.f32 %v1721_v3, %v194_v7  ;;  %v453_v27 = vadd.f32 %v1721_v3, %v452_v8 }
  0xf0   :  { %v1357_v23 = vpop.f32.mrb[10].mxu1  ;;  %v1785_v24 = vsel %vm497_vm0, %v443_v60, %v513_v12  ;;  %v210_v28 = vadd.f32 %v1329_v19, %v1721_v3  ;;  %v204_v29 = vpop.f32.mrb[11].mxu0  ;;  %vm242_vm1 = vcmp.ge.f32.partialorder %v200_v15, 0.0  ;;  %v258_v32 = vmul.f32 0.01, %v200_v15 }
  0xf1   :  { %v462_v30 = vpop.f32.mrb[11].mxu1  ;;  %vm500_vm2 = vcmp.ge.f32.partialorder %v458_v18, 0.0  ;;  %v516_v33 = vmul.f32 0.01, %v458_v18  ;;  %vm241_vm3 = vcmp.ge.f32.partialorder %v195_v25, 0.0  ;;  %vm499_vm4 = vcmp.ge.f32.partialorder %v453_v27, 0.0 }
  0xf2   :  { %v257_v34 = vmul.f32 0.01, %v195_v25  ;;  %v1792_v36 = vsel %vm242_vm1, %v200_v15, %v258_v32  ;;  %v515_v37 = vmul.f32 0.01, %v453_v27  ;;  %vm244_vm5 = vcmp.ge.f32.partialorder %v210_v28, 0.0 }
  0xf3   :  { %v260_v38 = vmul.f32 0.01, %v210_v28  ;;  %v1332_v39 = vpop.f32.mrb[12].mxu0  ;;  %v1794_v42 = vsel %vm500_vm2, %v458_v18, %v516_v33  ;;  %v468_v46 = vadd.f32 %v1357_v23, %v1721_v3  ;;  %v205_v47 = vadd.f32 %v1721_v3, %v204_v29 }
  0xf4   :  { %v1796_v43 = vsel %vm241_vm3, %v195_v25, %v257_v34  ;;  %v1360_v48 = vpop.f32.mrb[12].mxu1  ;;  %v214_v50 = vpop.f32.mrb[13].mxu0  ;;  %v1802_v52 = vsel %vm499_vm4, %v453_v27, %v515_v37  ;;  %v463_v55 = vadd.f32 %v1721_v3, %v462_v30  ;;  %v220_v0 = vadd.f32 %v1332_v39, %v1721_v3 }
  0xf5   :  { %v1804_v54 = vsel %vm244_vm5, %v210_v28, %v260_v38  ;;  %v472_v56 = vpop.f32.mrb[13].mxu1  ;;  %vm502_vm6 = vcmp.ge.f32.partialorder %v468_v46, 0.0  ;;  %v518_v59 = vmul.f32 0.01, %v468_v46  ;;  %vm243_vm7 = vcmp.ge.f32.partialorder %v205_v47, 0.0 }
  0xf6   :  { %v259_v60 = vmul.f32 0.01, %v205_v47  ;;  %vm501_vm8 = vcmp.ge.f32.partialorder %v463_v55, 0.0  ;;  %v517_v63 = vmul.f32 0.01, %v463_v55  ;;  %v478_v4 = vadd.f32 %v1360_v48, %v1721_v3 }
  0xf7   :  { %v1335_v1 = vpop.f32.mrb[14].mxu0  ;;  %v1810_v2 = vsel %vm502_vm6, %v468_v46, %v518_v59  ;;  %v215_v6 = vadd.f32 %v1721_v3, %v214_v50  ;;  %v473_v7 = vadd.f32 %v1721_v3, %v472_v56  ;;  %vm246_vm9 = vcmp.ge.f32.partialorder %v220_v0, 0.0 }
  0xf8   :  { %v1363_v8 = vpop.f32.mrb[14].mxu1  ;;  %v224_v12 = vpop.f32.mrb[15].mxu0  ;;  %v1817_v18 = vsel %vm243_vm7, %v205_v47, %v259_v60  ;;  %v1819_v19 = vsel %vm501_vm8, %v463_v55, %v517_v63  ;;  %v262_v27 = vmul.f32 0.01, %v220_v0  ;;  %vm504_vm10 = vcmp.ge.f32.partialorder %v478_v4, 0.0 }
  0xf9   :  { %v482_v23 = vpop.f32.mrb[15].mxu1  ;;  %v520_v28 = vmul.f32 0.01, %v478_v4  ;;  %vm245_vm11 = vcmp.ge.f32.partialorder %v215_v6, 0.0  ;;  %v261_v29 = vmul.f32 0.01, %v215_v6  ;;  %v230_v34 = vadd.f32 %v1335_v1, %v1721_v3 }
  0xfa   :  { %vm503_vm12 = vcmp.ge.f32.partialorder %v473_v7, 0.0  ;;  %v519_v30 = vmul.f32 0.01, %v473_v7  ;;  %v1823_v32 = vsel %vm246_vm9, %v220_v0, %v262_v27  ;;  %v488_v37 = vadd.f32 %v1363_v8, %v1721_v3 }
  0xfb   :  { %v1825_v33 = vsel %vm504_vm10, %v478_v4, %v520_v28  ;;  %v1370_v38 = vpop.f32.mrb[16].mxu0  ;;  %v1831_v47 = vsel %vm245_vm11, %v215_v6, %v261_v29  ;;  %v225_v50 = vadd.f32 %v1721_v3, %v224_v12  ;;  %vm248_vm13 = vcmp.ge.f32.partialorder %v230_v34, 0.0 }
  0xfc   :  { %v1398_v39 = vpop.f32.mrb[16].mxu1  ;;  %v1833_v48 = vsel %vm503_vm12, %v473_v7, %v519_v30  ;;  %v686_v55 = vpop.f32.mrb[17].mxu0  ;;  %v264_v60 = vmul.f32 0.01, %v230_v34  ;;  %vm506_vm14 = vcmp.ge.f32.partialorder %v488_v37, 0.0  ;;  %v483_v1 = vadd.f32 %v1721_v3, %v482_v23 }
  0xfd   :  { %v960_v56 = vpop.f32.mrb[17].mxu1  ;;  %v522_v63 = vmul.f32 0.01, %v488_v37  ;;  %vm247_vm15 = vcmp.ge.f32.partialorder %v225_v50, 0.0  ;;  %v263_v0 = vmul.f32 0.01, %v225_v50  ;;  %v692_v7 = vadd.f32 %v1370_v38, %v1721_v3 }
  0xfe   :  { %v1839_v6 = vsel %vm248_vm13, %v230_v34, %v264_v60  ;;  %v966_v8 = vadd.f32 %v1398_v39, %v1721_v3  ;;  %v687_v12 = vadd.f32 %v1721_v3, %v686_v55  ;;  %vm505_vm0 = vcmp.ge.f32.partialorder %v483_v1, 0.0 }
  0xff   :  { %v1373_v4 = vpop.f32.mrb[18].mxu0  ;;  %v1844_v29 = vsel %vm506_vm14, %v488_v37, %v522_v63  ;;  %v1846_v30 = vsel %vm247_vm15, %v225_v50, %v263_v0  ;;  %v521_v59 = vmul.f32 0.01, %v483_v1  ;;  %vm766_vm1 = vcmp.ge.f32.partialorder %v692_v7, 0.0 }
 0x100   :  { %v1401_v27 = vpop.f32.mrb[18].mxu1  ;;  %v696_v28 = vpop.f32.mrb[19].mxu0  ;;  %v782_v34 = vmul.f32 0.01, %v692_v7  ;;  %vm1040_vm2 = vcmp.ge.f32.partialorder %v966_v8, 0.0  ;;  %vm765_vm3 = vcmp.ge.f32.partialorder %v687_v12, 0.0  ;;  %v961_v63 = vadd.f32 %v1721_v3, %v960_v56 }
 0x101   :  { %v970_v46 = vpop.f32.mrb[19].mxu1  ;;  %v1850_v38 = vsel %vm505_vm0, %v483_v1, %v521_v59  ;;  %v1056_v39 = vmul.f32 0.01, %v966_v8  ;;  %v781_v55 = vmul.f32 0.01, %v687_v12  ;;  %v702_v0 = vadd.f32 %v1373_v4, %v1721_v3 }
 0x102   :  { %v798_v50 = vsel %vm766_vm1, %v692_v7, %v782_v34  ;;  %v976_v58 = vadd.f32 %v1401_v27, %v1721_v3  ;;  %vm1039_vm4 = vcmp.ge.f32.partialorder %v961_v63, 0.0  ;;  %v1055_v7 = vmul.f32 0.01, %v961_v63 }
 0x103   :  { %v1376_v60 = vpop.f32.mrb[20].mxu0  ;;  %v814_v23 = vmax.f32 %v540_v20, %v798_v50  ;;  %v1072_v59 = vsel %vm1040_vm2, %v966_v8, %v1056_v39  ;;  %v797_v1 = vsel %vm765_vm3, %v687_v12, %v781_v55  ;;  %vm768_vm5 = vcmp.ge.f32.partialorder %v702_v0, 0.0 }
 0x104   :  { %v1404_v25 = vpop.f32.mrb[20].mxu1  ;;  %v706_v15 = vpop.f32.mrb[21].mxu0  ;;  %v813_v37 = vmax.f32 %v539_v26, %v797_v1  ;;  %v784_v4 = vmul.f32 0.01, %v702_v0  ;;  %vm1042_vm6 = vcmp.ge.f32.partialorder %v976_v58, 0.0  ;;  %v1071_v13 = vsel %vm1039_vm4, %v961_v63, %v1055_v7 }
 0x105   :  { %v980_v51 = vpop.f32.mrb[21].mxu1  ;;  %v1088_v56 = vmax.f32 %v814_v23, %v1072_v59  ;;  %v1058_v34 = vmul.f32 0.01, %v976_v58  ;;  %v697_v16 = vadd.f32 %v1721_v3, %v696_v28  ;;  %v971_v17 = vadd.f32 %v1721_v3, %v970_v46 }
 0x106   :  { %v712_v20 = vadd.f32 %v1376_v60, %v1721_v3  ;;  %v1087_v21 = vmax.f32 %v813_v37, %v1071_v13  ;;  %v800_v22 = vsel %vm768_vm5, %v702_v0, %v784_v4  ;;  %v986_v27 = vadd.f32 %v1404_v25, %v1721_v3 }
 0x107   :  { %v1379_v31 = vpop.f32.mrb[22].mxu0  ;;  %1104 = vst [vmem:[%s1985_s3 + $0x8] sm:$0xff] %v1088_v56  ;;  %v1074_v26 = vsel %vm1042_vm6, %v976_v58, %v1058_v34  ;;  %v816_v28 = vmax.f32 %v542_v44, %v800_v22  ;;  %vm767_vm7 = vcmp.ge.f32.partialorder %v697_v16, 0.0  ;;  %v783_v46 = vmul.f32 0.01, %v697_v16 }
 0x108   :  { %v1407_v8 = vpop.f32.mrb[22].mxu1  ;;  %v716_v12 = vpop.f32.mrb[23].mxu0  ;;  %vm1041_vm8 = vcmp.ge.f32.partialorder %v971_v17, 0.0  ;;  %1103 = vst [vmem:[%s1985_s3] sm:$0xff] %v1087_v21  ;;  %v1057_v39 = vmul.f32 0.01, %v971_v17  ;;  %vm770_vm9 = vcmp.ge.f32.partialorder %v712_v20, 0.0  ;;  %v707_v25 = vadd.f32 %v1721_v3, %v706_v15 }
 0x109   :  { %v990_v23 = vpop.f32.mrb[23].mxu1  ;;  %v786_v55 = vmul.f32 0.01, %v712_v20  ;;  %vm1044_vm10 = vcmp.ge.f32.partialorder %v986_v27, 0.0  ;;  %v1090_v13 = vmax.f32 %v816_v28, %v1074_v26  ;;  %v799_v58 = vsel %vm767_vm7, %v697_v16, %v783_v46 }
 0x10a   :  { %v1060_v60 = vmul.f32 0.01, %v986_v27  ;;  %v815_v35 = vmax.f32 %v541_v49, %v799_v58  ;;  %v1073_v40 = vsel %vm1041_vm8, %v971_v17, %v1057_v39  ;;  %v981_v63 = vadd.f32 %v1721_v3, %v980_v51 }
 0x10b   :  { %v1382_v37 = vpop.f32.mrb[24].mxu0  ;;  %v802_v44 = vsel %vm770_vm9, %v712_v20, %v786_v55  ;;  %1106 = vst [vmem:[%s1985_s3 + $0x18] sm:$0xff] %v1090_v13  ;;  %vm769_vm11 = vcmp.ge.f32.partialorder %v707_v25, 0.0  ;;  %v785_v7 = vmul.f32 0.01, %v707_v25  ;;  %v722_v45 = vadd.f32 %v1379_v31, %v1721_v3 }
 0x10c   :  { %v1410_v50 = vpop.f32.mrb[24].mxu1  ;;  %v726_v0 = vpop.f32.mrb[25].mxu0  ;;  %v818_v15 = vmax.f32 %v544_v61, %v802_v44  ;;  %v1076_v1 = vsel %vm1044_vm10, %v986_v27, %v1060_v60  ;;  %v1089_v56 = vmax.f32 %v815_v35, %v1073_v40  ;;  %vm1043_vm12 = vcmp.ge.f32.partialorder %v981_v63, 0.0 }
 0x10d   :  { %v1000_v59 = vpop.f32.mrb[25].mxu1  ;;  %v1059_v41 = vmul.f32 0.01, %v981_v63  ;;  %v801_v34 = vsel %vm769_vm11, %v707_v25, %v785_v7  ;;  %v996_v16 = vadd.f32 %v1407_v8, %v1721_v3  ;;  %v717_v17 = vadd.f32 %v1721_v3, %v716_v12 }
 0x10e   :  { %v1092_v4 = vmax.f32 %v818_v15, %v1076_v1  ;;  %1105 = vst [vmem:[%s1985_s3 + $0x10] sm:$0xff] %v1089_v56  ;;  %v817_v53 = vmax.f32 %v543_v9, %v801_v34  ;;  %vm772_vm13 = vcmp.ge.f32.partialorder %v722_v45, 0.0  ;;  %v788_v61 = vmul.f32 0.01, %v722_v45 }
 0x10f   :  { %v1385_v49 = vpop.f32.mrb[26].mxu0  ;;  %v1075_v57 = vsel %vm1043_vm12, %v981_v63, %v1059_v41  ;;  %vm1046_vm14 = vcmp.ge.f32.partialorder %v996_v16, 0.0  ;;  %v1062_v31 = vmul.f32 0.01, %v996_v16  ;;  %vm771_vm15 = vcmp.ge.f32.partialorder %v717_v17, 0.0 }
 0x110   :  { %v1413_v51 = vpop.f32.mrb[26].mxu1  ;;  %v736_v20 = vpop.f32.mrb[27].mxu0  ;;  %1108 = vst [vmem:[%s1985_s3 + $0x28] sm:$0xff] %v1092_v4  ;;  %v787_v8 = vmul.f32 0.01, %v717_v17  ;;  %v1091_v12 = vmax.f32 %v817_v53, %v1075_v57  ;;  %v804_v22 = vsel %vm772_vm13, %v722_v45, %v788_v61  ;;  %v991_v26 = vadd.f32 %v1721_v3, %v990_v23 }
 0x111   :  { %v1010_v21 = vpop.f32.mrb[27].mxu1  ;;  %v732_v27 = vadd.f32 %v1382_v37, %v1721_v3  ;;  %v1986_v5 = vmax.f32 %v1775_v10, %v1777_v11  ;;  %v1078_v46 = vsel %vm1046_vm14, %v996_v16, %v1062_v31  ;;  %v1006_v55 = vadd.f32 %v1410_v50, %v1721_v3 }
 0x112   :  { %v803_v39 = vsel %vm771_vm15, %v717_v17, %v787_v8  ;;  %1107 = vst [vmem:[%s1985_s3 + $0x20] sm:$0xff] %v1091_v12  ;;  %v1987_v23 = vmax.f32 %v1781_v14, %v1785_v24  ;;  %vm1045_vm0 = vcmp.ge.f32.partialorder %v991_v26, 0.0  ;;  %v1061_v25 = vmul.f32 0.01, %v991_v26 }
 0x113   :  { %v1388_v28 = vpop.f32.mrb[28].mxu0  ;;  %v820_v9 = vmax.f32 %v1986_v5, %v804_v22  ;;  %vm774_vm1 = vcmp.ge.f32.partialorder %v732_v27, 0.0  ;;  %v790_v11 = vmul.f32 0.01, %v732_v27  ;;  %vm1048_vm2 = vcmp.ge.f32.partialorder %v1006_v55, 0.0 }
 0x114   :  { %v1416_v62 = vpop.f32.mrb[28].mxu1  ;;  %v746_v13 = vpop.f32.mrb[29].mxu0  ;;  %v819_v60 = vmax.f32 %v1987_v23, %v803_v39  ;;  %v1064_v37 = vmul.f32 0.01, %v1006_v55  ;;  %v1077_v35 = vsel %vm1045_vm0, %v991_v26, %v1061_v25  ;;  %v727_v50 = vadd.f32 %v1721_v3, %v726_v0 }
 0x115   :  { %v1905_v58 = vpop.f32.mrb[29].mxu1  ;;  %v1094_v10 = vmax.f32 %v820_v9, %v1078_v46  ;;  %v1001_v40 = vadd.f32 %v1721_v3, %v1000_v59  ;;  %v742_v44 = vadd.f32 %v1385_v49, %v1721_v3  ;;  %v806_v24 = vsel %vm774_vm1, %v732_v27, %v790_v11 }
 0x116   :  { %v1093_v14 = vmax.f32 %v819_v60, %v1077_v35  ;;  %v1080_v1 = vsel %vm1048_vm2, %v1006_v55, %v1064_v37  ;;  %v1016_v7 = vadd.f32 %v1413_v51, %v1721_v3  ;;  %v1988_v0 = vmax.f32 %v1792_v36, %v1794_v42 }
 0x117   :  { %v1391_v63 = vpop.f32.mrb[30].mxu0  ;;  %1110 = vst [vmem:[%s1985_s3 + $0x38] sm:$0xff] %v1094_v10  ;;  %vm773_vm3 = vcmp.ge.f32.partialorder %v727_v50, 0.0  ;;  %v789_v59 = vmul.f32 0.01, %v727_v50  ;;  %vm1047_vm4 = vcmp.ge.f32.partialorder %v1001_v40, 0.0  ;;  %v737_v17 = vadd.f32 %v1721_v3, %v736_v20 }
 0x118   :  { %v1419_v15 = vpop.f32.mrb[30].mxu1  ;;  %v756_v56 = vpop.f32.mrb[31].mxu0  ;;  %v822_v45 = vmax.f32 %v1988_v0, %v806_v24  ;;  %1109 = vst [vmem:[%s1985_s3 + $0x30] sm:$0xff] %v1093_v14  ;;  %v1063_v49 = vmul.f32 0.01, %v1001_v40  ;;  %vm776_vm5 = vcmp.ge.f32.partialorder %v742_v44, 0.0  ;;  %v1989_v36 = vmax.f32 %v1796_v43, %v1802_v52 }
 0x119   :  { %v1030_v41 = vpop.f32.mrb[31].mxu1  ;;  %v792_v4 = vmul.f32 0.01, %v742_v44  ;;  %vm1050_vm6 = vcmp.ge.f32.partialorder %v1016_v7, 0.0  ;;  %v805_v16 = vsel %vm773_vm3, %v727_v50, %v789_v59  ;;  %v1066_v51 = vmul.f32 0.01, %v1016_v7 }
 0x11a   :  { %v1096_v34 = vmax.f32 %v822_v45, %v1080_v1  ;;  %v821_v42 = vmax.f32 %v1989_v36, %v805_v16  ;;  %v1079_v53 = vsel %vm1047_vm4, %v1001_v40, %v1063_v49  ;;  %v1011_v61 = vadd.f32 %v1721_v3, %v1010_v21 }
 0x11b   :  { %v808_v57 = vsel %vm776_vm5, %v742_v44, %v792_v4  ;;  %v1990_v31 = vmax.f32 %v1804_v54, %v1810_v2  ;;  %v1082_v12 = vsel %vm1050_vm6, %v1016_v7, %v1066_v51  ;;  %vm775_vm7 = vcmp.ge.f32.partialorder %v737_v17, 0.0 }
 0x11c   :  { %1112 = vst [vmem:[%s1985_s3 + $0x48] sm:$0xff] %v1096_v34  ;;  %v791_v22 = vmul.f32 0.01, %v737_v17  ;;  %v1095_v20 = vmax.f32 %v821_v42, %v1079_v53  ;;  %vm1049_vm8 = vcmp.ge.f32.partialorder %v1011_v61, 0.0  ;;  %v1065_v26 = vmul.f32 0.01, %v1011_v61 }
 0x11d   :  { %v824_v8 = vmax.f32 %v1990_v31, %v808_v57  ;;  %v752_v43 = vadd.f32 %v1388_v28, %v1721_v3  ;;  %v1026_v21 = vadd.f32 %v1416_v62, %v1721_v3  ;;  %v747_v5 = vadd.f32 %v1721_v3, %v746_v13 }
 0x11e   :  { %v807_v27 = vsel %vm775_vm7, %v737_v17, %v791_v22  ;;  %1111 = vst [vmem:[%s1985_s3 + $0x40] sm:$0xff] %v1095_v20  ;;  %v1991_v54 = vmax.f32 %v1817_v18, %v1819_v19  ;;  %v1081_v9 = vsel %vm1049_vm8, %v1011_v61, %v1065_v26  ;;  %v1021_v13 = vadd.f32 %v1721_v3, %v1905_v58 }
 0x11f   :  { %v1098_v52 = vmax.f32 %v824_v8, %v1082_v12  ;;  %vm778_vm9 = vcmp.ge.f32.partialorder %v752_v43, 0.0  ;;  %v794_v46 = vmul.f32 0.01, %v752_v43  ;;  %vm1052_vm10 = vcmp.ge.f32.partialorder %v1026_v21, 0.0 }
 0x120   :  { %v823_v2 = vmax.f32 %v1991_v54, %v807_v27  ;;  %v1068_v28 = vmul.f32 0.01, %v1026_v21  ;;  %vm777_vm11 = vcmp.ge.f32.partialorder %v747_v5, 0.0  ;;  %v793_v62 = vmul.f32 0.01, %v747_v5 }
 0x121   :  { %1114 = vst [vmem:[%s1985_s3 + $0x58] sm:$0xff] %v1098_v52  ;;  %v810_v55 = vsel %vm778_vm9, %v752_v43, %v794_v46  ;;  %v762_v23 = vadd.f32 %v1391_v63, %v1721_v3  ;;  %v1992_v18 = vmax.f32 %v1823_v32, %v1825_v33  ;;  %v1036_v10 = vadd.f32 %v1419_v15, %v1721_v3 }
 0x122   :  { %v1097_v39 = vmax.f32 %v823_v2, %v1081_v9  ;;  %v1084_v60 = vsel %vm1052_vm10, %v1026_v21, %v1068_v28  ;;  %v809_v25 = vsel %vm777_vm11, %v747_v5, %v793_v62  ;;  %v1993_v11 = vmax.f32 %v1831_v47, %v1833_v48 }
 0x123   :  { %v826_v19 = vmax.f32 %v1992_v18, %v810_v55  ;;  %vm1051_vm12 = vcmp.ge.f32.partialorder %v1021_v13, 0.0  ;;  %v1067_v58 = vmul.f32 0.01, %v1021_v13  ;;  %vm780_vm13 = vcmp.ge.f32.partialorder %v762_v23, 0.0 }
 0x124   :  { %1113 = vst [vmem:[%s1985_s3 + $0x50] sm:$0xff] %v1097_v39  ;;  %v825_v37 = vmax.f32 %v1993_v11, %v809_v25  ;;  %v796_v50 = vmul.f32 0.01, %v762_v23  ;;  %v1070_v40 = vmul.f32 0.01, %v1036_v10  ;;  %vm1054_vm14 = vcmp.ge.f32.partialorder %v1036_v10, 0.0 }
 0x125   :  { %v1100_v35 = vmax.f32 %v826_v19, %v1084_v60  ;;  %v1083_v32 = vsel %vm1051_vm12, %v1021_v13, %v1067_v58  ;;  %v757_v33 = vadd.f32 %v1721_v3, %v756_v56  ;;  %v1031_v44 = vadd.f32 %v1721_v3, %v1030_v41 }
 0x126   :  { %v1099_v63 = vmax.f32 %v825_v37, %v1083_v32  ;;  %v812_v15 = vsel %vm780_vm13, %v762_v23, %v796_v50  ;;  %v1994_v47 = vmax.f32 %v1839_v6, %v1844_v29  ;;  %v1086_v24 = vsel %vm1054_vm14, %v1036_v10, %v1070_v40 }
 0x127   :  { %1116 = vst [vmem:[%s1985_s3 + $0x68] sm:$0xff] %v1100_v35  ;;  %vm779_vm15 = vcmp.ge.f32.partialorder %v757_v33, 0.0  ;;  %v795_v14 = vmul.f32 0.01, %v757_v33  ;;  %vm1053_vm0 = vcmp.ge.f32.partialorder %v1031_v44, 0.0  ;;  %v1995_v56 = vmax.f32 %v1846_v30, %v1850_v38 }
 0x128   :  { %v828_v48 = vmax.f32 %v1994_v47, %v812_v15  ;;  %1115 = vst [vmem:[%s1985_s3 + $0x60] sm:$0xff] %v1099_v63  ;;  %v1069_v1 = vmul.f32 0.01, %v1031_v44 }
 0x129   :  { %v811_v7 = vsel %vm779_vm15, %v757_v33, %v795_v14 }
 0x12a   :  { %v1102_v3 = vmax.f32 %v828_v48, %v1086_v24  ;;  %v827_v41 = vmax.f32 %v1995_v56, %v811_v7  ;;  %v1085_v6 = vsel %vm1053_vm0, %v1031_v44, %v1069_v1 }
 0x12c   :  { %1118 = vst [vmem:[%s1985_s3 + $0x78] sm:$0xff] %v1102_v3  ;;  %v1101_v29 = vmax.f32 %v827_v41, %v1085_v6 }
 0x12e   :  { %1117 = vst [vmem:[%s1985_s3 + $0x70] sm:$0xff] %v1101_v29 }

// kernel: pose_model_forward.4
= control target key start
LH: loop header
LB: loop body
LE: loop exit
PB: predicated region body
PF: predicated region fallthrough
CT: control target
= control target key end

     0   :  { %v759_v0 = vmov 0.0|0.0   ;;  %vm760_vm0 = vmmov 0   ;;  %v761_v6 = vmov 0.0   ;;  %vm37_vm1 = vcmask 850944   ;;  %s947_s1 = inlined_call_operand.vmem [shape: f32[104,128], index: 1, kind: input, shape index: {}]   ;;  %s948_s0 = inlined_call_operand.vmem [shape: f32[4,24,104], index: 0, kind: input, shape index: {}]   ;;  %s949_s2 = inlined_call_operand.vmem [shape: f32[1,128], index: 2, kind: input, shape index: {}]   ;;  %s950_s3 = inlined_call_operand.vmem [shape: f32[24,128], index: 3, kind: output, shape index: {}]  }
   0x1   :  { %684 = vmatprep.subr.bf16.mxu0 %v759_v0  ;;  %702 = vmatprep.subr.bf16.mxu1 %v759_v0  ;;  %v14_v1 = vld [vmem:[%s947_s1] sm:$0xff]  ;;  %v15_v2 = vld [vmem:[%s947_s1 + $0x8] sm:$0xff]  ;;  %v16_v3 = vld [vmem:[%s947_s1 + $0x10] sm:$0xff] }
   0x2   :  { %v685_v4 = vpack.c.bf16 %v15_v2, %v14_v1  ;;  %v17_v5 = vld [vmem:[%s947_s1 + $0x18] sm:$0xff]  ;;  %570 = vmatprep.mubr.msk.f32.mxu0 %vm760_vm0, %v761_v6  ;;  %605 = vmatprep.mubr.msk.f32.mxu1 %vm760_vm0, %v761_v6  ;;  %v18_v8 = vld [vmem:[%s947_s1 + $0x20] sm:$0xff]  ;;  %v19_v9 = vld [vmem:[%s947_s1 + $0x28] sm:$0xff] }
   0x3   :  { %v688_v7 = vpack.c.bf16 %v17_v5, %v16_v3  ;;  %v691_v10 = vpack.c.bf16 %v19_v9, %v18_v8  ;;  %v20_v11 = vld [vmem:[%s947_s1 + $0x30] sm:$0xff]  ;;  %v21_v12 = vld [vmem:[%s947_s1 + $0x38] sm:$0xff]  ;;  %v22_v14 = vld [vmem:[%s947_s1 + $0x40] sm:$0xff] }
   0x4   :  { %686 = vmatpush3.bf16.msra.mxu0 %v685_v4  ;;  %704 = vmatpush3.bf16.msra.mxu1 %v685_v4  ;;  %v694_v13 = vpack.c.bf16 %v21_v12, %v20_v11  ;;  %v23_v15 = vld [vmem:[%s947_s1 + $0x48] sm:$0xff]  ;;  %v24_v17 = vld [vmem:[%s947_s1 + $0x50] sm:$0xff]  ;;  %v25_v18 = vld [vmem:[%s947_s1 + $0x58] sm:$0xff] }
   0x5   :  { %687 = vmatprep.subr.bf16.mxu0 %v759_v0  ;;  %705 = vmatprep.subr.bf16.mxu1 %v759_v0  ;;  %v697_v16 = vpack.c.bf16 %v23_v15, %v22_v14  ;;  %v700_v19 = vpack.c.bf16 %v25_v18, %v24_v17  ;;  %v26_v20 = vld [vmem:[%s947_s1 + $0x60] sm:$0xff]  ;;  %v462_v22 = vld [vmem:[%s948_s0 + $0x18] sm:$0xff]  ;;  %v29_v23 = vld [vmem:[%s948_s0 + $0x8] sm:$0xff] }
   0x6   :  { %v28_v21 = vld [vmem:[%s948_s0] sm:$0xff]  ;;  %v30_v25 = vld [vmem:[%s948_s0 + $0x10] sm:$0xff]  ;;  %v464_v26 = vld [vmem:[%s948_s0 + $0x28] sm:$0xff] }
   0x7   :  { %v463_v24 = vld [vmem:[%s948_s0 + $0x20] sm:$0xff]  ;;  %v468_v27 = vld [vmem:[%s948_s0 + $0x30] sm:$0xff]  ;;  %v474_v28 = vld [vmem:[%s948_s0 + $0x48] sm:$0xff] }
   0x8   :  { %689 = vmatpush3.bf16.msra.mxu0 %v688_v7  ;;  %707 = vmatpush3.bf16.msra.mxu1 %v688_v7  ;;  %v469_v29 = vld [vmem:[%s948_s0 + $0x38] sm:$0xff]  ;;  %v475_v30 = vld [vmem:[%s948_s0 + $0x50] sm:$0xff]  ;;  %v470_v31 = vld [vmem:[%s948_s0 + $0x40] sm:$0xff] }
   0x9   :  { %690 = vmatprep.subr.bf16.mxu0 %v759_v0  ;;  %708 = vmatprep.subr.bf16.mxu1 %v759_v0  ;;  %v476_v32 = vld [vmem:[%s948_s0 + $0x58] sm:$0xff]  ;;  %v924_v33 = vld [vmem:[%s949_s2] ss:$0 sm:$0xff] }
   0xc   :  { %692 = vmatpush3.bf16.msra.mxu0 %v691_v10  ;;  %710 = vmatpush3.bf16.msra.mxu1 %v691_v10 }
   0xd   :  { %693 = vmatprep.subr.bf16.mxu0 %v759_v0  ;;  %711 = vmatprep.subr.bf16.mxu1 %v759_v0 }
  0x10   :  { %695 = vmatpush3.bf16.msra.mxu0 %v694_v13  ;;  %713 = vmatpush3.bf16.msra.mxu1 %v694_v13 }
  0x11   :  { %696 = vmatprep.subr.bf16.mxu0 %v759_v0  ;;  %714 = vmatprep.subr.bf16.mxu1 %v759_v0 }
  0x14   :  { %698 = vmatpush3.bf16.msra.mxu0 %v697_v16  ;;  %716 = vmatpush3.bf16.msra.mxu1 %v697_v16 }
  0x15   :  { %699 = vmatprep.subr.bf16.mxu0 %v759_v0  ;;  %717 = vmatprep.subr.bf16.mxu1 %v759_v0 }
  0x18   :  { %701 = vmatpush3.bf16.msra.mxu0 %v700_v19  ;;  %719 = vmatpush3.bf16.msra.mxu1 %v700_v19 }
  0x19   :  { %568 = vmatprep.subr.mxu0 %v761_v6  ;;  %603 = vmatprep.subr.mxu1 %v761_v6 }
  0x1c   :  { %569 = vmatpush3.msra.mxu0 %v26_v20  ;;  %604 = vmatpush3.msra.mxu1 %v26_v20 }
  0x1d   :  { %571 = vmatmul.mubr.msk.f32.vlgmr.msra.gmra.mrb[0].mxu0 %vm37_vm1, %v28_v21  ;;  %606 = vmatmul.mubr.msk.f32.vlgmr.msra.gmra.mrb[0].mxu1 %vm37_vm1, %v462_v22 }
  0x1e   :  { %720 = vmatprep.subr.bf16.mxu0 %v759_v0  ;;  %738 = vmatprep.subr.bf16.mxu1 %v759_v0 }
  0x1f   :  { %722 = vmatpush3.bf16.msra.mxu0 %v685_v4  ;;  %740 = vmatpush3.bf16.msra.mxu1 %v685_v4 }
  0x20   :  { %723 = vmatprep.subr.bf16.mxu0 %v759_v0  ;;  %741 = vmatprep.subr.bf16.mxu1 %v759_v0 }
  0x21   :  { %573 = vmatprep.mubr.msk.f32.mxu0 %vm760_vm0, %v761_v6  ;;  %608 = vmatprep.mubr.msk.f32.mxu1 %vm760_vm0, %v761_v6 }
  0x22   :  { %574 = vmatmul.mubr.msk.f32.gmra.mrb[2].mxu0 %vm37_vm1, %v29_v23  ;;  %609 = vmatmul.mubr.msk.f32.gmra.mrb[2].mxu1 %vm37_vm1, %v463_v24 }
  0x23   :  { %725 = vmatpush3.bf16.msra.mxu0 %v688_v7  ;;  %743 = vmatpush3.bf16.msra.mxu1 %v688_v7 }
  0x24   :  { %726 = vmatprep.subr.bf16.mxu0 %v759_v0  ;;  %744 = vmatprep.subr.bf16.mxu1 %v759_v0 }
  0x25   :  { %576 = vmatprep.mubr.msk.f32.mxu0 %vm760_vm0, %v761_v6  ;;  %611 = vmatprep.mubr.msk.f32.mxu1 %vm760_vm0, %v761_v6 }
  0x26   :  { %577 = vmatmul.mubr.msk.f32.gmra.mrb[4].mxu0 %vm37_vm1, %v30_v25  ;;  %612 = vmatmul.mubr.msk.f32.gmra.mrb[4].mxu1 %vm37_vm1, %v464_v26 }
  0x27   :  { %728 = vmatpush3.bf16.msra.mxu0 %v691_v10  ;;  %746 = vmatpush3.bf16.msra.mxu1 %v691_v10 }
  0x28   :  { %729 = vmatprep.subr.bf16.mxu0 %v759_v0  ;;  %747 = vmatprep.subr.bf16.mxu1 %v759_v0 }
  0x29   :  { %640 = vmatprep.mubr.msk.f32.mxu0 %vm760_vm0, %v761_v6  ;;  %675 = vmatprep.mubr.msk.f32.mxu1 %vm760_vm0, %v761_v6 }
  0x2b   :  { %731 = vmatpush3.bf16.msra.mxu0 %v694_v13  ;;  %749 = vmatpush3.bf16.msra.mxu1 %v694_v13 }
  0x2c   :  { %732 = vmatprep.subr.bf16.mxu0 %v759_v0  ;;  %750 = vmatprep.subr.bf16.mxu1 %v759_v0 }
  0x2f   :  { %734 = vmatpush3.bf16.msra.mxu0 %v697_v16  ;;  %752 = vmatpush3.bf16.msra.mxu1 %v697_v16 }
  0x30   :  { %735 = vmatprep.subr.bf16.mxu0 %v759_v0  ;;  %753 = vmatprep.subr.bf16.mxu1 %v759_v0 }
  0x33   :  { %737 = vmatpush3.bf16.msra.mxu0 %v700_v19  ;;  %755 = vmatpush3.bf16.msra.mxu1 %v700_v19 }
  0x34   :  { %638 = vmatprep.subr.mxu0 %v761_v6  ;;  %673 = vmatprep.subr.mxu1 %v761_v6 }
  0x37   :  { %639 = vmatpush3.msra.mxu0 %v26_v20  ;;  %674 = vmatpush3.msra.mxu1 %v26_v20 }
  0x38   :  { %641 = vmatmul.mubr.msk.f32.vlgmr.msra.gmra.mrb[6].mxu0 %vm37_vm1, %v468_v27  ;;  %676 = vmatmul.mubr.msk.f32.vlgmr.msra.gmra.mrb[6].mxu1 %vm37_vm1, %v474_v28 }
  0x39   :  { %643 = vmatprep.mubr.msk.f32.mxu0 %vm760_vm0, %v761_v6  ;;  %678 = vmatprep.mubr.msk.f32.mxu1 %vm760_vm0, %v761_v6 }
  0x3c   :  { %644 = vmatmul.mubr.msk.f32.gmra.mrb[8].mxu0 %vm37_vm1, %v469_v29  ;;  %679 = vmatmul.mubr.msk.f32.gmra.mrb[8].mxu1 %vm37_vm1, %v475_v30 }
  0x3d   :  { %646 = vmatprep.mubr.msk.f32.mxu0 %vm760_vm0, %v761_v6  ;;  %681 = vmatprep.mubr.msk.f32.mxu1 %vm760_vm0, %v761_v6 }
  0x40   :  { %647 = vmatmul.mubr.msk.f32.gmra.mrb[10].mxu0 %vm37_vm1, %v470_v31  ;;  %682 = vmatmul.mubr.msk.f32.gmra.mrb[10].mxu1 %vm37_vm1, %v476_v32 }
  0xf0   :  { %v113_v34 = vpop.f32.mrb[0].mxu0  ;;  %v215_v35 = vpop.f32.mrb[0].mxu1 }
  0xf1   :  { %v114_v36 = vadd.f32 %v924_v33, %v113_v34  ;;  %v216_v37 = vadd.f32 %v924_v33, %v215_v35  ;;  %v572_v38 = vpop.f32.mrb[1].mxu0  ;;  %v607_v39 = vpop.f32.mrb[1].mxu1 }
  0xf3   :  { %vm127_vm2 = vcmp.ge.f32.partialorder %v114_v36, 0.0  ;;  %v130_v40 = vmul.f32 0.01, %v114_v36  ;;  %vm229_vm3 = vcmp.ge.f32.partialorder %v216_v37, 0.0  ;;  %v232_v41 = vmul.f32 0.01, %v216_v37 }
  0xf5   :  { %v133_v42 = vsel %vm127_vm2, %v114_v36, %v130_v40  ;;  %v235_v43 = vsel %vm229_vm3, %v216_v37, %v232_v41  ;;  %v118_v44 = vpop.f32.mrb[2].mxu0  ;;  %v220_v45 = vpop.f32.mrb[2].mxu1 }
  0xf6   :  { %v238_v46 = vmax.f32 %v133_v42, %v235_v43  ;;  %v119_v47 = vadd.f32 %v924_v33, %v118_v44  ;;  %v221_v48 = vadd.f32 %v924_v33, %v220_v45  ;;  %v575_v49 = vpop.f32.mrb[3].mxu0  ;;  %v610_v50 = vpop.f32.mrb[3].mxu1 }
  0xf8   :  { %vm128_vm4 = vcmp.ge.f32.partialorder %v119_v47, 0.0  ;;  %v131_v51 = vmul.f32 0.01, %v119_v47  ;;  %vm230_vm5 = vcmp.ge.f32.partialorder %v221_v48, 0.0  ;;  %v233_v52 = vmul.f32 0.01, %v221_v48 }
  0xf9   :  { %v123_v53 = vpop.f32.mrb[4].mxu0  ;;  %v225_v54 = vpop.f32.mrb[4].mxu1 }
  0xfa   :  { %v134_v55 = vsel %vm128_vm4, %v119_v47, %v131_v51  ;;  %v236_v56 = vsel %vm230_vm5, %v221_v48, %v233_v52  ;;  %v124_v57 = vadd.f32 %v924_v33, %v123_v53  ;;  %v226_v58 = vadd.f32 %v924_v33, %v225_v54  ;;  %v578_v59 = vpop.f32.mrb[5].mxu0  ;;  %v613_v60 = vpop.f32.mrb[5].mxu1 }
  0xfb   :  { %v239_v61 = vmax.f32 %v134_v55, %v236_v56 }
  0xfc   :  { %vm129_vm6 = vcmp.ge.f32.partialorder %v124_v57, 0.0  ;;  %v132_v62 = vmul.f32 0.01, %v124_v57  ;;  %vm231_vm7 = vcmp.ge.f32.partialorder %v226_v58, 0.0  ;;  %v234_v63 = vmul.f32 0.01, %v226_v58 }
  0xfe   :  { %v135_v0 = vsel %vm129_vm6, %v124_v57, %v132_v62  ;;  %v237_v1 = vsel %vm231_vm7, %v226_v58, %v234_v63 }
  0xff   :  { %v240_v2 = vmax.f32 %v135_v0, %v237_v1 }
 0x10b   :  { %v320_v3 = vpop.f32.mrb[6].mxu0  ;;  %v425_v4 = vpop.f32.mrb[6].mxu1 }
 0x10c   :  { %v321_v5 = vadd.f32 %v924_v33, %v320_v3  ;;  %v426_v6 = vadd.f32 %v924_v33, %v425_v4  ;;  %v642_v7 = vpop.f32.mrb[7].mxu0  ;;  %v677_v8 = vpop.f32.mrb[7].mxu1 }
 0x10e   :  { %vm334_vm8 = vcmp.ge.f32.partialorder %v321_v5, 0.0  ;;  %v337_v9 = vmul.f32 0.01, %v321_v5  ;;  %v442_v10 = vmul.f32 0.01, %v426_v6  ;;  %vm439_vm9 = vcmp.ge.f32.partialorder %v426_v6, 0.0 }
 0x10f   :  { %v325_v11 = vpop.f32.mrb[8].mxu0  ;;  %v430_v12 = vpop.f32.mrb[8].mxu1 }
 0x110   :  { %v340_v13 = vsel %vm334_vm8, %v321_v5, %v337_v9  ;;  %v326_v14 = vadd.f32 %v924_v33, %v325_v11  ;;  %v431_v15 = vadd.f32 %v924_v33, %v430_v12  ;;  %v645_v16 = vpop.f32.mrb[9].mxu0  ;;  %v680_v17 = vpop.f32.mrb[9].mxu1  ;;  %v445_v19 = vsel %vm439_vm9, %v426_v6, %v442_v10 }
 0x111   :  { %v343_v18 = vmax.f32 %v238_v46, %v340_v13 }
 0x112   :  { %vm335_vm10 = vcmp.ge.f32.partialorder %v326_v14, 0.0  ;;  %v338_v20 = vmul.f32 0.01, %v326_v14  ;;  %v443_v21 = vmul.f32 0.01, %v431_v15  ;;  %vm440_vm11 = vcmp.ge.f32.partialorder %v431_v15, 0.0 }
 0x113   :  { %v448_v22 = vmax.f32 %v343_v18, %v445_v19  ;;  %v330_v23 = vpop.f32.mrb[10].mxu0  ;;  %v435_v24 = vpop.f32.mrb[10].mxu1 }
 0x114   :  { %v341_v25 = vsel %vm335_vm10, %v326_v14, %v338_v20  ;;  %v331_v26 = vadd.f32 %v924_v33, %v330_v23  ;;  %v436_v27 = vadd.f32 %v924_v33, %v435_v24  ;;  %v648_v28 = vpop.f32.mrb[11].mxu0  ;;  %v683_v29 = vpop.f32.mrb[11].mxu1  ;;  %v446_v31 = vsel %vm440_vm11, %v431_v15, %v443_v21 }
 0x115   :  { %451 = vst [vmem:[%s950_s3] sm:$0xff] %v448_v22  ;;  %v344_v30 = vmax.f32 %v239_v61, %v341_v25 }
 0x116   :  { %vm336_vm12 = vcmp.ge.f32.partialorder %v331_v26, 0.0  ;;  %v339_v32 = vmul.f32 0.01, %v331_v26  ;;  %v444_v34 = vmul.f32 0.01, %v436_v27  ;;  %vm441_vm13 = vcmp.ge.f32.partialorder %v436_v27, 0.0 }
 0x117   :  { %v449_v35 = vmax.f32 %v344_v30, %v446_v31 }
 0x118   :  { %v342_v36 = vsel %vm336_vm12, %v331_v26, %v339_v32  ;;  %v447_v33 = vsel %vm441_vm13, %v436_v27, %v444_v34 }
 0x119   :  { %452 = vst [vmem:[%s950_s3 + $0x8] sm:$0xff] %v449_v35  ;;  %v345_v37 = vmax.f32 %v240_v2, %v342_v36 }
 0x11b   :  { %v450_v38 = vmax.f32 %v345_v37, %v447_v33 }
 0x11d   :  { %453 = vst [vmem:[%s950_s3 + $0x10] sm:$0xff] %v450_v38 }

// kernel: pose_model_forward.5
= control target key start
LH: loop header
LB: loop body
LE: loop exit
PB: predicated region body
PF: predicated region fallthrough
CT: control target
= control target key end

     0   :  { %s3017_s15 = smov 0   ;;  %s3019_s16 = smov 0   ;;  %s3743_s0 = inlined_call_operand.vmem [shape: bf16[8,304], index: 0, kind: input, shape index: {}]   ;;  %s3744_s1 = inlined_call_operand.vmem [shape: bf16[304,2048], index: 1, kind: input, shape index: {}]   ;;  %s3745_s2 = inlined_call_operand.vmem [shape: f32[1,2048], index: 2, kind: input, shape index: {}]   ;;  %s3746_s3 = inlined_call_operand.vmem [shape: f32[2048,128], index: 3, kind: input, shape index: {}]   ;;  %s3747_s4 = inlined_call_operand.vmem [shape: f32[8,256], index: 4, kind: output, shape index: {}]  }
   0x1   :  { %s3021_s17 = smov 0   ;;  %s3023_s18 = smov 0  }
   0x2   :  { %s3025_s19 = smov 0  }
   0x3 LB: > { %s26_s20 = sadd.s32 1, %s2985_s18  ;;  %p68_p1 = scmp.ne.s32.totalorder %s2977_s16, %s2973_s15  ;;  %s2989_s19 = sphi %s3025_s19, %s14_s19   ;;  %s2985_s18 = sphi %s3023_s18, %s3751_s18   ;;  %s2981_s17 = sphi %s3021_s17, %s3750_s17   ;;  %s2977_s16 = sphi %s3019_s16, %s3749_s16   ;;  %s2973_s15 = sphi %s3017_s15, %s3748_s15  }
   0x4   : > { %p28_p0 = scmp.ge.s32.totalorder %s26_s20, 2  ;;  %p69_p2 = scmp.eq.s32.totalorder %s2989_s19, 0 }
   0x5   : > { %s61_s22 = sadd.s32 1, %s2977_s16  ;;  %p2443_p5 = scmp.ge.s32.totalorder %s2989_s19, 2 }
   0x6   : > { %s3753_s20 = smov (%p28_p0, %s26_s20), 0  ;;  %p70_p3 = por %p69_p2, %p68_p1 }
   0x7   : > { %s57_s21 = ssub.s32 %s2985_s18, %s3753_s20  ;;  %181 = sbr.rel (%p2443_p5) target bundleno = 95 (0x5f), region = 20 }
   0x8   : > { %p59_p4 = scmp.eq.s32.totalorder %s57_s21, 0 }
   0xa   : > { %s3052_s23 = scalar_select %p59_p4, %s2977_s16, %s61_s22  }
   0xe   : > { %184 = sbr.rel (!%p70_p3) target bundleno = 95 (0x5f), region = 24  ;;  %s186_s24 = sand.u32 (%p70_p3), 1, %s2977_s16  }
   0xf   : > { %s2612_s25 = sshll.u32 (%p70_p3), %s2985_s18, 5  ;;  %s2905_s26 = smul.u32 (%p70_p3), 1216, %s186_s24 }
  0x10   : > { %s3060_s29 = scalar_lea.vmem (%p70_p3), %s3744_s1, %s2612_s25 }
  0x11   : > { %v207_v0 = vld [vmem:[%s3060_s29] sm:$0xff] (%p70_p3)  ;;  %v209_v1 = vld [vmem:[%s3060_s29 + $0x8] sm:$0xff] (%p70_p3)  ;;  %v211_v2 = vld [vmem:[%s3060_s29 + $0x10] sm:$0xff] (%p70_p3)  ;;  %s3068_s30 = scalar_lea.vmem (%p70_p3), [#allocation2], %s2905_s26 }
  0x12   : > { %v213_v3 = vld [vmem:[%s3060_s29 + $0x18] sm:$0xff] (%p70_p3)  ;;  %v215_v4 = vld [vmem:[%s3060_s29 + $0x40] sm:$0xff] (%p70_p3)  ;;  %v217_v5 = vld [vmem:[%s3060_s29 + $0x48] sm:$0xff] (%p70_p3)  ;;  %208 = vst [vmem:[%s3068_s30] sm:$0xff] (%p70_p3), %v207_v0 }
  0x13   : > { %210 = vst [vmem:[%s3068_s30 + $0x8] sm:$0xff] (%p70_p3), %v209_v1  ;;  %212 = vst [vmem:[%s3068_s30 + $0x10] sm:$0xff] (%p70_p3), %v211_v2  ;;  %v219_v6 = vld [vmem:[%s3060_s29 + $0x50] sm:$0xff] (%p70_p3)  ;;  %v221_v7 = vld [vmem:[%s3060_s29 + $0x58] sm:$0xff] (%p70_p3) }
  0x14   : > { %214 = vst [vmem:[%s3068_s30 + $0x18] sm:$0xff] (%p70_p3), %v213_v3  ;;  %216 = vst [vmem:[%s3068_s30 + $0x20] sm:$0xff] (%p70_p3), %v215_v4  ;;  %v223_v8 = vld [vmem:[%s3060_s29 + $0x80] sm:$0xff] (%p70_p3)  ;;  %v225_v9 = vld [vmem:[%s3060_s29 + $0x88] sm:$0xff] (%p70_p3) }
  0x15   : > { %218 = vst [vmem:[%s3068_s30 + $0x28] sm:$0xff] %v217_v5  ;;  %220 = vst [vmem:[%s3068_s30 + $0x30] sm:$0xff] %v219_v6  ;;  %v227_v10 = vld [vmem:[%s3060_s29 + $0x90] sm:$0xff]  ;;  %v229_v11 = vld [vmem:[%s3060_s29 + $0x98] sm:$0xff] }
  0x16   : > { %222 = vst [vmem:[%s3068_s30 + $0x38] sm:$0xff] %v221_v7  ;;  %224 = vst [vmem:[%s3068_s30 + $0x40] sm:$0xff] %v223_v8  ;;  %v231_v12 = vld [vmem:[%s3060_s29 + $0xc0] sm:$0xff]  ;;  %v233_v13 = vld [vmem:[%s3060_s29 + $0xc8] sm:$0xff] }
  0x17   : > { %226 = vst [vmem:[%s3068_s30 + $0x48] sm:$0xff] %v225_v9  ;;  %228 = vst [vmem:[%s3068_s30 + $0x50] sm:$0xff] %v227_v10  ;;  %v235_v14 = vld [vmem:[%s3060_s29 + $0xd0] sm:$0xff]  ;;  %v237_v15 = vld [vmem:[%s3060_s29 + $0xd8] sm:$0xff] }
  0x18   : > { %230 = vst [vmem:[%s3068_s30 + $0x58] sm:$0xff] %v229_v11  ;;  %232 = vst [vmem:[%s3068_s30 + $0x60] sm:$0xff] %v231_v12  ;;  %v239_v16 = vld [vmem:[%s3060_s29 + $0x100] sm:$0xff]  ;;  %v241_v17 = vld [vmem:[%s3060_s29 + $0x108] sm:$0xff] }
  0x19   : > { %234 = vst [vmem:[%s3068_s30 + $0x68] sm:$0xff] %v233_v13  ;;  %236 = vst [vmem:[%s3068_s30 + $0x70] sm:$0xff] %v235_v14  ;;  %v243_v18 = vld [vmem:[%s3060_s29 + $0x110] sm:$0xff]  ;;  %v245_v19 = vld [vmem:[%s3060_s29 + $0x118] sm:$0xff] }
  0x1a   : > { %238 = vst [vmem:[%s3068_s30 + $0x78] sm:$0xff] %v237_v15  ;;  %240 = vst [vmem:[%s3068_s30 + $0x80] sm:$0xff] %v239_v16  ;;  %v247_v20 = vld [vmem:[%s3060_s29 + $0x140] sm:$0xff]  ;;  %v249_v21 = vld [vmem:[%s3060_s29 + $0x148] sm:$0xff] }
  0x1b   : > { %242 = vst [vmem:[%s3068_s30 + $0x88] sm:$0xff] %v241_v17  ;;  %244 = vst [vmem:[%s3068_s30 + $0x90] sm:$0xff] %v243_v18  ;;  %v251_v22 = vld [vmem:[%s3060_s29 + $0x150] sm:$0xff]  ;;  %v253_v23 = vld [vmem:[%s3060_s29 + $0x158] sm:$0xff] }
  0x1c   : > { %246 = vst [vmem:[%s3068_s30 + $0x98] sm:$0xff] %v245_v19  ;;  %248 = vst [vmem:[%s3068_s30 + $0xa0] sm:$0xff] %v247_v20  ;;  %v255_v24 = vld [vmem:[%s3060_s29 + $0x180] sm:$0xff]  ;;  %v257_v25 = vld [vmem:[%s3060_s29 + $0x188] sm:$0xff] }
  0x1d   : > { %250 = vst [vmem:[%s3068_s30 + $0xa8] sm:$0xff] %v249_v21  ;;  %252 = vst [vmem:[%s3068_s30 + $0xb0] sm:$0xff] %v251_v22  ;;  %v259_v26 = vld [vmem:[%s3060_s29 + $0x190] sm:$0xff]  ;;  %v261_v27 = vld [vmem:[%s3060_s29 + $0x198] sm:$0xff] }
  0x1e   : > { %254 = vst [vmem:[%s3068_s30 + $0xb8] sm:$0xff] %v253_v23  ;;  %256 = vst [vmem:[%s3068_s30 + $0xc0] sm:$0xff] %v255_v24  ;;  %v263_v28 = vld [vmem:[%s3060_s29 + $0x1c0] sm:$0xff]  ;;  %v265_v29 = vld [vmem:[%s3060_s29 + $0x1c8] sm:$0xff] }
  0x1f   : > { %258 = vst [vmem:[%s3068_s30 + $0xc8] sm:$0xff] %v257_v25  ;;  %260 = vst [vmem:[%s3068_s30 + $0xd0] sm:$0xff] %v259_v26  ;;  %v267_v30 = vld [vmem:[%s3060_s29 + $0x1d0] sm:$0xff]  ;;  %v269_v31 = vld [vmem:[%s3060_s29 + $0x1d8] sm:$0xff] }
  0x20   : > { %262 = vst [vmem:[%s3068_s30 + $0xd8] sm:$0xff] %v261_v27  ;;  %264 = vst [vmem:[%s3068_s30 + $0xe0] sm:$0xff] %v263_v28  ;;  %v271_v32 = vld [vmem:[%s3060_s29 + $0x200] sm:$0xff]  ;;  %v273_v33 = vld [vmem:[%s3060_s29 + $0x208] sm:$0xff] }
  0x21   : > { %266 = vst [vmem:[%s3068_s30 + $0xe8] sm:$0xff] %v265_v29  ;;  %268 = vst [vmem:[%s3068_s30 + $0xf0] sm:$0xff] %v267_v30  ;;  %v275_v34 = vld [vmem:[%s3060_s29 + $0x210] sm:$0xff]  ;;  %v277_v35 = vld [vmem:[%s3060_s29 + $0x218] sm:$0xff] }
  0x22   : > { %270 = vst [vmem:[%s3068_s30 + $0xf8] sm:$0xff] %v269_v31  ;;  %272 = vst [vmem:[%s3068_s30 + $0x100] sm:$0xff] %v271_v32  ;;  %v279_v36 = vld [vmem:[%s3060_s29 + $0x240] sm:$0xff]  ;;  %v281_v37 = vld [vmem:[%s3060_s29 + $0x248] sm:$0xff] }
  0x23   : > { %274 = vst [vmem:[%s3068_s30 + $0x108] sm:$0xff] %v273_v33  ;;  %276 = vst [vmem:[%s3068_s30 + $0x110] sm:$0xff] %v275_v34  ;;  %v283_v38 = vld [vmem:[%s3060_s29 + $0x250] sm:$0xff]  ;;  %v285_v39 = vld [vmem:[%s3060_s29 + $0x258] sm:$0xff] }
  0x24   : > { %278 = vst [vmem:[%s3068_s30 + $0x118] sm:$0xff] %v277_v35  ;;  %280 = vst [vmem:[%s3068_s30 + $0x120] sm:$0xff] %v279_v36  ;;  %v287_v40 = vld [vmem:[%s3060_s29 + $0x280] sm:$0xff]  ;;  %v289_v41 = vld [vmem:[%s3060_s29 + $0x288] sm:$0xff] }
  0x25   : > { %282 = vst [vmem:[%s3068_s30 + $0x128] sm:$0xff] %v281_v37  ;;  %284 = vst [vmem:[%s3068_s30 + $0x130] sm:$0xff] %v283_v38  ;;  %v291_v42 = vld [vmem:[%s3060_s29 + $0x290] sm:$0xff]  ;;  %v293_v43 = vld [vmem:[%s3060_s29 + $0x298] sm:$0xff] }
  0x26   : > { %286 = vst [vmem:[%s3068_s30 + $0x138] sm:$0xff] %v285_v39  ;;  %288 = vst [vmem:[%s3068_s30 + $0x140] sm:$0xff] %v287_v40  ;;  %v295_v44 = vld [vmem:[%s3060_s29 + $0x2c0] sm:$0xff]  ;;  %v297_v45 = vld [vmem:[%s3060_s29 + $0x2c8] sm:$0xff] }
  0x27   : > { %290 = vst [vmem:[%s3068_s30 + $0x148] sm:$0xff] %v289_v41  ;;  %292 = vst [vmem:[%s3068_s30 + $0x150] sm:$0xff] %v291_v42  ;;  %v299_v46 = vld [vmem:[%s3060_s29 + $0x2d0] sm:$0xff]  ;;  %v301_v47 = vld [vmem:[%s3060_s29 + $0x2d8] sm:$0xff] }
  0x28   : > { %294 = vst [vmem:[%s3068_s30 + $0x158] sm:$0xff] %v293_v43  ;;  %296 = vst [vmem:[%s3068_s30 + $0x160] sm:$0xff] %v295_v44  ;;  %v303_v48 = vld [vmem:[%s3060_s29 + $0x300] sm:$0xff]  ;;  %v305_v49 = vld [vmem:[%s3060_s29 + $0x308] sm:$0xff] }
  0x29   : > { %298 = vst [vmem:[%s3068_s30 + $0x168] sm:$0xff] %v297_v45  ;;  %300 = vst [vmem:[%s3068_s30 + $0x170] sm:$0xff] %v299_v46  ;;  %v307_v50 = vld [vmem:[%s3060_s29 + $0x310] sm:$0xff]  ;;  %v309_v51 = vld [vmem:[%s3060_s29 + $0x318] sm:$0xff] }
  0x2a   : > { %302 = vst [vmem:[%s3068_s30 + $0x178] sm:$0xff] %v301_v47  ;;  %304 = vst [vmem:[%s3068_s30 + $0x180] sm:$0xff] %v303_v48  ;;  %v311_v52 = vld [vmem:[%s3060_s29 + $0x340] sm:$0xff]  ;;  %v313_v53 = vld [vmem:[%s3060_s29 + $0x348] sm:$0xff] }
  0x2b   : > { %306 = vst [vmem:[%s3068_s30 + $0x188] sm:$0xff] %v305_v49  ;;  %308 = vst [vmem:[%s3068_s30 + $0x190] sm:$0xff] %v307_v50  ;;  %v315_v54 = vld [vmem:[%s3060_s29 + $0x350] sm:$0xff]  ;;  %v317_v55 = vld [vmem:[%s3060_s29 + $0x358] sm:$0xff] }
  0x2c   : > { %310 = vst [vmem:[%s3068_s30 + $0x198] sm:$0xff] %v309_v51  ;;  %312 = vst [vmem:[%s3068_s30 + $0x1a0] sm:$0xff] %v311_v52  ;;  %v319_v56 = vld [vmem:[%s3060_s29 + $0x380] sm:$0xff]  ;;  %v321_v57 = vld [vmem:[%s3060_s29 + $0x388] sm:$0xff] }
  0x2d   : > { %314 = vst [vmem:[%s3068_s30 + $0x1a8] sm:$0xff] %v313_v53  ;;  %316 = vst [vmem:[%s3068_s30 + $0x1b0] sm:$0xff] %v315_v54  ;;  %v323_v58 = vld [vmem:[%s3060_s29 + $0x390] sm:$0xff]  ;;  %v325_v59 = vld [vmem:[%s3060_s29 + $0x398] sm:$0xff] }
  0x2e   : > { %318 = vst [vmem:[%s3068_s30 + $0x1b8] sm:$0xff] %v317_v55  ;;  %320 = vst [vmem:[%s3068_s30 + $0x1c0] sm:$0xff] %v319_v56  ;;  %v327_v60 = vld [vmem:[%s3060_s29 + $0x3c0] sm:$0xff]  ;;  %v329_v61 = vld [vmem:[%s3060_s29 + $0x3c8] sm:$0xff] }
  0x2f   : > { %322 = vst [vmem:[%s3068_s30 + $0x1c8] sm:$0xff] %v321_v57  ;;  %324 = vst [vmem:[%s3068_s30 + $0x1d0] sm:$0xff] %v323_v58  ;;  %v331_v62 = vld [vmem:[%s3060_s29 + $0x3d0] sm:$0xff]  ;;  %v333_v63 = vld [vmem:[%s3060_s29 + $0x3d8] sm:$0xff] }
  0x30   : > { %326 = vst [vmem:[%s3068_s30 + $0x1d8] sm:$0xff] %v325_v59  ;;  %328 = vst [vmem:[%s3068_s30 + $0x1e0] sm:$0xff] %v327_v60  ;;  %v335_v0 = vld [vmem:[%s3060_s29 + $0x400] sm:$0xff]  ;;  %v337_v1 = vld [vmem:[%s3060_s29 + $0x408] sm:$0xff] }
  0x31   : > { %330 = vst [vmem:[%s3068_s30 + $0x1e8] sm:$0xff] %v329_v61  ;;  %332 = vst [vmem:[%s3068_s30 + $0x1f0] sm:$0xff] %v331_v62  ;;  %v339_v2 = vld [vmem:[%s3060_s29 + $0x410] sm:$0xff]  ;;  %v341_v3 = vld [vmem:[%s3060_s29 + $0x418] sm:$0xff] }
  0x32   : > { %334 = vst [vmem:[%s3068_s30 + $0x1f8] sm:$0xff] %v333_v63  ;;  %336 = vst [vmem:[%s3068_s30 + $0x200] sm:$0xff] %v335_v0  ;;  %v343_v4 = vld [vmem:[%s3060_s29 + $0x440] sm:$0xff]  ;;  %v345_v5 = vld [vmem:[%s3060_s29 + $0x448] sm:$0xff] }
  0x33   : > { %338 = vst [vmem:[%s3068_s30 + $0x208] sm:$0xff] %v337_v1  ;;  %340 = vst [vmem:[%s3068_s30 + $0x210] sm:$0xff] %v339_v2  ;;  %v347_v6 = vld [vmem:[%s3060_s29 + $0x450] sm:$0xff]  ;;  %v349_v7 = vld [vmem:[%s3060_s29 + $0x458] sm:$0xff] }
  0x34   : > { %342 = vst [vmem:[%s3068_s30 + $0x218] sm:$0xff] %v341_v3  ;;  %344 = vst [vmem:[%s3068_s30 + $0x220] sm:$0xff] %v343_v4  ;;  %v351_v8 = vld [vmem:[%s3060_s29 + $0x480] sm:$0xff]  ;;  %v353_v9 = vld [vmem:[%s3060_s29 + $0x488] sm:$0xff] }
  0x35   : > { %346 = vst [vmem:[%s3068_s30 + $0x228] sm:$0xff] %v345_v5  ;;  %348 = vst [vmem:[%s3068_s30 + $0x230] sm:$0xff] %v347_v6  ;;  %v355_v10 = vld [vmem:[%s3060_s29 + $0x490] sm:$0xff]  ;;  %v357_v11 = vld [vmem:[%s3060_s29 + $0x498] sm:$0xff] }
  0x36   : > { %350 = vst [vmem:[%s3068_s30 + $0x238] sm:$0xff] %v349_v7  ;;  %352 = vst [vmem:[%s3068_s30 + $0x240] sm:$0xff] %v351_v8  ;;  %v359_v12 = vld [vmem:[%s3060_s29 + $0x4c0] sm:$0xff]  ;;  %v361_v13 = vld [vmem:[%s3060_s29 + $0x4c8] sm:$0xff] }
  0x37   : > { %354 = vst [vmem:[%s3068_s30 + $0x248] sm:$0xff] %v353_v9  ;;  %356 = vst [vmem:[%s3068_s30 + $0x250] sm:$0xff] %v355_v10  ;;  %v363_v14 = vld [vmem:[%s3060_s29 + $0x4d0] sm:$0xff]  ;;  %v365_v15 = vld [vmem:[%s3060_s29 + $0x4d8] sm:$0xff] }
  0x38   : > { %358 = vst [vmem:[%s3068_s30 + $0x258] sm:$0xff] %v357_v11  ;;  %360 = vst [vmem:[%s3068_s30 + $0x260] sm:$0xff] %v359_v12  ;;  %v367_v16 = vld [vmem:[%s3060_s29 + $0x500] sm:$0xff]  ;;  %v369_v17 = vld [vmem:[%s3060_s29 + $0x508] sm:$0xff] }
  0x39   : > { %362 = vst [vmem:[%s3068_s30 + $0x268] sm:$0xff] %v361_v13  ;;  %364 = vst [vmem:[%s3068_s30 + $0x270] sm:$0xff] %v363_v14  ;;  %v371_v18 = vld [vmem:[%s3060_s29 + $0x510] sm:$0xff]  ;;  %v373_v19 = vld [vmem:[%s3060_s29 + $0x518] sm:$0xff] }
  0x3a   : > { %366 = vst [vmem:[%s3068_s30 + $0x278] sm:$0xff] %v365_v15  ;;  %368 = vst [vmem:[%s3068_s30 + $0x280] sm:$0xff] %v367_v16  ;;  %v375_v20 = vld [vmem:[%s3060_s29 + $0x540] sm:$0xff]  ;;  %v377_v21 = vld [vmem:[%s3060_s29 + $0x548] sm:$0xff] }
  0x3b   : > { %370 = vst [vmem:[%s3068_s30 + $0x288] sm:$0xff] %v369_v17  ;;  %372 = vst [vmem:[%s3068_s30 + $0x290] sm:$0xff] %v371_v18  ;;  %v379_v22 = vld [vmem:[%s3060_s29 + $0x550] sm:$0xff]  ;;  %v381_v23 = vld [vmem:[%s3060_s29 + $0x558] sm:$0xff] }
  0x3c   : > { %374 = vst [vmem:[%s3068_s30 + $0x298] sm:$0xff] %v373_v19  ;;  %376 = vst [vmem:[%s3068_s30 + $0x2a0] sm:$0xff] %v375_v20  ;;  %v383_v24 = vld [vmem:[%s3060_s29 + $0x580] sm:$0xff]  ;;  %v385_v25 = vld [vmem:[%s3060_s29 + $0x588] sm:$0xff] }
  0x3d   : > { %378 = vst [vmem:[%s3068_s30 + $0x2a8] sm:$0xff] %v377_v21  ;;  %380 = vst [vmem:[%s3068_s30 + $0x2b0] sm:$0xff] %v379_v22  ;;  %v387_v26 = vld [vmem:[%s3060_s29 + $0x590] sm:$0xff]  ;;  %v389_v27 = vld [vmem:[%s3060_s29 + $0x598] sm:$0xff] }
  0x3e   : > { %382 = vst [vmem:[%s3068_s30 + $0x2b8] sm:$0xff] %v381_v23  ;;  %384 = vst [vmem:[%s3068_s30 + $0x2c0] sm:$0xff] %v383_v24  ;;  %v391_v28 = vld [vmem:[%s3060_s29 + $0x5c0] sm:$0xff]  ;;  %v393_v29 = vld [vmem:[%s3060_s29 + $0x5c8] sm:$0xff] }
  0x3f   : > { %386 = vst [vmem:[%s3068_s30 + $0x2c8] sm:$0xff] %v385_v25  ;;  %388 = vst [vmem:[%s3068_s30 + $0x2d0] sm:$0xff] %v387_v26  ;;  %v395_v30 = vld [vmem:[%s3060_s29 + $0x5d0] sm:$0xff]  ;;  %v397_v31 = vld [vmem:[%s3060_s29 + $0x5d8] sm:$0xff] }
  0x40   : > { %390 = vst [vmem:[%s3068_s30 + $0x2d8] sm:$0xff] %v389_v27  ;;  %392 = vst [vmem:[%s3068_s30 + $0x2e0] sm:$0xff] %v391_v28  ;;  %v399_v32 = vld [vmem:[%s3060_s29 + $0x600] sm:$0xff]  ;;  %v401_v33 = vld [vmem:[%s3060_s29 + $0x608] sm:$0xff] }
  0x41   : > { %394 = vst [vmem:[%s3068_s30 + $0x2e8] sm:$0xff] %v393_v29  ;;  %396 = vst [vmem:[%s3068_s30 + $0x2f0] sm:$0xff] %v395_v30  ;;  %v403_v34 = vld [vmem:[%s3060_s29 + $0x610] sm:$0xff]  ;;  %v405_v35 = vld [vmem:[%s3060_s29 + $0x618] sm:$0xff] }
  0x42   : > { %398 = vst [vmem:[%s3068_s30 + $0x2f8] sm:$0xff] %v397_v31  ;;  %400 = vst [vmem:[%s3068_s30 + $0x300] sm:$0xff] %v399_v32  ;;  %v407_v36 = vld [vmem:[%s3060_s29 + $0x640] sm:$0xff]  ;;  %v409_v37 = vld [vmem:[%s3060_s29 + $0x648] sm:$0xff] }
  0x43   : > { %402 = vst [vmem:[%s3068_s30 + $0x308] sm:$0xff] %v401_v33  ;;  %404 = vst [vmem:[%s3068_s30 + $0x310] sm:$0xff] %v403_v34  ;;  %v411_v38 = vld [vmem:[%s3060_s29 + $0x650] sm:$0xff]  ;;  %v413_v39 = vld [vmem:[%s3060_s29 + $0x658] sm:$0xff] }
  0x44   : > { %406 = vst [vmem:[%s3068_s30 + $0x318] sm:$0xff] %v405_v35  ;;  %408 = vst [vmem:[%s3068_s30 + $0x320] sm:$0xff] %v407_v36  ;;  %v415_v40 = vld [vmem:[%s3060_s29 + $0x680] sm:$0xff]  ;;  %v417_v41 = vld [vmem:[%s3060_s29 + $0x688] sm:$0xff] }
  0x45   : > { %410 = vst [vmem:[%s3068_s30 + $0x328] sm:$0xff] %v409_v37  ;;  %412 = vst [vmem:[%s3068_s30 + $0x330] sm:$0xff] %v411_v38  ;;  %v419_v42 = vld [vmem:[%s3060_s29 + $0x690] sm:$0xff]  ;;  %v421_v43 = vld [vmem:[%s3060_s29 + $0x698] sm:$0xff] }
  0x46   : > { %414 = vst [vmem:[%s3068_s30 + $0x338] sm:$0xff] %v413_v39  ;;  %416 = vst [vmem:[%s3068_s30 + $0x340] sm:$0xff] %v415_v40  ;;  %v423_v44 = vld [vmem:[%s3060_s29 + $0x6c0] sm:$0xff]  ;;  %v425_v45 = vld [vmem:[%s3060_s29 + $0x6c8] sm:$0xff] }
  0x47   : > { %418 = vst [vmem:[%s3068_s30 + $0x348] sm:$0xff] %v417_v41  ;;  %420 = vst [vmem:[%s3068_s30 + $0x350] sm:$0xff] %v419_v42  ;;  %v427_v46 = vld [vmem:[%s3060_s29 + $0x6d0] sm:$0xff]  ;;  %v429_v47 = vld [vmem:[%s3060_s29 + $0x6d8] sm:$0xff] }
  0x48   : > { %422 = vst [vmem:[%s3068_s30 + $0x358] sm:$0xff] %v421_v43  ;;  %424 = vst [vmem:[%s3068_s30 + $0x360] sm:$0xff] %v423_v44  ;;  %v431_v48 = vld [vmem:[%s3060_s29 + $0x700] sm:$0xff]  ;;  %v433_v49 = vld [vmem:[%s3060_s29 + $0x708] sm:$0xff] }
  0x49   : > { %426 = vst [vmem:[%s3068_s30 + $0x368] sm:$0xff] %v425_v45  ;;  %428 = vst [vmem:[%s3068_s30 + $0x370] sm:$0xff] %v427_v46  ;;  %v435_v50 = vld [vmem:[%s3060_s29 + $0x710] sm:$0xff]  ;;  %v437_v51 = vld [vmem:[%s3060_s29 + $0x718] sm:$0xff] }
  0x4a   : > { %430 = vst [vmem:[%s3068_s30 + $0x378] sm:$0xff] %v429_v47  ;;  %432 = vst [vmem:[%s3068_s30 + $0x380] sm:$0xff] %v431_v48  ;;  %v439_v52 = vld [vmem:[%s3060_s29 + $0x740] sm:$0xff]  ;;  %v441_v53 = vld [vmem:[%s3060_s29 + $0x748] sm:$0xff] }
  0x4b   : > { %434 = vst [vmem:[%s3068_s30 + $0x388] sm:$0xff] %v433_v49  ;;  %436 = vst [vmem:[%s3068_s30 + $0x390] sm:$0xff] %v435_v50  ;;  %v443_v54 = vld [vmem:[%s3060_s29 + $0x750] sm:$0xff]  ;;  %v445_v55 = vld [vmem:[%s3060_s29 + $0x758] sm:$0xff] }
  0x4c   : > { %438 = vst [vmem:[%s3068_s30 + $0x398] sm:$0xff] %v437_v51  ;;  %440 = vst [vmem:[%s3068_s30 + $0x3a0] sm:$0xff] %v439_v52  ;;  %v447_v56 = vld [vmem:[%s3060_s29 + $0x780] sm:$0xff]  ;;  %v449_v57 = vld [vmem:[%s3060_s29 + $0x788] sm:$0xff] }
  0x4d   : > { %442 = vst [vmem:[%s3068_s30 + $0x3a8] sm:$0xff] %v441_v53  ;;  %444 = vst [vmem:[%s3068_s30 + $0x3b0] sm:$0xff] %v443_v54  ;;  %v451_v58 = vld [vmem:[%s3060_s29 + $0x790] sm:$0xff]  ;;  %v453_v59 = vld [vmem:[%s3060_s29 + $0x798] sm:$0xff] }
  0x4e   : > { %446 = vst [vmem:[%s3068_s30 + $0x3b8] sm:$0xff] %v445_v55  ;;  %448 = vst [vmem:[%s3068_s30 + $0x3c0] sm:$0xff] %v447_v56  ;;  %v455_v60 = vld [vmem:[%s3060_s29 + $0x7c0] sm:$0xff]  ;;  %v457_v61 = vld [vmem:[%s3060_s29 + $0x7c8] sm:$0xff] }
  0x4f   : > { %450 = vst [vmem:[%s3068_s30 + $0x3c8] sm:$0xff] %v449_v57  ;;  %452 = vst [vmem:[%s3068_s30 + $0x3d0] sm:$0xff] %v451_v58  ;;  %v459_v62 = vld [vmem:[%s3060_s29 + $0x7d0] sm:$0xff]  ;;  %v461_v63 = vld [vmem:[%s3060_s29 + $0x7d8] sm:$0xff] }
  0x50   : > { %454 = vst [vmem:[%s3068_s30 + $0x3d8] sm:$0xff] %v453_v59  ;;  %456 = vst [vmem:[%s3068_s30 + $0x3e0] sm:$0xff] %v455_v60  ;;  %v463_v0 = vld [vmem:[%s3060_s29 + $0x800] sm:$0xff]  ;;  %v465_v1 = vld [vmem:[%s3060_s29 + $0x808] sm:$0xff] }
  0x51   : > { %458 = vst [vmem:[%s3068_s30 + $0x3e8] sm:$0xff] %v457_v61  ;;  %460 = vst [vmem:[%s3068_s30 + $0x3f0] sm:$0xff] %v459_v62  ;;  %v467_v2 = vld [vmem:[%s3060_s29 + $0x810] sm:$0xff]  ;;  %v469_v3 = vld [vmem:[%s3060_s29 + $0x818] sm:$0xff] }
  0x52   : > { %462 = vst [vmem:[%s3068_s30 + $0x3f8] sm:$0xff] %v461_v63  ;;  %464 = vst [vmem:[%s3068_s30 + $0x400] sm:$0xff] %v463_v0  ;;  %v471_v4 = vld [vmem:[%s3060_s29 + $0x840] sm:$0xff]  ;;  %v473_v5 = vld [vmem:[%s3060_s29 + $0x848] sm:$0xff] }
  0x53   : > { %466 = vst [vmem:[%s3068_s30 + $0x408] sm:$0xff] %v465_v1  ;;  %468 = vst [vmem:[%s3068_s30 + $0x410] sm:$0xff] %v467_v2  ;;  %v475_v6 = vld [vmem:[%s3060_s29 + $0x850] sm:$0xff]  ;;  %v477_v7 = vld [vmem:[%s3060_s29 + $0x858] sm:$0xff] }
  0x54   : > { %470 = vst [vmem:[%s3068_s30 + $0x418] sm:$0xff] %v469_v3  ;;  %472 = vst [vmem:[%s3068_s30 + $0x420] sm:$0xff] %v471_v4  ;;  %v479_v8 = vld [vmem:[%s3060_s29 + $0x880] sm:$0xff]  ;;  %v481_v9 = vld [vmem:[%s3060_s29 + $0x888] sm:$0xff] }
  0x55   : > { %474 = vst [vmem:[%s3068_s30 + $0x428] sm:$0xff] %v473_v5  ;;  %476 = vst [vmem:[%s3068_s30 + $0x430] sm:$0xff] %v475_v6  ;;  %v483_v10 = vld [vmem:[%s3060_s29 + $0x890] sm:$0xff]  ;;  %v485_v11 = vld [vmem:[%s3060_s29 + $0x898] sm:$0xff] }
  0x56   : > { %478 = vst [vmem:[%s3068_s30 + $0x438] sm:$0xff] %v477_v7  ;;  %480 = vst [vmem:[%s3068_s30 + $0x440] sm:$0xff] %v479_v8  ;;  %v487_v12 = vld [vmem:[%s3060_s29 + $0x8c0] sm:$0xff]  ;;  %v489_v13 = vld [vmem:[%s3060_s29 + $0x8c8] sm:$0xff] }
  0x57   : > { %482 = vst [vmem:[%s3068_s30 + $0x448] sm:$0xff] %v481_v9  ;;  %484 = vst [vmem:[%s3068_s30 + $0x450] sm:$0xff] %v483_v10  ;;  %v491_v14 = vld [vmem:[%s3060_s29 + $0x8d0] sm:$0xff]  ;;  %v493_v15 = vld [vmem:[%s3060_s29 + $0x8d8] sm:$0xff] }
  0x58   : > { %486 = vst [vmem:[%s3068_s30 + $0x458] sm:$0xff] %v485_v11  ;;  %488 = vst [vmem:[%s3068_s30 + $0x460] sm:$0xff] %v487_v12  ;;  %v495_v16 = vld [vmem:[%s3060_s29 + $0x900] sm:$0xff]  ;;  %v497_v17 = vld [vmem:[%s3060_s29 + $0x908] sm:$0xff] }
  0x59   : > { %490 = vst [vmem:[%s3068_s30 + $0x468] sm:$0xff] %v489_v13  ;;  %492 = vst [vmem:[%s3068_s30 + $0x470] sm:$0xff] %v491_v14  ;;  %v499_v18 = vld [vmem:[%s3060_s29 + $0x910] sm:$0xff]  ;;  %v501_v19 = vld [vmem:[%s3060_s29 + $0x918] sm:$0xff] }
  0x5a   : > { %494 = vst [vmem:[%s3068_s30 + $0x478] sm:$0xff] %v493_v15  ;;  %496 = vst [vmem:[%s3068_s30 + $0x480] sm:$0xff] %v495_v16  ;;  %v503_v20 = vld [vmem:[%s3060_s29 + $0x940] sm:$0xff]  ;;  %v505_v21 = vld [vmem:[%s3060_s29 + $0x948] sm:$0xff] }
  0x5b   : > { %498 = vst [vmem:[%s3068_s30 + $0x488] sm:$0xff] %v497_v17  ;;  %500 = vst [vmem:[%s3068_s30 + $0x490] sm:$0xff] %v499_v18  ;;  %v507_v22 = vld [vmem:[%s3060_s29 + $0x950] sm:$0xff]  ;;  %v509_v23 = vld [vmem:[%s3060_s29 + $0x958] sm:$0xff] }
  0x5c   : > { %502 = vst [vmem:[%s3068_s30 + $0x498] sm:$0xff] %v501_v19  ;;  %504 = vst [vmem:[%s3068_s30 + $0x4a0] sm:$0xff] %v503_v20 }
  0x5d   : > { %506 = vst [vmem:[%s3068_s30 + $0x4a8] sm:$0xff] %v505_v21  ;;  %508 = vst [vmem:[%s3068_s30 + $0x4b0] sm:$0xff] %v507_v22 }
  0x5e   : > { %510 = vst [vmem:[%s3068_s30 + $0x4b8] sm:$0xff] %v509_v23 }
  0x5f PF: > { %p2446_p6 = scmp.ge.s32.totalorder %s2989_s19, 1  ;;  %p532_p7 = scmp.lt.s32.totalorder %s2989_s19, 3 }
  0x61   : > { %p533_p8 = pnand %p2446_p6, %p532_p7 }
  0x62   : > { %s539_s5 = sand.u32 (!%p533_p8), 1, %s2973_s15   ;;  %v3374_v24 = vld [vmem:[%s3743_s0] sm:$0xff] (!%p533_p8)  ;;  %vm1567_vm0 = vcmask (!%p533_p8), 392192   ;;  %s2448_s12 = sshll.u32 (!%p533_p8), %s2981_s17, 7 }
  0x63   : > { %536 = sbr.rel (%p533_p8) target bundleno = 698 (0x2ba), region = 55  ;;  %v3378_v25 = vcombine.high (!%p533_p8), %v3374_v24, %v3374_v24  ;;  %p591_p9 = scmp.lt.s32.totalorder (!%p533_p8), %s2448_s12, 255 }
  0x64   : > { %s2906_s8 = smul.u32 (!%p533_p8), 1216, %s539_s5  ;;  %s2447_s22 = sshll.u32 (!%p533_p8), %s2981_s17, 3 }
  0x65   : > { %1603 = vmatprep.mubr.bf16.mxu0 (!%p533_p8), %v3378_v25  ;;  %1685 = vmatprep.mubr.bf16.mxu1 (!%p533_p8), %v3378_v25  ;;  %p586_p10 = scmp.lt.s32.totalorder (!%p533_p8), %s2447_s22, 15  ;;  %p596_p11 = scmp.lt.s32.totalorder (!%p533_p8), %s2981_s17, 1 }
  0x66   : > { %s3382_s9 = scalar_lea.vmem (!%p533_p8), [#allocation2], %s2906_s8 }
  0x67   : > { %v603_v26 = vld [vmem:[%s3382_s9] sm:$0xff] (!%p533_p8)  ;;  %v604_v28 = vld [vmem:[%s3382_s9 + $0x8] sm:$0xff] (!%p533_p8) }
  0x68   : > { %v607_v27 = vld [vmem:[%s3382_s9 + $0x20] sm:$0xff] (!%p533_p8)  ;;  %v608_v30 = vld [vmem:[%s3382_s9 + $0x28] sm:$0xff] (!%p533_p8) }
  0x69   : > { %v2455_v29 = vcombine.high (!%p533_p8), %v603_v26, %v607_v27  ;;  %v2454_v31 = vcombine.low (!%p533_p8), %v603_v26, %v607_v27  ;;  %v611_v32 = vld [vmem:[%s3382_s9 + $0x40] sm:$0xff] (!%p533_p8)  ;;  %v2457_v34 = vcombine.high (!%p533_p8), %v604_v28, %v608_v30  ;;  %v2456_v35 = vcombine.low (!%p533_p8), %v604_v28, %v608_v30  ;;  %v612_v37 = vld [vmem:[%s3382_s9 + $0x48] sm:$0xff] (!%p533_p8) }
  0x6a   : > { %v615_v33 = vld [vmem:[%s3382_s9 + $0x60] sm:$0xff]  ;;  %v616_v38 = vld [vmem:[%s3382_s9 + $0x68] sm:$0xff]  ;;  %s3755_s12 = smov (!%p591_p9, %s2448_s12), 255  ;;  %s3757_s22 = smov (!%p586_p10, %s2447_s22), 15 }
  0x6b   : > { %v2463_v36 = vcombine.high %v611_v32, %v615_v33  ;;  %v619_v39 = vld [vmem:[%s3382_s9 + $0x80] sm:$0xff]  ;;  %1571 = vmatprep.subr.bf16.mxu0 %v2455_v29  ;;  %v2465_v40 = vcombine.high %v612_v37, %v616_v38  ;;  %v620_v42 = vld [vmem:[%s3382_s9 + $0x88] sm:$0xff]  ;;  %1653 = vmatprep.subr.bf16.mxu1 %v2457_v34  ;;  %v2462_v44 = vcombine.low %v611_v32, %v615_v33  ;;  %s2449_s13 = sshll.u32 %s3755_s12, 3  ;;  %s588_s26 = scalar_lea.vmem %s3745_s2, %s3757_s22 }
  0x6c   : > { %v623_v41 = vld [vmem:[%s3382_s9 + $0xa0] sm:$0xff]  ;;  %v624_v43 = vld [vmem:[%s3382_s9 + $0xa8] sm:$0xff]  ;;  %1572 = vmatpush1.bf16.msra.mxu0 %v2454_v31  ;;  %1654 = vmatpush1.bf16.msra.mxu1 %v2456_v35  ;;  %v2464_v45 = vcombine.low %v612_v37, %v616_v38  ;;  %s3560_s21 = scalar_lea.vmem %s3746_s3, %s2449_s13  ;;  %s3759_s17 = smov (!%p596_p11, %s2981_s17), 1 }
  0x6d   : > { %1573 = vmatprep.subr.bf16.mxu0 %v2463_v36  ;;  %v2471_v46 = vcombine.high %v619_v39, %v623_v41  ;;  %1655 = vmatprep.subr.bf16.mxu1 %v2465_v40  ;;  %v2473_v47 = vcombine.high %v620_v42, %v624_v43  ;;  %v627_v48 = vld [vmem:[%s3382_s9 + $0xc0] sm:$0xff]  ;;  %v628_v50 = vld [vmem:[%s3382_s9 + $0xc8] sm:$0xff]  ;;  %v2470_v52 = vcombine.low %v619_v39, %v623_v41  ;;  %s2450_s27 = sshll.u32 %s3759_s17, 3 }
  0x6e   : > { %v631_v49 = vld [vmem:[%s3382_s9 + $0xe0] sm:$0xff]  ;;  %v632_v51 = vld [vmem:[%s3382_s9 + $0xe8] sm:$0xff]  ;;  %v2472_v53 = vcombine.low %v620_v42, %v624_v43  ;;  %s599_s30 = scalar_lea.vmem %s3747_s4, %s2450_s27 }
  0x6f   : > { %v2479_v54 = vcombine.high %v627_v48, %v631_v49  ;;  %v2481_v55 = vcombine.high %v628_v50, %v632_v51  ;;  %v635_v56 = vld [vmem:[%s3382_s9 + $0x100] sm:$0xff]  ;;  %v636_v58 = vld [vmem:[%s3382_s9 + $0x108] sm:$0xff]  ;;  %v2478_v60 = vcombine.low %v627_v48, %v631_v49  ;;  %v2480_v61 = vcombine.low %v628_v50, %v632_v51 }
  0x70   : > { %1574 = vmatpush1.bf16.msra.mxu0 %v2462_v44  ;;  %1656 = vmatpush1.bf16.msra.mxu1 %v2464_v45  ;;  %v639_v57 = vld [vmem:[%s3382_s9 + $0x120] sm:$0xff]  ;;  %v640_v59 = vld [vmem:[%s3382_s9 + $0x128] sm:$0xff] }
  0x71   : > { %1575 = vmatprep.subr.bf16.mxu0 %v2471_v46  ;;  %1657 = vmatprep.subr.bf16.mxu1 %v2473_v47  ;;  %v2487_v62 = vcombine.high %v635_v56, %v639_v57  ;;  %v2489_v63 = vcombine.high %v636_v58, %v640_v59  ;;  %v643_v0 = vld [vmem:[%s3382_s9 + $0x140] sm:$0xff]  ;;  %v644_v2 = vld [vmem:[%s3382_s9 + $0x148] sm:$0xff]  ;;  %v2486_v4 = vcombine.low %v635_v56, %v639_v57 }
  0x72   : > { %v647_v1 = vld [vmem:[%s3382_s9 + $0x160] sm:$0xff]  ;;  %v648_v3 = vld [vmem:[%s3382_s9 + $0x168] sm:$0xff]  ;;  %v2488_v5 = vcombine.low %v636_v58, %v640_v59 }
  0x73   : > { %v2495_v6 = vcombine.high %v643_v0, %v647_v1  ;;  %v2497_v7 = vcombine.high %v644_v2, %v648_v3  ;;  %v651_v8 = vld [vmem:[%s3382_s9 + $0x180] sm:$0xff]  ;;  %v652_v10 = vld [vmem:[%s3382_s9 + $0x188] sm:$0xff]  ;;  %v2494_v12 = vcombine.low %v643_v0, %v647_v1  ;;  %v2496_v13 = vcombine.low %v644_v2, %v648_v3 }
  0x74   : > { %1576 = vmatpush1.bf16.msra.mxu0 %v2470_v52  ;;  %1658 = vmatpush1.bf16.msra.mxu1 %v2472_v53  ;;  %v655_v9 = vld [vmem:[%s3382_s9 + $0x1a0] sm:$0xff]  ;;  %v656_v11 = vld [vmem:[%s3382_s9 + $0x1a8] sm:$0xff] }
  0x75   : > { %1577 = vmatprep.subr.bf16.mxu0 %v2479_v54  ;;  %1659 = vmatprep.subr.bf16.mxu1 %v2481_v55  ;;  %v2503_v14 = vcombine.high %v651_v8, %v655_v9  ;;  %v2505_v15 = vcombine.high %v652_v10, %v656_v11  ;;  %v659_v16 = vld [vmem:[%s3382_s9 + $0x1c0] sm:$0xff]  ;;  %v660_v18 = vld [vmem:[%s3382_s9 + $0x1c8] sm:$0xff]  ;;  %v2502_v20 = vcombine.low %v651_v8, %v655_v9 }
  0x76   : > { %v663_v17 = vld [vmem:[%s3382_s9 + $0x1e0] sm:$0xff]  ;;  %v664_v19 = vld [vmem:[%s3382_s9 + $0x1e8] sm:$0xff]  ;;  %v2504_v21 = vcombine.low %v652_v10, %v656_v11 }
  0x77   : > { %v2511_v22 = vcombine.high %v659_v16, %v663_v17  ;;  %v2513_v23 = vcombine.high %v660_v18, %v664_v19  ;;  %v667_v26 = vld [vmem:[%s3382_s9 + $0x200] sm:$0xff]  ;;  %v668_v28 = vld [vmem:[%s3382_s9 + $0x208] sm:$0xff]  ;;  %v2510_v30 = vcombine.low %v659_v16, %v663_v17  ;;  %v2512_v31 = vcombine.low %v660_v18, %v664_v19 }
  0x78   : > { %1578 = vmatpush1.bf16.msra.mxu0 %v2478_v60  ;;  %1660 = vmatpush1.bf16.msra.mxu1 %v2480_v61  ;;  %v671_v27 = vld [vmem:[%s3382_s9 + $0x220] sm:$0xff]  ;;  %v672_v29 = vld [vmem:[%s3382_s9 + $0x228] sm:$0xff] }
  0x79   : > { %1579 = vmatprep.subr.bf16.mxu0 %v2487_v62  ;;  %1661 = vmatprep.subr.bf16.mxu1 %v2489_v63  ;;  %v2519_v32 = vcombine.high %v667_v26, %v671_v27  ;;  %v2521_v33 = vcombine.high %v668_v28, %v672_v29  ;;  %v675_v34 = vld [vmem:[%s3382_s9 + $0x240] sm:$0xff]  ;;  %v676_v36 = vld [vmem:[%s3382_s9 + $0x248] sm:$0xff]  ;;  %v2518_v38 = vcombine.low %v667_v26, %v671_v27 }
  0x7a   : > { %v679_v35 = vld [vmem:[%s3382_s9 + $0x260] sm:$0xff]  ;;  %v680_v37 = vld [vmem:[%s3382_s9 + $0x268] sm:$0xff]  ;;  %v2520_v39 = vcombine.low %v668_v28, %v672_v29 }
  0x7b   : > { %v2527_v40 = vcombine.high %v675_v34, %v679_v35  ;;  %v2529_v41 = vcombine.high %v676_v36, %v680_v37  ;;  %v683_v42 = vld [vmem:[%s3382_s9 + $0x280] sm:$0xff]  ;;  %v684_v44 = vld [vmem:[%s3382_s9 + $0x288] sm:$0xff]  ;;  %v2526_v46 = vcombine.low %v675_v34, %v679_v35  ;;  %v2528_v47 = vcombine.low %v676_v36, %v680_v37 }
  0x7c   : > { %1580 = vmatpush1.bf16.msra.mxu0 %v2486_v4  ;;  %1662 = vmatpush1.bf16.msra.mxu1 %v2488_v5  ;;  %v687_v43 = vld [vmem:[%s3382_s9 + $0x2a0] sm:$0xff]  ;;  %v688_v45 = vld [vmem:[%s3382_s9 + $0x2a8] sm:$0xff] }
  0x7d   : > { %1581 = vmatprep.subr.bf16.mxu0 %v2495_v6  ;;  %1663 = vmatprep.subr.bf16.mxu1 %v2497_v7  ;;  %v2535_v48 = vcombine.high %v683_v42, %v687_v43  ;;  %v2537_v49 = vcombine.high %v684_v44, %v688_v45  ;;  %v691_v50 = vld [vmem:[%s3382_s9 + $0x2c0] sm:$0xff]  ;;  %v692_v52 = vld [vmem:[%s3382_s9 + $0x2c8] sm:$0xff]  ;;  %v2534_v54 = vcombine.low %v683_v42, %v687_v43 }
  0x7e   : > { %v695_v51 = vld [vmem:[%s3382_s9 + $0x2e0] sm:$0xff]  ;;  %v696_v53 = vld [vmem:[%s3382_s9 + $0x2e8] sm:$0xff]  ;;  %v2536_v55 = vcombine.low %v684_v44, %v688_v45 }
  0x7f   : > { %v2543_v56 = vcombine.high %v691_v50, %v695_v51  ;;  %v2545_v57 = vcombine.high %v692_v52, %v696_v53  ;;  %v699_v58 = vld [vmem:[%s3382_s9 + $0x300] sm:$0xff]  ;;  %v700_v60 = vld [vmem:[%s3382_s9 + $0x308] sm:$0xff]  ;;  %v2542_v62 = vcombine.low %v691_v50, %v695_v51  ;;  %v2544_v63 = vcombine.low %v692_v52, %v696_v53  ;;  %v605_v53 = vld [vmem:[%s3382_s9 + $0x10] sm:$0xff] }
  0x80   : > { %1582 = vmatpush1.bf16.msra.mxu0 %v2494_v12  ;;  %1664 = vmatpush1.bf16.msra.mxu1 %v2496_v13  ;;  %v703_v59 = vld [vmem:[%s3382_s9 + $0x320] sm:$0xff]  ;;  %v704_v61 = vld [vmem:[%s3382_s9 + $0x328] sm:$0xff]  ;;  %v2991_v52 = vmov 0  }
  0x81   : > { %1583 = vmatprep.subr.bf16.mxu0 %v2503_v14  ;;  %1665 = vmatprep.subr.bf16.mxu1 %v2505_v15  ;;  %v2551_v0 = vcombine.high %v699_v58, %v703_v59  ;;  %v2553_v1 = vcombine.high %v700_v60, %v704_v61  ;;  %v707_v2 = vld [vmem:[%s3382_s9 + $0x340] sm:$0xff]  ;;  %v708_v4 = vld [vmem:[%s3382_s9 + $0x348] sm:$0xff]  ;;  %v2550_v6 = vcombine.low %v699_v58, %v703_v59 }
  0x82   : > { %v711_v3 = vld [vmem:[%s3382_s9 + $0x360] sm:$0xff]  ;;  %v712_v5 = vld [vmem:[%s3382_s9 + $0x368] sm:$0xff]  ;;  %v2552_v7 = vcombine.low %v700_v60, %v704_v61  ;;  %v613_v61 = vld [vmem:[%s3382_s9 + $0x50] sm:$0xff] }
  0x83   : > { %v2559_v8 = vcombine.high %v707_v2, %v711_v3  ;;  %v2561_v9 = vcombine.high %v708_v4, %v712_v5  ;;  %v715_v10 = vld [vmem:[%s3382_s9 + $0x380] sm:$0xff]  ;;  %v716_v12 = vld [vmem:[%s3382_s9 + $0x388] sm:$0xff]  ;;  %v2558_v14 = vcombine.low %v707_v2, %v711_v3  ;;  %v2560_v15 = vcombine.low %v708_v4, %v712_v5 }
  0x84   : > { %1584 = vmatpush1.bf16.msra.mxu0 %v2502_v20  ;;  %1666 = vmatpush1.bf16.msra.mxu1 %v2504_v21  ;;  %v719_v11 = vld [vmem:[%s3382_s9 + $0x3a0] sm:$0xff]  ;;  %v720_v13 = vld [vmem:[%s3382_s9 + $0x3a8] sm:$0xff] }
  0x85   : > { %1585 = vmatprep.subr.bf16.mxu0 %v2511_v22  ;;  %1667 = vmatprep.subr.bf16.mxu1 %v2513_v23  ;;  %v2567_v16 = vcombine.high %v715_v10, %v719_v11  ;;  %v2569_v17 = vcombine.high %v716_v12, %v720_v13  ;;  %v723_v18 = vld [vmem:[%s3382_s9 + $0x3c0] sm:$0xff]  ;;  %v724_v20 = vld [vmem:[%s3382_s9 + $0x3c8] sm:$0xff]  ;;  %v2566_v22 = vcombine.low %v715_v10, %v719_v11 }
  0x86   : > { %v727_v19 = vld [vmem:[%s3382_s9 + $0x3e0] sm:$0xff]  ;;  %v728_v21 = vld [vmem:[%s3382_s9 + $0x3e8] sm:$0xff]  ;;  %v2568_v23 = vcombine.low %v716_v12, %v720_v13 }
  0x87   : > { %v2575_v26 = vcombine.high %v723_v18, %v727_v19  ;;  %v2577_v27 = vcombine.high %v724_v20, %v728_v21  ;;  %v731_v28 = vld [vmem:[%s3382_s9 + $0x400] sm:$0xff] }
  0x88   : > { %1586 = vmatpush1.bf16.msra.mxu0 %v2510_v30  ;;  %1668 = vmatpush1.bf16.msra.mxu1 %v2512_v31  ;;  %v735_v29 = vld [vmem:[%s3382_s9 + $0x420] sm:$0xff]  ;;  %v732_v30 = vld [vmem:[%s3382_s9 + $0x408] sm:$0xff] }
  0x89   : > { %1587 = vmatprep.subr.bf16.mxu0 %v2519_v32  ;;  %1669 = vmatprep.subr.bf16.mxu1 %v2521_v33  ;;  %v736_v31 = vld [vmem:[%s3382_s9 + $0x428] sm:$0xff]  ;;  %v2574_v32 = vcombine.low %v723_v18, %v727_v19  ;;  %v2576_v33 = vcombine.low %v724_v20, %v728_v21  ;;  %v2583_v34 = vcombine.high %v731_v28, %v735_v29  ;;  %v739_v36 = vld [vmem:[%s3382_s9 + $0x440] sm:$0xff] }
  0x8a   : > { %v2585_v35 = vcombine.high %v732_v30, %v736_v31  ;;  %v743_v37 = vld [vmem:[%s3382_s9 + $0x460] sm:$0xff]  ;;  %v2584_v42 = vcombine.low %v732_v30, %v736_v31  ;;  %v645_v31 = vld [vmem:[%s3382_s9 + $0x150] sm:$0xff] }
  0x8b   : > { %v2591_v43 = vcombine.high %v739_v36, %v743_v37  ;;  %v747_v45 = vld [vmem:[%s3382_s9 + $0x480] sm:$0xff] }
  0x8c   : > { %1588 = vmatpush1.bf16.msra.mxu0 %v2518_v38  ;;  %1670 = vmatpush1.bf16.msra.mxu1 %v2520_v39  ;;  %v3456_v38 = vcombine.low %v3374_v24, %v3374_v24  ;;  %v740_v39 = vld [vmem:[%s3382_s9 + $0x448] sm:$0xff] }
  0x8d   : > { %1589 = vmatprep.subr.bf16.mxu0 %v2527_v40  ;;  %1671 = vmatprep.subr.bf16.mxu1 %v2529_v41  ;;  %v744_v40 = vld [vmem:[%s3382_s9 + $0x468] sm:$0xff]  ;;  %v2582_v41 = vcombine.low %v731_v28, %v735_v29 }
  0x8e   : > { %v2593_v44 = vcombine.high %v740_v39, %v744_v40  ;;  %v752_v24 = vld [vmem:[%s3382_s9 + $0x4a8] sm:$0xff] }
  0x90   : > { %1590 = vmatpush1.bf16.msra.mxu0 %v2526_v46  ;;  %1672 = vmatpush1.bf16.msra.mxu1 %v2528_v47  ;;  %v751_v46 = vld [vmem:[%s3382_s9 + $0x4a0] sm:$0xff]  ;;  %v748_v47 = vld [vmem:[%s3382_s9 + $0x488] sm:$0xff] }
  0x91   : > { %1591 = vmatprep.subr.bf16.mxu0 %v2535_v48  ;;  %1673 = vmatprep.subr.bf16.mxu1 %v2537_v49  ;;  %v2590_v48 = vcombine.low %v739_v36, %v743_v37  ;;  %v2592_v49 = vcombine.low %v740_v39, %v744_v40  ;;  %v2599_v50 = vcombine.high %v747_v45, %v751_v46  ;;  %v653_v40 = vld [vmem:[%s3382_s9 + $0x190] sm:$0xff] }
  0x92   : > { %v2601_v51 = vcombine.high %v748_v47, %v752_v24  ;;  %v2600_v58 = vcombine.low %v748_v47, %v752_v24  ;;  %v661_v24 = vld [vmem:[%s3382_s9 + $0x1d0] sm:$0xff] }
  0x94   : > { %1592 = vmatpush1.bf16.msra.mxu0 %v2534_v54  ;;  %1674 = vmatpush1.bf16.msra.mxu1 %v2536_v55  ;;  %v609_v54 = vld [vmem:[%s3382_s9 + $0x30] sm:$0xff]  ;;  %v606_v55 = vld [vmem:[%s3382_s9 + $0x18] sm:$0xff] }
  0x95   : > { %1593 = vmatprep.subr.bf16.mxu0 %v2543_v56  ;;  %1675 = vmatprep.subr.bf16.mxu1 %v2545_v57  ;;  %v610_v56 = vld [vmem:[%s3382_s9 + $0x38] sm:$0xff]  ;;  %v2598_v57 = vcombine.low %v747_v45, %v751_v46  ;;  %v2459_v59 = vcombine.high %v605_v53, %v609_v54  ;;  %v2458_v2 = vcombine.low %v605_v53, %v609_v54 }
  0x96   : > { %v2461_v60 = vcombine.high %v606_v55, %v610_v56  ;;  %v2460_v3 = vcombine.low %v606_v55, %v610_v56  ;;  %v669_v56 = vld [vmem:[%s3382_s9 + $0x210] sm:$0xff] }
  0x98   : > { %1594 = vmatpush1.bf16.msra.mxu0 %v2542_v62  ;;  %1676 = vmatpush1.bf16.msra.mxu1 %v2544_v63  ;;  %v617_v62 = vld [vmem:[%s3382_s9 + $0x70] sm:$0xff]  ;;  %v3477_v63 = vld [vmem:[%s3743_s0 + $0x8] ss:$0 sps:$4 sm:$0xff]  }
  0x99   : > { %1595 = vmatprep.subr.bf16.mxu0 %v2551_v0  ;;  %1677 = vmatprep.subr.bf16.mxu1 %v2553_v1  ;;  %v614_v0 = vld [vmem:[%s3382_s9 + $0x58] sm:$0xff]  ;;  %v2467_v4 = vcombine.high %v613_v61, %v617_v62  ;;  %v2466_v10 = vcombine.low %v613_v61, %v617_v62 }
  0x9a   : > { %v618_v1 = vld [vmem:[%s3382_s9 + $0x78] sm:$0xff] }
  0x9b   : > { %v2469_v5 = vcombine.high %v614_v0, %v618_v1  ;;  %v2468_v11 = vcombine.low %v614_v0, %v618_v1  ;;  %v677_v1 = vld [vmem:[%s3382_s9 + $0x250] sm:$0xff] }
  0x9c   : > { %1596 = vmatpush1.bf16.msra.mxu0 %v2550_v6  ;;  %1678 = vmatpush1.bf16.msra.mxu1 %v2552_v7  ;;  %v621_v6 = vld [vmem:[%s3382_s9 + $0x90] sm:$0xff] }
  0x9d   : > { %1597 = vmatprep.subr.bf16.mxu0 %v2559_v8  ;;  %1679 = vmatprep.subr.bf16.mxu1 %v2561_v9  ;;  %v625_v7 = vld [vmem:[%s3382_s9 + $0xb0] sm:$0xff]  ;;  %v622_v8 = vld [vmem:[%s3382_s9 + $0x98] sm:$0xff] }
  0x9e   : > { %v626_v9 = vld [vmem:[%s3382_s9 + $0xb8] sm:$0xff]  ;;  %v2475_v12 = vcombine.high %v621_v6, %v625_v7  ;;  %v2474_v18 = vcombine.low %v621_v6, %v625_v7 }
  0x9f   : > { %v2477_v13 = vcombine.high %v622_v8, %v626_v9  ;;  %v2476_v19 = vcombine.low %v622_v8, %v626_v9  ;;  %v685_v9 = vld [vmem:[%s3382_s9 + $0x290] sm:$0xff] }
  0xa0   : > { %1598 = vmatpush1.bf16.msra.mxu0 %v2558_v14  ;;  %1680 = vmatpush1.bf16.msra.mxu1 %v2560_v15  ;;  %v629_v14 = vld [vmem:[%s3382_s9 + $0xd0] sm:$0xff] }
  0xa1   : > { %1599 = vmatprep.subr.bf16.mxu0 %v2567_v16  ;;  %1681 = vmatprep.subr.bf16.mxu1 %v2569_v17  ;;  %v633_v15 = vld [vmem:[%s3382_s9 + $0xf0] sm:$0xff]  ;;  %v630_v16 = vld [vmem:[%s3382_s9 + $0xd8] sm:$0xff] }
  0xa2   : > { %v634_v17 = vld [vmem:[%s3382_s9 + $0xf8] sm:$0xff]  ;;  %v2483_v20 = vcombine.high %v629_v14, %v633_v15  ;;  %v2482_v28 = vcombine.low %v629_v14, %v633_v15 }
  0xa3   : > { %v2485_v21 = vcombine.high %v630_v16, %v634_v17 }
  0xa4   : > { %1600 = vmatpush1.bf16.msra.mxu0 %v2566_v22  ;;  %1682 = vmatpush1.bf16.msra.mxu1 %v2568_v23  ;;  %v637_v22 = vld [vmem:[%s3382_s9 + $0x110] sm:$0xff] }
  0xa5   : > { %1601 = vmatprep.subr.bf16.mxu0 %v2575_v26  ;;  %1683 = vmatprep.subr.bf16.mxu1 %v2577_v27  ;;  %v641_v23 = vld [vmem:[%s3382_s9 + $0x130] sm:$0xff]  ;;  %v638_v26 = vld [vmem:[%s3382_s9 + $0x118] sm:$0xff] }
  0xa6   : > { %v642_v27 = vld [vmem:[%s3382_s9 + $0x138] sm:$0xff]  ;;  %v2491_v29 = vcombine.high %v637_v22, %v641_v23 }
  0xa7   : > { %v2493_v30 = vcombine.high %v638_v26, %v642_v27  ;;  %v2492_v36 = vcombine.low %v638_v26, %v642_v27  ;;  %v701_v27 = vld [vmem:[%s3382_s9 + $0x310] sm:$0xff] }
  0xa8   : > { %1602 = vmatpush1.bf16.msra.mxu0 %v2574_v32  ;;  %1684 = vmatpush1.bf16.msra.mxu1 %v2576_v33  ;;  %v649_v32 = vld [vmem:[%s3382_s9 + $0x170] sm:$0xff]  ;;  %v646_v33 = vld [vmem:[%s3382_s9 + $0x158] sm:$0xff] }
  0xa9   : > { %1612 = vmatprep.subr.bf16.mxu0 %v2583_v34  ;;  %1694 = vmatprep.subr.bf16.mxu1 %v2585_v35  ;;  %v650_v34 = vld [vmem:[%s3382_s9 + $0x178] sm:$0xff]  ;;  %v2490_v35 = vcombine.low %v637_v22, %v641_v23  ;;  %v2499_v37 = vcombine.high %v645_v31, %v649_v32 }
  0xaa   : > { %v2501_v39 = vcombine.high %v646_v33, %v650_v34  ;;  %v2500_v45 = vcombine.low %v646_v33, %v650_v34  ;;  %v709_v34 = vld [vmem:[%s3382_s9 + $0x350] sm:$0xff] }
  0xab   : > { %1604 = vmatmul.mubr.bf16.vlgmr.msra.gmra.mrb[0].mxu0 %v3456_v38  ;;  %1686 = vmatmul.mubr.bf16.vlgmr.msra.gmra.mrb[0].mxu1 %v3456_v38 }
  0xac   : > { %1613 = vmatpush1.bf16.msra.mxu0 %v2582_v41  ;;  %1695 = vmatpush1.bf16.msra.mxu1 %v2584_v42  ;;  %v657_v41 = vld [vmem:[%s3382_s9 + $0x1b0] sm:$0xff]  ;;  %v654_v42 = vld [vmem:[%s3382_s9 + $0x198] sm:$0xff] }
  0xad   : > { %1614 = vmatprep.subr.bf16.mxu0 %v2591_v43  ;;  %1696 = vmatprep.subr.bf16.mxu1 %v2593_v44  ;;  %v658_v43 = vld [vmem:[%s3382_s9 + $0x1b8] sm:$0xff]  ;;  %v2498_v44 = vcombine.low %v645_v31, %v649_v32  ;;  %v2507_v46 = vcombine.high %v653_v40, %v657_v41 }
  0xae   : > { %1644 = vmatprep.mubr.bf16.mxu0 %v2991_v52  ;;  %1726 = vmatprep.mubr.bf16.mxu1 %v2991_v52  ;;  %v2509_v47 = vcombine.high %v654_v42, %v658_v43  ;;  %v2508_v53 = vcombine.low %v654_v42, %v658_v43  ;;  %v717_v43 = vld [vmem:[%s3382_s9 + $0x390] sm:$0xff] }
  0xb0   : > { %1615 = vmatpush1.bf16.msra.mxu0 %v2590_v48  ;;  %1697 = vmatpush1.bf16.msra.mxu1 %v2592_v49  ;;  %v665_v48 = vld [vmem:[%s3382_s9 + $0x1f0] sm:$0xff]  ;;  %v662_v49 = vld [vmem:[%s3382_s9 + $0x1d8] sm:$0xff] }
  0xb1   : > { %1616 = vmatprep.subr.bf16.mxu0 %v2599_v50  ;;  %1698 = vmatprep.subr.bf16.mxu1 %v2601_v51  ;;  %v666_v50 = vld [vmem:[%s3382_s9 + $0x1f8] sm:$0xff]  ;;  %v2506_v51 = vcombine.low %v653_v40, %v657_v41  ;;  %v2515_v54 = vcombine.high %v661_v24, %v665_v48 }
  0xb2   : > { %v2517_v55 = vcombine.high %v662_v49, %v666_v50  ;;  %v2516_v61 = vcombine.low %v662_v49, %v666_v50  ;;  %v725_v50 = vld [vmem:[%s3382_s9 + $0x3d0] sm:$0xff] }
  0xb4   : > { %1617 = vmatpush1.bf16.msra.mxu0 %v2598_v57  ;;  %1699 = vmatpush1.bf16.msra.mxu1 %v2600_v58  ;;  %v673_v57 = vld [vmem:[%s3382_s9 + $0x230] sm:$0xff]  ;;  %v670_v58 = vld [vmem:[%s3382_s9 + $0x218] sm:$0xff] }
  0xb5   : > { %1735 = vmatprep.subr.bf16.mxu0 %v2459_v59  ;;  %1817 = vmatprep.subr.bf16.mxu1 %v2461_v60  ;;  %v674_v59 = vld [vmem:[%s3382_s9 + $0x238] sm:$0xff]  ;;  %v2514_v60 = vcombine.low %v661_v24, %v665_v48  ;;  %v2523_v62 = vcombine.high %v669_v56, %v673_v57 }
  0xb6   : > { %v2525_v0 = vcombine.high %v670_v58, %v674_v59  ;;  %v2524_v6 = vcombine.low %v670_v58, %v674_v59  ;;  %v733_v59 = vld [vmem:[%s3382_s9 + $0x410] sm:$0xff] }
  0xb7   : > { %2606 = vmatmul.mubr.msk.bf16.vlgmr.msra.gmra.mrb[0].mxu0 %vm1567_vm0, %v3477_v63  ;;  %2607 = vmatmul.mubr.msk.bf16.vlgmr.msra.gmra.mrb[0].mxu1 %vm1567_vm0, %v3477_v63 }
  0xb8   : > { %1736 = vmatpush1.bf16.msra.mxu0 %v2458_v2  ;;  %1818 = vmatpush1.bf16.msra.mxu1 %v2460_v3  ;;  %v681_v2 = vld [vmem:[%s3382_s9 + $0x270] sm:$0xff]  ;;  %v678_v3 = vld [vmem:[%s3382_s9 + $0x258] sm:$0xff] }
  0xb9   : > { %1737 = vmatprep.subr.bf16.mxu0 %v2467_v4  ;;  %1819 = vmatprep.subr.bf16.mxu1 %v2469_v5  ;;  %v682_v4 = vld [vmem:[%s3382_s9 + $0x278] sm:$0xff]  ;;  %v2522_v5 = vcombine.low %v669_v56, %v673_v57  ;;  %v2531_v7 = vcombine.high %v677_v1, %v681_v2 }
  0xba   : > { %1767 = vmatprep.mubr.bf16.mxu0 %v3378_v25  ;;  %1849 = vmatprep.mubr.bf16.mxu1 %v3378_v25  ;;  %v2484_v25 = vcombine.low %v630_v16, %v634_v17  ;;  %v2533_v8 = vcombine.high %v678_v3, %v682_v4  ;;  %v2532_v14 = vcombine.low %v678_v3, %v682_v4  ;;  %v693_v17 = vld [vmem:[%s3382_s9 + $0x2d0] sm:$0xff] }
  0xbb   : > { %v741_v4 = vld [vmem:[%s3382_s9 + $0x450] sm:$0xff] }
  0xbc   : > { %1738 = vmatpush1.bf16.msra.mxu0 %v2466_v10  ;;  %1820 = vmatpush1.bf16.msra.mxu1 %v2468_v11  ;;  %v689_v10 = vld [vmem:[%s3382_s9 + $0x2b0] sm:$0xff]  ;;  %v686_v11 = vld [vmem:[%s3382_s9 + $0x298] sm:$0xff] }
  0xbd   : > { %1739 = vmatprep.subr.bf16.mxu0 %v2475_v12  ;;  %1821 = vmatprep.subr.bf16.mxu1 %v2477_v13  ;;  %v690_v12 = vld [vmem:[%s3382_s9 + $0x2b8] sm:$0xff]  ;;  %v2530_v13 = vcombine.low %v677_v1, %v681_v2  ;;  %v2539_v15 = vcombine.high %v685_v9, %v689_v10 }
  0xbe   : > { %v2541_v16 = vcombine.high %v686_v11, %v690_v12  ;;  %v2540_v22 = vcombine.low %v686_v11, %v690_v12  ;;  %v749_v12 = vld [vmem:[%s3382_s9 + $0x490] sm:$0xff] }
  0xc0   : > { %1740 = vmatpush1.bf16.msra.mxu0 %v2474_v18  ;;  %1822 = vmatpush1.bf16.msra.mxu1 %v2476_v19  ;;  %v697_v18 = vld [vmem:[%s3382_s9 + $0x2f0] sm:$0xff]  ;;  %v694_v19 = vld [vmem:[%s3382_s9 + $0x2d8] sm:$0xff] }
  0xc1   : > { %1741 = vmatprep.subr.bf16.mxu0 %v2483_v20  ;;  %1823 = vmatprep.subr.bf16.mxu1 %v2485_v21  ;;  %v698_v20 = vld [vmem:[%s3382_s9 + $0x2f8] sm:$0xff]  ;;  %v2538_v21 = vcombine.low %v685_v9, %v689_v10  ;;  %v2547_v23 = vcombine.high %v693_v17, %v697_v18 }
  0xc2   : > { %v2549_v26 = vcombine.high %v694_v19, %v698_v20  ;;  %v2548_v31 = vcombine.low %v694_v19, %v698_v20  ;;  %v1939_v20 = vld [vmem:[%s3560_s21 + $0x80] sm:$0xff] }
  0xc4   : > { %1742 = vmatpush1.bf16.msra.mxu0 %v2482_v28  ;;  %1824 = vmatpush1.bf16.msra.mxu1 %v2484_v25  ;;  %v705_v28 = vld [vmem:[%s3382_s9 + $0x330] sm:$0xff]  ;;  %v702_v25 = vld [vmem:[%s3382_s9 + $0x318] sm:$0xff] }
  0xc5   : > { %1743 = vmatprep.subr.bf16.mxu0 %v2491_v29  ;;  %1825 = vmatprep.subr.bf16.mxu1 %v2493_v30  ;;  %v706_v29 = vld [vmem:[%s3382_s9 + $0x338] sm:$0xff]  ;;  %v2546_v30 = vcombine.low %v693_v17, %v697_v18  ;;  %v2555_v32 = vcombine.high %v701_v27, %v705_v28 }
  0xc6   : > { %v2557_v33 = vcombine.high %v702_v25, %v706_v29  ;;  %v2556_v40 = vcombine.low %v702_v25, %v706_v29  ;;  %v1924_v25 = vld [vmem:[%s3560_s21 + $0x8] sm:$0xff]  ;;  %v1955_v29 = vld [vmem:[%s3560_s21 + $0x100] sm:$0xff] }
  0xc8   : > { %1744 = vmatpush1.bf16.msra.mxu0 %v2490_v35  ;;  %1826 = vmatpush1.bf16.msra.mxu1 %v2492_v36  ;;  %v713_v35 = vld [vmem:[%s3382_s9 + $0x370] sm:$0xff]  ;;  %v710_v36 = vld [vmem:[%s3382_s9 + $0x358] sm:$0xff] }
  0xc9   : > { %1745 = vmatprep.subr.bf16.mxu0 %v2499_v37  ;;  %1827 = vmatprep.subr.bf16.mxu1 %v2501_v39  ;;  %v714_v37 = vld [vmem:[%s3382_s9 + $0x378] sm:$0xff]  ;;  %v2554_v39 = vcombine.low %v701_v27, %v705_v28  ;;  %v2563_v41 = vcombine.high %v709_v34, %v713_v35  ;;  %v1923_v28 = vld [vmem:[%s3560_s21] sm:$0xff] }
  0xca   : > { %v2565_v42 = vcombine.high %v710_v36, %v714_v37  ;;  %v2564_v24 = vcombine.low %v710_v36, %v714_v37 }
  0xcc   : > { %1746 = vmatpush1.bf16.msra.mxu0 %v2498_v44  ;;  %1828 = vmatpush1.bf16.msra.mxu1 %v2500_v45  ;;  %v721_v44 = vld [vmem:[%s3382_s9 + $0x3b0] sm:$0xff]  ;;  %v718_v45 = vld [vmem:[%s3382_s9 + $0x398] sm:$0xff] }
  0xcd   : > { %1747 = vmatprep.subr.bf16.mxu0 %v2507_v46  ;;  %1829 = vmatprep.subr.bf16.mxu1 %v2509_v47  ;;  %v722_v46 = vld [vmem:[%s3382_s9 + $0x3b8] sm:$0xff]  ;;  %v2562_v47 = vcombine.low %v709_v34, %v713_v35  ;;  %v2571_v48 = vcombine.high %v717_v43, %v721_v44  ;;  %v2755_v35 = vpack.c.bf16 %v1924_v25, %v1923_v28  ;;  %v1951_v25 = vld [vmem:[%s3560_s21 + $0xe0] sm:$0xff] }
  0xce   : > { %v2573_v49 = vcombine.high %v718_v45, %v722_v46  ;;  %v2572_v56 = vcombine.low %v718_v45, %v722_v46  ;;  %v1974_v34 = vld [vmem:[%s3560_s21 + $0x198] sm:$0xff]  ;;  %v1944_v45 = vld [vmem:[%s3560_s21 + $0xa8] sm:$0xff]  ;;  %v1975_v46 = vld [vmem:[%s3560_s21 + $0x1a0] sm:$0xff] }
  0xcf   : > { %v1966_v28 = vld [vmem:[%s3560_s21 + $0x158] sm:$0xff] }
  0xd0   : > { %1748 = vmatpush1.bf16.msra.mxu0 %v2506_v51  ;;  %1830 = vmatpush1.bf16.msra.mxu1 %v2508_v53  ;;  %v729_v51 = vld [vmem:[%s3382_s9 + $0x3f0] sm:$0xff]  ;;  %v726_v53 = vld [vmem:[%s3382_s9 + $0x3d8] sm:$0xff] }
  0xd1   : > { %1749 = vmatprep.subr.bf16.mxu0 %v2515_v54  ;;  %1831 = vmatprep.subr.bf16.mxu1 %v2517_v55  ;;  %v730_v54 = vld [vmem:[%s3382_s9 + $0x3f8] sm:$0xff]  ;;  %v2570_v55 = vcombine.low %v717_v43, %v721_v44  ;;  %v2579_v57 = vcombine.high %v725_v50, %v729_v51  ;;  %v1943_v44 = vld [vmem:[%s3560_s21 + $0xa0] sm:$0xff] }
  0xd2   : > { %v2581_v58 = vcombine.high %v726_v53, %v730_v54  ;;  %v2580_v1 = vcombine.low %v726_v53, %v730_v54  ;;  %v1958_v43 = vld [vmem:[%s3560_s21 + $0x118] sm:$0xff]  ;;  %v1959_v53 = vld [vmem:[%s3560_s21 + $0x120] sm:$0xff] }
  0xd4   : > { %1750 = vmatpush1.bf16.msra.mxu0 %v2514_v60  ;;  %1832 = vmatpush1.bf16.msra.mxu1 %v2516_v61  ;;  %v737_v60 = vld [vmem:[%s3382_s9 + $0x430] sm:$0xff]  ;;  %v734_v61 = vld [vmem:[%s3382_s9 + $0x418] sm:$0xff] }
  0xd5   : > { %1751 = vmatprep.subr.bf16.mxu0 %v2523_v62  ;;  %1833 = vmatprep.subr.bf16.mxu1 %v2525_v0  ;;  %v738_v62 = vld [vmem:[%s3382_s9 + $0x438] sm:$0xff]  ;;  %v2578_v0 = vcombine.low %v725_v50, %v729_v51  ;;  %v2587_v2 = vcombine.high %v733_v59, %v737_v60  ;;  %v1927_v50 = vld [vmem:[%s3560_s21 + $0x20] sm:$0xff]  ;;  %v1928_v51 = vld [vmem:[%s3560_s21 + $0x28] sm:$0xff] }
  0xd6   : > { %v2589_v3 = vcombine.high %v734_v61, %v738_v62  ;;  %v2588_v9 = vcombine.low %v734_v61, %v738_v62  ;;  %v1929_v62 = vld [vmem:[%s3560_s21 + $0x30] sm:$0xff] }
  0xd8   : > { %1752 = vmatpush1.bf16.msra.mxu0 %v2522_v5  ;;  %1834 = vmatpush1.bf16.msra.mxu1 %v2524_v6  ;;  %v745_v5 = vld [vmem:[%s3382_s9 + $0x470] sm:$0xff]  ;;  %v742_v6 = vld [vmem:[%s3382_s9 + $0x458] sm:$0xff] }
  0xd9   : > { %1753 = vmatprep.subr.bf16.mxu0 %v2531_v7  ;;  %1835 = vmatprep.subr.bf16.mxu1 %v2533_v8  ;;  %v746_v7 = vld [vmem:[%s3382_s9 + $0x478] sm:$0xff]  ;;  %v2586_v8 = vcombine.low %v733_v59, %v737_v60  ;;  %v2595_v10 = vcombine.high %v741_v4, %v745_v5  ;;  %v2763_v59 = vpack.c.bf16 %v1928_v51, %v1927_v50  ;;  %v2003_v51 = vld [vmem:[%s3560_s21 + $0x280] sm:$0xff] }
  0xda   : > { %v2597_v11 = vcombine.high %v742_v6, %v746_v7  ;;  %v2596_v17 = vcombine.low %v742_v6, %v746_v7  ;;  %v1979_v6 = vld [vmem:[%s3560_s21 + $0x1c0] sm:$0xff]  ;;  %v1980_v7 = vld [vmem:[%s3560_s21 + $0x1c8] sm:$0xff]  ;;  %v1970_v50 = vld [vmem:[%s3560_s21 + $0x178] sm:$0xff] }
  0xdc   : > { %1754 = vmatpush1.bf16.msra.mxu0 %v2530_v13  ;;  %1836 = vmatpush1.bf16.msra.mxu1 %v2532_v14  ;;  %v753_v13 = vld [vmem:[%s3382_s9 + $0x4b0] sm:$0xff]  ;;  %v750_v14 = vld [vmem:[%s3382_s9 + $0x498] sm:$0xff] }
  0xdd   : > { %1755 = vmatprep.subr.bf16.mxu0 %v2539_v15  ;;  %1837 = vmatprep.subr.bf16.mxu1 %v2541_v16  ;;  %v754_v15 = vld [vmem:[%s3382_s9 + $0x4b8] sm:$0xff]  ;;  %v2594_v16 = vcombine.low %v741_v4, %v745_v5  ;;  %v2603_v18 = vcombine.high %v749_v12, %v753_v13  ;;  %v1947_v4 = vld [vmem:[%s3560_s21 + $0xc0] sm:$0xff]  ;;  %v1948_v5 = vld [vmem:[%s3560_s21 + $0xc8] sm:$0xff] }
  0xde   : > { %v2605_v19 = vcombine.high %v750_v14, %v754_v15 }
  0xe0   : > { %1756 = vmatpush1.bf16.msra.mxu0 %v2538_v21  ;;  %1838 = vmatpush1.bf16.msra.mxu1 %v2540_v22  ;;  %v1940_v21 = vld [vmem:[%s3560_s21 + $0x88] sm:$0xff] }
  0xe1   : > { %1757 = vmatprep.subr.bf16.mxu0 %v2547_v23  ;;  %1839 = vmatprep.subr.bf16.mxu1 %v2549_v26  ;;  %v1972_v22 = vld [vmem:[%s3560_s21 + $0x188] sm:$0xff]  ;;  %v2602_v23 = vcombine.low %v749_v12, %v753_v13  ;;  %v2604_v26 = vcombine.low %v750_v14, %v754_v15  ;;  %v2753_v27 = vpack.c.bf16 %v1940_v21, %v1939_v20  ;;  %v1963_v13 = vld [vmem:[%s3560_s21 + $0x140] sm:$0xff] }
  0xe2   : > { %v1932_v12 = vld [vmem:[%s3560_s21 + $0x48] sm:$0xff]  ;;  %v2801_v14 = vpack.c.bf16 %v1980_v7, %v1979_v6 }
  0xe3   : > { %v1964_v15 = vld [vmem:[%s3560_s21 + $0x148] sm:$0xff] }
  0xe4   : > { %1758 = vmatpush1.bf16.msra.mxu0 %v2546_v30  ;;  %1840 = vmatpush1.bf16.msra.mxu1 %v2548_v31  ;;  %v1941_v31 = vld [vmem:[%s3560_s21 + $0x90] sm:$0xff]  ;;  %v2803_v21 = vpack.c.bf16 %v1964_v15, %v1963_v13  ;;  %v2019_v13 = vld [vmem:[%s3560_s21 + $0x300] sm:$0xff] }
  0xe5   : > { %1759 = vmatprep.subr.bf16.mxu0 %v2555_v32  ;;  %1841 = vmatprep.subr.bf16.mxu1 %v2557_v33  ;;  %v1942_v32 = vld [vmem:[%s3560_s21 + $0x98] sm:$0xff]  ;;  %v1973_v33 = vld [vmem:[%s3560_s21 + $0x190] sm:$0xff] }
  0xe6   : > { %v2757_v37 = vpack.c.bf16 %v1942_v32, %v1941_v31 }
  0xe8   : > { %1760 = vmatpush1.bf16.msra.mxu0 %v2554_v39  ;;  %1842 = vmatpush1.bf16.msra.mxu1 %v2556_v40  ;;  %v1925_v39 = vld [vmem:[%s3560_s21 + $0x10] sm:$0xff]  ;;  %v1926_v40 = vld [vmem:[%s3560_s21 + $0x18] sm:$0xff] }
  0xe9   : > { %1761 = vmatprep.subr.bf16.mxu0 %v2563_v41  ;;  %1843 = vmatprep.subr.bf16.mxu1 %v2565_v42  ;;  %v1957_v41 = vld [vmem:[%s3560_s21 + $0x110] sm:$0xff]  ;;  %v2789_v42 = vpack.c.bf16 %v1974_v34, %v1973_v33  ;;  %v1935_v34 = vld [vmem:[%s3560_s21 + $0x60] sm:$0xff] }
  0xec   : > { %1762 = vmatpush1.bf16.msra.mxu0 %v2562_v47  ;;  %1844 = vmatpush1.bf16.msra.mxu1 %v2564_v24  ;;  %v1976_v47 = vld [vmem:[%s3560_s21 + $0x1a8] sm:$0xff]  ;;  %v2759_v24 = vpack.c.bf16 %v1926_v40, %v1925_v39  ;;  %v1953_v40 = vld [vmem:[%s3560_s21 + $0xf0] sm:$0xff] }
  0xed   : > { %1763 = vmatprep.subr.bf16.mxu0 %v2571_v48  ;;  %1845 = vmatprep.subr.bf16.mxu1 %v2573_v49  ;;  %v2791_v48 = vpack.c.bf16 %v1958_v43, %v1957_v41  ;;  %v2761_v49 = vpack.c.bf16 %v1944_v45, %v1943_v44  ;;  %v2793_v54 = vpack.c.bf16 %v1976_v47, %v1975_v46  ;;  %v1968_v39 = vld [vmem:[%s3560_s21 + $0x168] sm:$0xff]  ;;  %v1954_v41 = vld [vmem:[%s3560_s21 + $0xf8] sm:$0xff]  ;;  %v1937_v47 = vld [vmem:[%s3560_s21 + $0x70] sm:$0xff] }
  0xee   : > { %v1986_v43 = vld [vmem:[%s3560_s21 + $0x1f8] sm:$0xff]  ;;  %v2781_v46 = vpack.c.bf16 %v1954_v41, %v1953_v40 }
  0xef   : > { %v2022_v41 = vld [vmem:[%s3560_s21 + $0x318] sm:$0xff] }
  0xf0   : > { %1764 = vmatpush1.bf16.msra.mxu0 %v2570_v55  ;;  %1846 = vmatpush1.bf16.msra.mxu1 %v2572_v56  ;;  %v1960_v55 = vld [vmem:[%s3560_s21 + $0x128] sm:$0xff]  ;;  %v1945_v56 = vld [vmem:[%s3560_s21 + $0xb0] sm:$0xff] }
  0xf1   : > { %1765 = vmatprep.subr.bf16.mxu0 %v2579_v57  ;;  %1847 = vmatprep.subr.bf16.mxu1 %v2581_v58  ;;  %v1977_v57 = vld [vmem:[%s3560_s21 + $0x1b0] sm:$0xff]  ;;  %v1978_v58 = vld [vmem:[%s3560_s21 + $0x1b8] sm:$0xff]  ;;  %v2795_v60 = vpack.c.bf16 %v1960_v55, %v1959_v53  ;;  %v2004_v53 = vld [vmem:[%s3560_s21 + $0x288] sm:$0xff] }
  0xf2   : > { %v2036_v55 = vld [vmem:[%s3560_s21 + $0x388] sm:$0xff] }
  0xf4   : > { %1766 = vmatpush1.bf16.msra.mxu0 %v2578_v0  ;;  %1848 = vmatpush1.bf16.msra.mxu1 %v2580_v1  ;;  %v1930_v0 = vld [vmem:[%s3560_s21 + $0x38] sm:$0xff]  ;;  %v1961_v1 = vld [vmem:[%s3560_s21 + $0x130] sm:$0xff] }
  0xf5   : > { %1776 = vmatprep.subr.bf16.mxu0 %v2587_v2  ;;  %1858 = vmatprep.subr.bf16.mxu1 %v2589_v3  ;;  %v2797_v2 = vpack.c.bf16 %v1978_v58, %v1977_v57  ;;  %v1962_v3 = vld [vmem:[%s3560_s21 + $0x138] sm:$0xff]  ;;  %v2817_v57 = vpack.c.bf16 %v2004_v53, %v2003_v51  ;;  %v2023_v51 = vld [vmem:[%s3560_s21 + $0x320] sm:$0xff] }
  0xf7   : > { %1768 = vmatmul.mubr.bf16.vlgmr.msra.gmra.mrb[4].mxu0 %v3456_v38  ;;  %1850 = vmatmul.mubr.bf16.vlgmr.msra.gmra.mrb[4].mxu1 %v3456_v38  ;;  %v1971_v38 = vld [vmem:[%s3560_s21 + $0x180] sm:$0xff] }
  0xf8   : > { %1777 = vmatpush1.bf16.msra.mxu0 %v2586_v8  ;;  %1859 = vmatpush1.bf16.msra.mxu1 %v2588_v9  ;;  %v2785_v30 = vpack.c.bf16 %v1972_v22, %v1971_v38  ;;  %v2767_v8 = vpack.c.bf16 %v1930_v0, %v1929_v62  ;;  %v2799_v9 = vpack.c.bf16 %v1962_v3, %v1961_v1  ;;  %v1933_v22 = vld [vmem:[%s3560_s21 + $0x50] sm:$0xff]  ;;  %v3644_v62 = vld [vmem:[%s588_s26] sm:$0xff] }
  0xf9   : > { %1778 = vmatprep.subr.bf16.mxu0 %v2595_v10  ;;  %1860 = vmatprep.subr.bf16.mxu1 %v2597_v11  ;;  %v2769_v10 = vpack.c.bf16 %v1948_v5, %v1947_v4  ;;  %v1931_v11 = vld [vmem:[%s3560_s21 + $0x40] sm:$0xff] }
  0xfa   : > { %1808 = vmatprep.mubr.bf16.mxu0 %v2991_v52  ;;  %1890 = vmatprep.mubr.bf16.mxu1 %v2991_v52  ;;  %v1956_v52 = vld [vmem:[%s3560_s21 + $0x108] sm:$0xff]  ;;  %v2771_v20 = vpack.c.bf16 %v1932_v12, %v1931_v11  ;;  %v1987_v11 = vld [vmem:[%s3560_s21 + $0x200] sm:$0xff] }
  0xfb   : > { %v2787_v36 = vpack.c.bf16 %v1956_v52, %v1955_v29  ;;  %v1952_v29 = vld [vmem:[%s3560_s21 + $0xe8] sm:$0xff] }
  0xfc   : > { %1779 = vmatpush1.bf16.msra.mxu0 %v2594_v16  ;;  %1861 = vmatpush1.bf16.msra.mxu1 %v2596_v17  ;;  %v1949_v16 = vld [vmem:[%s3560_s21 + $0xd0] sm:$0xff]  ;;  %v1950_v17 = vld [vmem:[%s3560_s21 + $0xd8] sm:$0xff]  ;;  %v1984_v52 = vld [vmem:[%s3560_s21 + $0x1e8] sm:$0xff]  ;;  %v2777_v33 = vpack.c.bf16 %v1952_v29, %v1951_v25 }
  0xfd   : > { %1780 = vmatprep.subr.bf16.mxu0 %v2603_v18  ;;  %1862 = vmatprep.subr.bf16.mxu1 %v2605_v19  ;;  %v1981_v18 = vld [vmem:[%s3560_s21 + $0x1d0] sm:$0xff]  ;;  %v1982_v19 = vld [vmem:[%s3560_s21 + $0x1d8] sm:$0xff]  ;;  %v2773_v38 = vpack.c.bf16 %v1950_v17, %v1949_v16  ;;  %v1988_v12 = vld [vmem:[%s3560_s21 + $0x208] sm:$0xff] }
 0x100   : > { %1781 = vmatpush1.bf16.msra.mxu0 %v2602_v23  ;;  %1863 = vmatpush1.bf16.msra.mxu1 %v2604_v26  ;;  %v1934_v23 = vld [vmem:[%s3560_s21 + $0x58] sm:$0xff]  ;;  %v1965_v26 = vld [vmem:[%s3560_s21 + $0x150] sm:$0xff] }
 0x101   : > { %2754 = vmatprep.subr.bf16.mxu0 %v2753_v27  ;;  %2786 = vmatprep.subr.bf16.mxu1 %v2785_v30  ;;  %v2805_v27 = vpack.c.bf16 %v1982_v19, %v1981_v18  ;;  %v1983_v30 = vld [vmem:[%s3560_s21 + $0x1e0] sm:$0xff]  ;;  %v2775_v31 = vpack.c.bf16 %v1934_v23, %v1933_v22  ;;  %v2807_v32 = vpack.c.bf16 %v1966_v28, %v1965_v26  ;;  %v2020_v18 = vld [vmem:[%s3560_s21 + $0x308] sm:$0xff]  ;;  %v2005_v19 = vld [vmem:[%s3560_s21 + $0x290] sm:$0xff] }
 0x102   : > { %v2037_v26 = vld [vmem:[%s3560_s21 + $0x390] sm:$0xff] }
 0x103   : > { %2608 = vmatmul.mubr.msk.bf16.vlgmr.msra.gmra.mrb[4].mxu0 %vm1567_vm0, %v3477_v63  ;;  %2609 = vmatmul.mubr.msk.bf16.vlgmr.msra.gmra.mrb[4].mxu1 %vm1567_vm0, %v3477_v63  ;;  %v1946_v63 = vld [vmem:[%s3560_s21 + $0xb8] sm:$0xff] }
 0x104   : > { %2756 = vmatpush3.bf16.msra.mxu0 %v2755_v35  ;;  %2788 = vmatpush3.bf16.msra.mxu1 %v2787_v36  ;;  %v2765_v61 = vpack.c.bf16 %v1946_v63, %v1945_v56  ;;  %v1936_v35 = vld [vmem:[%s3560_s21 + $0x68] sm:$0xff]  ;;  %v1967_v36 = vld [vmem:[%s3560_s21 + $0x160] sm:$0xff] }
 0x105   : > { %2758 = vmatprep.subr.bf16.mxu0 %v2757_v37  ;;  %2790 = vmatprep.subr.bf16.mxu1 %v2789_v42  ;;  %v2809_v37 = vpack.c.bf16 %v1984_v52, %v1983_v30  ;;  %v1985_v42 = vld [vmem:[%s3560_s21 + $0x1f0] sm:$0xff]  ;;  %v2779_v44 = vpack.c.bf16 %v1936_v35, %v1935_v34  ;;  %v2811_v45 = vpack.c.bf16 %v1968_v39, %v1967_v36  ;;  %v1990_v35 = vld [vmem:[%s3560_s21 + $0x218] sm:$0xff] }
 0x106   : > { %v2819_v30 = vpack.c.bf16 %v1988_v12, %v1987_v11  ;;  %v1989_v34 = vld [vmem:[%s3560_s21 + $0x210] sm:$0xff]  ;;  %v1995_v12 = vld [vmem:[%s3560_s21 + $0x240] sm:$0xff] }
 0x107   : > { %v2021_v36 = vld [vmem:[%s3560_s21 + $0x310] sm:$0xff] }
 0x108   : > { %2760 = vmatpush3.bf16.msra.mxu0 %v2759_v24  ;;  %2792 = vmatpush3.bf16.msra.mxu1 %v2791_v48  ;;  %v1938_v24 = vld [vmem:[%s3560_s21 + $0x78] sm:$0xff]  ;;  %v1969_v48 = vld [vmem:[%s3560_s21 + $0x170] sm:$0xff] }
 0x109   : > { %2762 = vmatprep.subr.bf16.mxu0 %v2761_v49  ;;  %2794 = vmatprep.subr.bf16.mxu1 %v2793_v54  ;;  %v2813_v49 = vpack.c.bf16 %v1986_v43, %v1985_v42  ;;  %v2035_v54 = vld [vmem:[%s3560_s21 + $0x380] sm:$0xff]  ;;  %v2783_v56 = vpack.c.bf16 %v1938_v24, %v1937_v47  ;;  %v2815_v63 = vpack.c.bf16 %v1970_v50, %v1969_v48  ;;  %v2008_v43 = vld [vmem:[%s3560_s21 + $0x2a8] sm:$0xff] }
 0x10a   : > { %v2849_v58 = vpack.c.bf16 %v2036_v55, %v2035_v54  ;;  %v2007_v42 = vld [vmem:[%s3560_s21 + $0x2a0] sm:$0xff]  ;;  %v2823_v47 = vpack.c.bf16 %v1990_v35, %v1989_v34  ;;  %v2855_v24 = vpack.c.bf16 %v2022_v41, %v2021_v36  ;;  %v1992_v50 = vld [vmem:[%s3560_s21 + $0x228] sm:$0xff]  ;;  %v2009_v55 = vld [vmem:[%s3560_s21 + $0x2b0] sm:$0xff] }
 0x10b   : > { %v2825_v48 = vpack.c.bf16 %v2008_v43, %v2007_v42  ;;  %v2024_v54 = vld [vmem:[%s3560_s21 + $0x328] sm:$0xff]  ;;  %v1999_v35 = vld [vmem:[%s3560_s21 + $0x260] sm:$0xff]  ;;  %v2017_v41 = vld [vmem:[%s3560_s21 + $0x2f0] sm:$0xff] }
 0x10c   : > { %2764 = vmatpush3.bf16.msra.mxu0 %v2763_v59  ;;  %2796 = vmatpush3.bf16.msra.mxu1 %v2795_v60  ;;  %v757_v59 = vlaneseq  ;;  %v2000_v36 = vld [vmem:[%s3560_s21 + $0x268] sm:$0xff]  ;;  %v2018_v42 = vld [vmem:[%s3560_s21 + $0x2f8] sm:$0xff]  ;;  %v2049_v43 = vld [vmem:[%s3560_s21 + $0x3f0] sm:$0xff] }
 0x10d   : > { %2766 = vmatprep.subr.bf16.mxu0 %v2765_v61  ;;  %2798 = vmatprep.subr.bf16.mxu1 %v2797_v2 }
 0x10e   : > { %v3638_v60 = vshrl.u32 %v757_v59, 7  ;;  %v2859_v59 = vpack.c.bf16 %v2024_v54, %v2023_v51  ;;  %v2034_v51 = vld [vmem:[%s3560_s21 + $0x378] sm:$0xff] }
 0x110   : > { %2768 = vmatpush3.bf16.msra.mxu0 %v2767_v8  ;;  %2800 = vmatpush3.bf16.msra.mxu1 %v2799_v9  ;;  %v759_v61 = vsub.s32 0, %v3638_v60  ;;  %v767_v0 = vsub.s32 2, %v3638_v60  ;;  %v763_v1 = vsub.s32 1, %v3638_v60  ;;  %v771_v2 = vsub.s32 3, %v3638_v60 }
 0x111   : > { %2770 = vmatprep.subr.bf16.mxu0 %v2769_v10  ;;  %2802 = vmatprep.subr.bf16.mxu1 %v2801_v14 }
 0x112   : > { %v760_v3 = vrot.slane %v3644_v62, %v759_v61  ;;  %v768_v4 = vrot.slane %v3644_v62, %v767_v0  ;;  %v764_v5 = vrot.slane %v3644_v62, %v763_v1  ;;  %v772_v6 = vrot.slane %v3644_v62, %v771_v2  ;;  %v1993_v0 = vld [vmem:[%s3560_s21 + $0x230] sm:$0xff]  ;;  %v1994_v1 = vld [vmem:[%s3560_s21 + $0x238] sm:$0xff] }
 0x113   : > { %v2025_v2 = vld [vmem:[%s3560_s21 + $0x330] sm:$0xff] }
 0x114   : > { %2772 = vmatpush3.bf16.msra.mxu0 %v2771_v20  ;;  %2804 = vmatpush3.bf16.msra.mxu1 %v2803_v21  ;;  %v2006_v20 = vld [vmem:[%s3560_s21 + $0x298] sm:$0xff] }
 0x115   : > { %2774 = vmatprep.subr.bf16.mxu0 %v2773_v38  ;;  %2806 = vmatprep.subr.bf16.mxu1 %v2805_v27  ;;  %v2038_v27 = vld [vmem:[%s3560_s21 + $0x398] sm:$0xff] }
 0x116   : > { %v2853_v40 = vpack.c.bf16 %v2038_v27, %v2037_v26  ;;  %v1998_v26 = vld [vmem:[%s3560_s21 + $0x258] sm:$0xff]  ;;  %v2029_v27 = vld [vmem:[%s3560_s21 + $0x350] sm:$0xff] }
 0x118   : > { %2776 = vmatpush3.bf16.msra.mxu0 %v2775_v31  ;;  %2808 = vmatpush3.bf16.msra.mxu1 %v2807_v32  ;;  %v2851_v32 = vpack.c.bf16 %v2020_v18, %v2019_v13  ;;  %v1996_v13 = vld [vmem:[%s3560_s21 + $0x248] sm:$0xff]  ;;  %v2014_v18 = vld [vmem:[%s3560_s21 + $0x2d8] sm:$0xff] }
 0x119   : > { %2778 = vmatprep.subr.bf16.mxu0 %v2777_v33  ;;  %2810 = vmatprep.subr.bf16.mxu1 %v2809_v37  ;;  %v2821_v33 = vpack.c.bf16 %v2006_v20, %v2005_v19  ;;  %v2045_v19 = vld [vmem:[%s3560_s21 + $0x3d0] sm:$0xff]  ;;  %v2046_v20 = vld [vmem:[%s3560_s21 + $0x3d8] sm:$0xff] }
 0x11c   : > { %2780 = vmatpush3.bf16.msra.mxu0 %v2779_v44  ;;  %2812 = vmatpush3.bf16.msra.mxu1 %v2811_v45  ;;  %v2039_v45 = vld [vmem:[%s3560_s21 + $0x3a0] sm:$0xff] }
 0x11d   : > { %2782 = vmatprep.subr.bf16.mxu0 %v2781_v46  ;;  %2814 = vmatprep.subr.bf16.mxu1 %v2813_v49  ;;  %v2040_v46 = vld [vmem:[%s3560_s21 + $0x3a8] sm:$0xff]  ;;  %v1991_v49 = vld [vmem:[%s3560_s21 + $0x220] sm:$0xff] }
 0x11e   : > { %v2857_v53 = vpack.c.bf16 %v2040_v46, %v2039_v45  ;;  %v2843_v45 = vpack.c.bf16 %v2000_v36, %v1999_v35 }
 0x120   : > { %2784 = vmatpush3.bf16.msra.mxu0 %v2783_v56  ;;  %2816 = vmatpush3.bf16.msra.mxu1 %v2815_v63  ;;  %v2010_v56 = vld [vmem:[%s3560_s21 + $0x2b8] sm:$0xff]  ;;  %v2041_v63 = vld [vmem:[%s3560_s21 + $0x3b0] sm:$0xff] }
 0x121   : > { %2818 = vmatprep.subr.bf16.mxu0 %v2817_v57  ;;  %2850 = vmatprep.subr.bf16.mxu1 %v2849_v58  ;;  %v2042_v57 = vld [vmem:[%s3560_s21 + $0x3b8] sm:$0xff]  ;;  %v2827_v58 = vpack.c.bf16 %v1992_v50, %v1991_v49  ;;  %v2829_v61 = vpack.c.bf16 %v2010_v56, %v2009_v55  ;;  %v2033_v50 = vld [vmem:[%s3560_s21 + $0x370] sm:$0xff]  ;;  %v775_v55 = vsub.s32 4, %v3638_v60  ;;  %v783_v56 = vsub.s32 6, %v3638_v60 }
 0x122   : > { %v2879_v54 = vpack.c.bf16 %v2034_v51, %v2033_v50 }
 0x18a   : > { %v1646_v7 = vpop.f32.mrb[0].mxu0  ;;  %v1728_v9 = vpop.f32.mrb[0].mxu1 }
 0x18b   : > { %v2881_v8 = vadd.f32 %v1646_v7, %v760_v3  ;;  %v1648_v10 = vpop.f32.mrb[1].mxu0  ;;  %v2883_v14 = vadd.f32 %v1728_v9, %v768_v4  ;;  %v1730_v16 = vpop.f32.mrb[1].mxu1  ;;  %v2861_v3 = vpack.c.bf16 %v2042_v57, %v2041_v63  ;;  %v2026_v4 = vld [vmem:[%s3560_s21 + $0x338] sm:$0xff]  ;;  %v2043_v7 = vld [vmem:[%s3560_s21 + $0x3c0] sm:$0xff]  ;;  %v2831_v9 = vpack.c.bf16 %v1994_v1, %v1993_v0 }
 0x18c   : > { %v2882_v15 = vadd.f32 %v1648_v10, %v764_v5  ;;  %v1650_v17 = vpop.f32.mrb[2].mxu0  ;;  %v2884_v38 = vadd.f32 %v1730_v16, %v772_v6  ;;  %v1732_v22 = vpop.f32.mrb[2].mxu1  ;;  %v2011_v5 = vld [vmem:[%s3560_s21 + $0x2c0] sm:$0xff]  ;;  %v2012_v6 = vld [vmem:[%s3560_s21 + $0x2c8] sm:$0xff]  ;;  %v2863_v10 = vpack.c.bf16 %v2026_v4, %v2025_v2  ;;  %v779_v63 = vsub.s32 5, %v3638_v60 }
 0x18d   : > { %v1907_v21 = vmul.f32 0.01, %v2881_v8  ;;  %v1651_v23 = vpop.f32.mrb[3].mxu0  ;;  %vm1899_vm1 = vcmp.ge.f32.partialorder %v2881_v8, 0.0  ;;  %v1909_v28 = vmul.f32 0.01, %v2883_v14  ;;  %v2833_v11 = vpack.c.bf16 %v2012_v6, %v2011_v5 }
 0x18e   : > { %v1908_v25 = vmul.f32 0.01, %v2882_v15  ;;  %v1733_v29 = vpop.f32.mrb[3].mxu1  ;;  %vm1901_vm2 = vcmp.ge.f32.partialorder %v2883_v14, 0.0  ;;  %v1910_v52 = vmul.f32 0.01, %v2884_v38 }
 0x18f   : > { %vm1900_vm3 = vcmp.ge.f32.partialorder %v2882_v15, 0.0  ;;  %vm1902_vm4 = vcmp.ge.f32.partialorder %v2884_v38, 0.0  ;;  %v1915_v39 = vsel %vm1899_vm1, %v2881_v8, %v1907_v21  ;;  %v1917_v44 = vsel %vm1901_vm2, %v2883_v14, %v1909_v28  ;;  %v2044_v8 = vld [vmem:[%s3560_s21 + $0x3c8] sm:$0xff]  ;;  %v2027_v14 = vld [vmem:[%s3560_s21 + $0x340] sm:$0xff]  ;;  %v2013_v17 = vld [vmem:[%s3560_s21 + $0x2d0] sm:$0xff] }
 0x190   : > { %v1916_v31 = vsel %vm1900_vm3, %v2882_v15, %v1908_v25  ;;  %v1918_v37 = vsel %vm1902_vm4, %v2884_v38, %v1910_v52  ;;  %v2865_v15 = vpack.c.bf16 %v2044_v8, %v2043_v7  ;;  %v2028_v16 = vld [vmem:[%s3560_s21 + $0x348] sm:$0xff]  ;;  %v2835_v21 = vpack.c.bf16 %v1996_v13, %v1995_v12  ;;  %v1997_v23 = vld [vmem:[%s3560_s21 + $0x250] sm:$0xff]  ;;  %v2030_v25 = vld [vmem:[%s3560_s21 + $0x358] sm:$0xff] }
 0x191   : > { %2115 = vmatprep.mubr.f32.mxu0 %v1916_v31  ;;  %2185 = vmatprep.mubr.f32.mxu1 %v1918_v37  ;;  %v2867_v38 = vpack.c.bf16 %v2028_v16, %v2027_v14  ;;  %v2837_v22 = vpack.c.bf16 %v2014_v18, %v2013_v17  ;;  %v2869_v28 = vpack.c.bf16 %v2046_v20, %v2045_v19  ;;  %v2015_v29 = vld [vmem:[%s3560_s21 + $0x2e0] sm:$0xff]  ;;  %v2048_v31 = vld [vmem:[%s3560_s21 + $0x3e8] sm:$0xff]  ;;  %v787_v57 = vsub.s32 7, %v3638_v60 }
 0x192   : > { %2116 = vmatmul.mubr.f32.vlgmr.msra.gmra.mrb[8].mxu0 %v1915_v39  ;;  %2186 = vmatmul.mubr.f32.vlgmr.msra.gmra.mrb[8].mxu1 %v1917_v44  ;;  %v2047_v52 = vld [vmem:[%s3560_s21 + $0x3e0] sm:$0xff]  ;;  %v2050_v44 = vld [vmem:[%s3560_s21 + $0x3f8] sm:$0xff] }
 0x193   : > { %2820 = vmatpush3.bf16.msra.mxu0 %v2819_v30  ;;  %2852 = vmatpush3.bf16.msra.mxu1 %v2851_v32  ;;  %v2016_v30 = vld [vmem:[%s3560_s21 + $0x2e8] sm:$0xff]  ;;  %v2839_v32 = vpack.c.bf16 %v1998_v26, %v1997_v23  ;;  %v2031_v37 = vld [vmem:[%s3560_s21 + $0x360] sm:$0xff]  ;;  %v2873_v39 = vpack.c.bf16 %v2048_v31, %v2047_v52  ;;  %v2877_v49 = vpack.c.bf16 %v2050_v44, %v2049_v43 }
 0x194   : > { %2822 = vmatprep.subr.bf16.mxu0 %v2821_v33  ;;  %2854 = vmatprep.subr.bf16.mxu1 %v2853_v40  ;;  %v2871_v33 = vpack.c.bf16 %v2030_v25, %v2029_v27  ;;  %v2841_v34 = vpack.c.bf16 %v2016_v30, %v2015_v29  ;;  %v2032_v40 = vld [vmem:[%s3560_s21 + $0x368] sm:$0xff]  ;;  %v788_v0 = vrot.slane %v3644_v62, %v787_v57 }
 0x195   : > { %v2875_v46 = vpack.c.bf16 %v2032_v40, %v2031_v37 }
 0x197   : > { %2824 = vmatpush3.bf16.msra.mxu0 %v2823_v47  ;;  %2856 = vmatpush3.bf16.msra.mxu1 %v2855_v24  ;;  %v2845_v47 = vpack.c.bf16 %v2018_v42, %v2017_v41  ;;  %v2001_v24 = vld [vmem:[%s3560_s21 + $0x270] sm:$0xff] }
 0x198   : > { %2826 = vmatprep.subr.bf16.mxu0 %v2825_v48  ;;  %2858 = vmatprep.subr.bf16.mxu1 %v2857_v53  ;;  %v2002_v48 = vld [vmem:[%s3560_s21 + $0x278] sm:$0xff] }
 0x199   : > { %v2847_v53 = vpack.c.bf16 %v2002_v48, %v2001_v24 }
 0x19b   : > { %2828 = vmatpush3.bf16.msra.mxu0 %v2827_v58  ;;  %2860 = vmatpush3.bf16.msra.mxu1 %v2859_v59  ;;  %v776_v58 = vrot.slane %v3644_v62, %v775_v55  ;;  %v784_v59 = vrot.slane %v3644_v62, %v783_v56 }
 0x19c   : > { %2830 = vmatprep.subr.bf16.mxu0 %v2829_v61  ;;  %2862 = vmatprep.subr.bf16.mxu1 %v2861_v3  ;;  %v780_v61 = vrot.slane %v3644_v62, %v779_v63 }
 0x19f   : > { %2832 = vmatpush3.bf16.msra.mxu0 %v2831_v9  ;;  %2864 = vmatpush3.bf16.msra.mxu1 %v2863_v10 }
 0x1a0   : > { %2834 = vmatprep.subr.bf16.mxu0 %v2833_v11  ;;  %2866 = vmatprep.subr.bf16.mxu1 %v2865_v15 }
 0x1a3   : > { %2836 = vmatpush3.bf16.msra.mxu0 %v2835_v21  ;;  %2868 = vmatpush3.bf16.msra.mxu1 %v2867_v38 }
 0x1a4   : > { %2838 = vmatprep.subr.bf16.mxu0 %v2837_v22  ;;  %2870 = vmatprep.subr.bf16.mxu1 %v2869_v28 }
 0x1a7   : > { %2840 = vmatpush3.bf16.msra.mxu0 %v2839_v32  ;;  %2872 = vmatpush3.bf16.msra.mxu1 %v2871_v33 }
 0x1a8   : > { %2842 = vmatprep.subr.bf16.mxu0 %v2841_v34  ;;  %2874 = vmatprep.subr.bf16.mxu1 %v2873_v39 }
 0x1ab   : > { %2844 = vmatpush3.bf16.msra.mxu0 %v2843_v45  ;;  %2876 = vmatpush3.bf16.msra.mxu1 %v2875_v46 }
 0x1ac   : > { %2846 = vmatprep.subr.bf16.mxu0 %v2845_v47  ;;  %2878 = vmatprep.subr.bf16.mxu1 %v2877_v49 }
 0x1af   : > { %2848 = vmatpush3.bf16.msra.mxu0 %v2847_v53  ;;  %2880 = vmatpush3.bf16.msra.mxu1 %v2879_v54 }
 0x1d6   : > { %v1810_v1 = vpop.f32.mrb[4].mxu0  ;;  %v1892_v3 = vpop.f32.mrb[4].mxu1 }
 0x1d7   : > { %v2885_v2 = vadd.f32 %v1810_v1, %v776_v58  ;;  %v1812_v4 = vpop.f32.mrb[5].mxu0  ;;  %v2887_v5 = vadd.f32 %v1892_v3, %v784_v59  ;;  %v1894_v7 = vpop.f32.mrb[5].mxu1 }
 0x1d8   : > { %v2886_v6 = vadd.f32 %v1812_v4, %v780_v61  ;;  %v1814_v8 = vpop.f32.mrb[6].mxu0  ;;  %v2888_v10 = vadd.f32 %v1894_v7, %v788_v0  ;;  %v1896_v11 = vpop.f32.mrb[6].mxu1 }
 0x1d9   : > { %v1911_v9 = vmul.f32 0.01, %v2885_v2  ;;  %v1815_v60 = vpop.f32.mrb[7].mxu0  ;;  %vm1903_vm5 = vcmp.ge.f32.partialorder %v2885_v2, 0.0  ;;  %v1913_v12 = vmul.f32 0.01, %v2887_v5 }
 0x1da   : > { %v1912_v13 = vmul.f32 0.01, %v2886_v6  ;;  %v1897_v14 = vpop.f32.mrb[7].mxu1  ;;  %vm1905_vm6 = vcmp.ge.f32.partialorder %v2887_v5, 0.0  ;;  %v1914_v15 = vmul.f32 0.01, %v2888_v10 }
 0x1db   : > { %vm1904_vm7 = vcmp.ge.f32.partialorder %v2886_v6, 0.0  ;;  %vm1906_vm8 = vcmp.ge.f32.partialorder %v2888_v10, 0.0  ;;  %v1919_v17 = vsel %vm1903_vm5, %v2885_v2, %v1911_v9  ;;  %v1921_v18 = vsel %vm1905_vm6, %v2887_v5, %v1913_v12 }
 0x1dc   : > { %v1920_v62 = vsel %vm1904_vm7, %v2886_v6, %v1912_v13  ;;  %v1922_v16 = vsel %vm1906_vm8, %v2888_v10, %v1914_v15 }
 0x1dd   : > { %2255 = vmatprep.mubr.f32.mxu0 %v1920_v62  ;;  %2325 = vmatprep.mubr.f32.mxu1 %v1922_v16 }
 0x1de   : > { %2256 = vmatmul.mubr.f32.vlgmr.msra.gmra.mrb[10].mxu0 %v1919_v17  ;;  %2326 = vmatmul.mubr.f32.vlgmr.msra.gmra.mrb[10].mxu1 %v1921_v18 }
 0x265   : > { %v2645_v19 = vpop.f32.mrb[8].mxu0  ;;  %v2680_v20 = vpop.f32.mrb[8].mxu1 }
 0x266   : > { %v2646_v21 = vpop.f32.mrb[9].mxu0  ;;  %v2681_v22 = vpop.f32.mrb[9].mxu1 }
 0x267   : > { %v2647_v38 = vadd.f32 %v2646_v21, %v2645_v19  ;;  %v2682_v23 = vadd.f32 %v2681_v22, %v2680_v20 }
 0x269   : > { %v2188_v26 = vadd.f32 %v2682_v23, %v2647_v38 }
 0x2b1   : > { %v2715_v27 = vpop.f32.mrb[10].mxu0  ;;  %v2750_v28 = vpop.f32.mrb[10].mxu1 }
 0x2b2   : > { %v2716_v25 = vpop.f32.mrb[11].mxu0  ;;  %v2751_v30 = vpop.f32.mrb[11].mxu1 }
 0x2b3   : > { %v2717_v29 = vadd.f32 %v2716_v25, %v2715_v27  ;;  %v2752_v52 = vadd.f32 %v2751_v30, %v2750_v28 }
 0x2b5   : > { %v2258_v31 = vadd.f32 %v2717_v29, %v2188_v26 }
 0x2b7   : > { %v2328_v32 = vadd.f32 %v2752_v52, %v2258_v31 }
 0x2b9   : > { %2331 = vst [vmem:[%s599_s30] sm:$0xff] %v2328_v32 }
 0x2ba PF: > { %s14_s19 = sadd.s32 1, %s2989_s19   ;;  %s3748_s15 = smov %s2977_s16 }
 0x2bb   : > { %p11_p12 = scmp.ge.s32.totalorder %s14_s19, 4   ;;  %s3749_s16 = smov %s3052_s23 }
 0x2bc   : > { %s3750_s17 = smov %s2985_s18  ;;  %s3751_s18 = smov %s3753_s20 }
 0x2bd   :  { %13 = sbr.rel (!%p11_p12) target bundleno = 3 (0x3), region = 103 }

</bundles_post_ra>
